<compile_context>
chip_gen: v7x
topology: tpu7x:2x2x1
jax: 0.10.0
libtpu: 0.0.40
codegen_flags: <defaults>
</compile_context>

<pallas_src>
import jax
import jax.numpy as jnp
import numpy as np
from jax.experimental import pallas as pl
from jax.experimental.pallas import tpu as pltpu


# ------------------------------ small helpers --------------------------------

def _bn_affine(bn, eps=1e-5):
    scale = bn["gamma"] / jnp.sqrt(bn["var"] + eps)
    shift = bn["beta"] - bn["mean"] * scale
    return scale, shift


def _pad_and_phase(x, stride, dtype, pad_value=None):
    """Zero-pad spatially by 1 and phase-decompose for a stride-`s` 3x3 conv.

    Returns an (N, s*s*Hq, Wq, C) array where rows [ph*Hq, (ph+1)*Hq) hold
    phase ph = pi*s + pj, i.e. element [n, ph*Hq + hq, wq, c] equals
    x_padded[n, hq*s + pi, wq*s + pj, c].  Every conv tap (and the 1x1
    shortcut tap) then becomes an unstrided contiguous slice inside the
    kernel.  `pad_value` (per channel) is used when a bn+relu prologue is
    fused in the consuming kernel: padding with -shift/scale makes the fused
    prologue map border pixels to exactly 0 (matching "pad after relu(bn)")."""
    n, h, w, c = x.shape
    if pad_value is None:
        xp = jnp.pad(x, ((0, 0), (1, 1), (1, 1), (0, 0)))
    else:
        pv = pad_value.reshape(1, 1, 1, c).astype(x.dtype)
        xp = jnp.pad(x - pv, ((0, 0), (1, 1), (1, 1), (0, 0))) + pv
    s = stride
    if s == 1:
        return xp.astype(dtype)
    hp, wp = h + 2, w + 2
    hq, wq = -(-hp // s), -(-wp // s)
    xp = jnp.pad(xp, ((0, 0), (0, hq * s - hp), (0, wq * s - wp), (0, 0)))
    xp = xp.reshape(n, hq, s, wq, s, c).transpose(0, 2, 4, 1, 3, 5)
    return xp.reshape(n, s * s * hq, wq, c).astype(dtype)


def _pick_row_block(ho):
    if ho <= 32:
        return ho
    for bm in (32, 16, 8):
        if ho % bm == 0:
            return bm
    return ho


def _pick_cout_block(cout):
    if cout > 256 and cout % 256 == 0:
        return 256
    if cout > 128 and cout % 128 == 0:
        return 128
    return cout


# ----------------------- implicit-GEMM fused conv kernel ---------------------

def _make_conv_kernel(*, stride, bm, wo, hq, has_pre, has_post, has_res, sc):
    """3x3 conv as 9 shifted bf16 matmuls accumulated in f32, with optional
    fused bn+relu prologue, bn+relu epilogue, residual add, or 1x1-conv
    shortcut epilogue (shortcut activation recomputed in-kernel)."""
    sc_stride, sc_hq = sc if sc is not None else (None, None)

    def kernel(*refs):
        it = iter(refs)
        x_ref = next(it)
        w_ref = next(it)
        if has_pre:
            ps_ref, pt_ref = next(it), next(it)
        if has_post:
            qs_ref, qt_ref = next(it), next(it)
        if has_res:
            r_ref = next(it)
        if sc is not None:
            xs_ref, ss_ref, st_ref, wsc_ref = next(it), next(it), next(it), next(it)
        o_ref = next(it)

        r0 = pl.program_id(1) * bm           # first output row of this block
        bn = o_ref.shape[-1]

        def tap(ref, di, dj, s, rows_per_phase, act):
            # Output (ho, wo) needs padded input (ho*s + di, wo*s + dj), which
            # lives in phase (di%s, dj%s) at (ho + di//s, wo + dj//s).
            ph = (di % s) * s + (dj % s)
            row = ph * rows_per_phase + r0 + di // s
            p = ref[0, pl.ds(row, bm), pl.ds(dj // s, wo), :]
            p = p.reshape(bm * wo, p.shape[-1])
            if act is not None:              # fused bn1 + relu prologue
                scale, shift = act
                p = jnp.maximum(p.astype(jnp.float32) * scale + shift, 0.0)
                p = p.astype(jnp.bfloat16)
            return p

        pre = (ps_ref[...], pt_ref[...]) if has_pre else None
        acc = jnp.zeros((bm * wo, bn), jnp.float32)
        for di in range(3):
            for dj in range(3):
                a = tap(x_ref, di, dj, stride, hq, pre)
                acc = acc + jnp.dot(a, w_ref[di * 3 + dj],
                                    preferred_element_type=jnp.float32)

        if has_post:                          # fused bn2 + relu
            acc = jnp.maximum(acc * qs_ref[...] + qt_ref[...], 0.0)
        if has_res:                           # fused identity-residual add
            acc = acc + r_ref[0].reshape(bm * wo, bn).astype(jnp.float32)
        if sc is not None:                    # fused 1x1 stride-s shortcut conv
            a_sc = tap(xs_ref, 1, 1, sc_stride, sc_hq,
                       (ss_ref[...], st_ref[...]))
            acc = acc + jnp.dot(a_sc, wsc_ref[...],
                                preferred_element_type=jnp.float32)

        o_ref[0] = acc.reshape(bm, wo, bn).astype(o_ref.dtype)

    return kernel


def conv3x3_implicit(x_phases, w_hwio, *, stride, out_hw, out_dtype,
                     pre=None, post=None, residual=None, shortcut=None,
                     row_block=None, cout_block=None,
                     vmem_limit=48 * 1024 * 1024):
    """Fused 3x3 conv.  x_phases comes from _pad_and_phase(x, stride, bf16)."""
    n, _, wq, cin = x_phases.shape
    hq = x_phases.shape[1] // (stride * stride)
    ho, wo = out_hw
    cout = w_hwio.shape[-1]

    bm = row_block if row_block is not None else _pick_row_block(ho)
    bn = cout_block if cout_block is not None else _pick_cout_block(cout)
    assert ho % bm == 0 and cout % bn == 0
    gm, gn = ho // bm, cout // bn

    w9 = w_hwio.reshape(9, cin, cout).astype(jnp.bfloat16)

    inputs = [x_phases, w9]
    in_specs = [
        # Full phase image per batch: block index depends only on b, so the
        # activation is DMA'd exactly once per image and stays VMEM-resident
        # across the row/Cout grid axes.
        pl.BlockSpec((1, stride * stride * hq, wq, cin),
                     lambda b, i, j: (b, 0, 0, 0)),
        pl.BlockSpec((9, cin, bn), lambda b, i, j: (0, 0, j)),
    ]
    if pre is not None:
        ps, pt = pre
        inputs += [ps.reshape(1, cin).astype(jnp.float32),
                   pt.reshape(1, cin).astype(jnp.float32)]
        in_specs += [pl.BlockSpec((1, cin), lambda b, i, j: (0, 0))] * 2
    if post is not None:
        qs, qt = post
        inputs += [qs.reshape(1, cout).astype(jnp.float32),
                   qt.reshape(1, cout).astype(jnp.float32)]
        in_specs += [pl.BlockSpec((1, bn), lambda b, i, j: (0, j))] * 2
    if residual is not None:
        inputs += [residual]
        in_specs += [pl.BlockSpec((1, bm, wo, bn), lambda b, i, j: (b, i, 0, j))]
    sc_cfg = None
    if shortcut is not None:
        xs = shortcut["x_phases"]
        ss = shortcut["stride"]
        sc_hq = xs.shape[1] // (ss * ss)
        cin_sc = shortcut["w"].shape[0]
        inputs += [xs,
                   shortcut["scale"].reshape(1, cin_sc).astype(jnp.float32),
                   shortcut["shift"].reshape(1, cin_sc).astype(jnp.float32),
                   shortcut["w"].astype(jnp.bfloat16)]
        in_specs += [
            pl.BlockSpec((1, ss * ss * sc_hq, xs.shape[2], cin_sc),
                         lambda b, i, j: (b, 0, 0, 0)),
            pl.BlockSpec((1, cin_sc), lambda b, i, j: (0, 0)),
            pl.BlockSpec((1, cin_sc), lambda b, i, j: (0, 0)),
            pl.BlockSpec((cin_sc, bn), lambda b, i, j: (0, j)),
        ]
        sc_cfg = (ss, sc_hq)

    kernel = _make_conv_kernel(stride=stride, bm=bm, wo=wo, hq=hq,
                               has_pre=pre is not None,
                               has_post=post is not None,
                               has_res=residual is not None, sc=sc_cfg)

    flops = 2 * n * ho * wo * 9 * cin * cout
    bytes_accessed = (x_phases.size * x_phases.dtype.itemsize
                      + w9.size * w9.dtype.itemsize * (n * gm if gn > 1 else 1)
                      + n * ho * wo * cout * jnp.dtype(out_dtype).itemsize)
    if residual is not None:
        bytes_accessed += residual.size * residual.dtype.itemsize
    if shortcut is not None:
        xs = shortcut["x_phases"]
        flops += 2 * n * ho * wo * shortcut["w"].shape[0] * cout
        bytes_accessed += xs.size * xs.dtype.itemsize

    return pl.pallas_call(
        kernel,
        out_shape=jax.ShapeDtypeStruct((n, ho, wo, cout), out_dtype),
        grid=(n, gm, gn),
        in_specs=in_specs,
        out_specs=pl.BlockSpec((1, bm, wo, bn), lambda b, i, j: (b, i, 0, j)),
        compiler_params=pltpu.CompilerParams(
            dimension_semantics=("parallel", "parallel", "parallel"),
            vmem_limit_bytes=vmem_limit),
        cost_estimate=pl.CostEstimate(flops=int(flops), transcendentals=0,
                                      bytes_accessed=int(bytes_accessed)),
    )(*inputs)


# ------------------------------ block / network glue -------------------------

def basic_block_forward(x, p):
    """WRN BasicBlock forward (inference BN, dropRate=0.0) on NHWC input."""
    n, h, w, cin = x.shape
    s = p["stride"]
    cout = p["conv1"].shape[-1]
    ho, wo = (h - 1) // s + 1, (w - 1) // s + 1
    assert (not p["equal"]) or s == 1

    s1, t1 = _bn_affine(p["bn1"])
    s2, t2 = _bn_affine(p["bn2"])

    # Phase-decomposed bf16 copy of the padded input, padded with -t1/s1 so the
    # fused bn1+relu prologue maps border pixels to exactly 0.  relu(bn1(x)) is
    # never materialized in HBM.
    xph = _pad_and_phase(x, s, jnp.bfloat16, pad_value=-(t1 / s1))

    # conv1 (3x3, stride s): bn1+relu fused as prologue, bn2+relu as epilogue.
    b = conv3x3_implicit(xph, p["conv1"], stride=s, out_hw=(ho, wo),
                         out_dtype=jnp.bfloat16, pre=(s1, t1), post=(s2, t2))

    # TODO(synk): F.dropout with dropRate>0 in training mode is not
    # implemented; the module default dropRate=0.0 makes it the identity.

    bph = _pad_and_phase(b, 1, jnp.bfloat16)
    if p["equal"]:
        # conv2 (3x3, stride 1) + identity residual (raw f32 x) in the epilogue.
        y = conv3x3_implicit(bph, p["conv2"], stride=1, out_hw=(ho, wo),
                             out_dtype=jnp.float32, residual=x)
    else:
        # conv2 (3x3, stride 1) + fused 1x1 stride-s shortcut conv applied to
        # relu(bn1(x)), recomputed in-kernel from the same phase array.
        y = conv3x3_implicit(
            bph, p["conv2"], stride=1, out_hw=(ho, wo), out_dtype=jnp.float32,
            shortcut=dict(x_phases=xph, stride=s, scale=s1, shift=t1,
                          w=p["conv_sc"].reshape(cin, cout)))
    return y


def network_block_forward(x_nchw, layer_params):
    x = jnp.transpose(x_nchw, (0, 2, 3, 1))   # NCHW -> NHWC
    for p in layer_params:
        x = basic_block_forward(x, p)
    return jnp.transpose(x, (0, 3, 1, 2))     # NHWC -> NCHW


# ------------------------------- parameter init ------------------------------

def _init_bn(key, c):
    k1, k2, k3, k4 = jax.random.split(key, 4)
    return {"gamma": jax.random.uniform(k1, (c,), jnp.float32, 0.5, 1.5),
            "beta": 0.1 * jax.random.normal(k2, (c,), jnp.float32),
            "mean": 0.1 * jax.random.normal(k3, (c,), jnp.float32),
            "var": jax.random.uniform(k4, (c,), jnp.float32, 0.5, 1.5)}


def _init_conv(key, kh, kw, cin, cout):
    std = np.sqrt(2.0 / (kh * kw * cout))
    return std * jax.random.normal(key, (kh, kw, cin, cout), jnp.float32)


def init_basic_block(key, in_planes, out_planes, stride):
    ks = jax.random.split(key, 5)
    p = {"bn1": _init_bn(ks[0], in_planes),
         "conv1": _init_conv(ks[1], 3, 3, in_planes, out_planes),
         "bn2": _init_bn(ks[2], out_planes),
         "conv2": _init_conv(ks[3], 3, 3, out_planes, out_planes),
         "stride": stride,
         "equal": in_planes == out_planes}
    if not p["equal"]:
        p["conv_sc"] = _init_conv(ks[4], 1, 1, in_planes, out_planes)
    return p


def init_network_block(key, nb_layers, in_planes, out_planes, stride):
    keys = jax.random.split(key, int(nb_layers))
    layers = []
    for i in range(int(nb_layers)):
        layers.append(init_basic_block(
            keys[i],
            i == 0 and in_planes or out_planes,   # same idiom as the PyTorch code
            out_planes,
            i == 0 and stride or 1))
    return layers


# ------------------------------ pure-JAX reference ---------------------------

def _bn_relu_ref(x, p, eps=1e-5):
    y = (x - p["mean"]) / jnp.sqrt(p["var"] + eps) * p["gamma"] + p["beta"]
    return jnp.maximum(y, 0.0)


def _conv_ref(x, w, stride, padding):
    return jax.lax.conv_general_dilated(
        x, w, window_strides=(stride, stride),
        padding=((padding, padding), (padding, padding)),
        dimension_numbers=("NHWC", "HWIO", "NHWC"))


def network_block_ref(x_nchw, layer_params):
    x = jnp.transpose(x_nchw, (0, 2, 3, 1))
    for p in layer_params:
        if not p["equal"]:
            x = _bn_relu_ref(x, p["bn1"])
            o = x
        else:
            o = _bn_relu_ref(x, p["bn1"])
        o = _conv_ref(o, p["conv1"], p["stride"], 1)
        o = _bn_relu_ref(o, p["bn2"])
        res = x if p["equal"] else _conv_ref(x, p["conv_sc"], p["stride"], 0)
        x = _conv_ref(o, p["conv2"], 1, 1) + res
    return jnp.transpose(x, (0, 3, 1, 2))


# ------------------------------------ main -----------------------------------

if __name__ == "__main__":
    key = jax.random.PRNGKey(0)
    kx, kp = jax.random.split(key)

    # NetworkBlock(nb_layers=2, in_planes=4, out_planes=8, block=BasicBlock, stride=2)
    x_nchw = jax.random.normal(kx, (2, 4, 16, 16), jnp.float32)
    params = init_network_block(kp, nb_layers=2, in_planes=4, out_planes=8, stride=2)

    fwd = jax.jit(lambda xx: network_block_forward(xx, params))
    out = jax.block_until_ready(fwd(x_nchw))
    ref = jax.block_until_ready(network_block_ref(x_nchw, params))

    assert out.shape == (2, 8, 8, 8), out.shape
    # bf16 matmul operands (f32 accumulation) across two stacked blocks: give a
    # little extra absolute headroom vs. the all-f32 variant.
    np.testing.assert_allclose(np.asarray(out), np.asarray(ref),
                               rtol=2e-2, atol=3e-2)

    # Exercise the multi-block grid path (gm=2 row blocks, gn=2 Cout blocks)
    # that the tiny module shapes collapse to a single block.
    k1, k2 = jax.random.split(jax.random.PRNGKey(1))
    xb = jax.random.normal(k1, (2, 16, 16, 16), jnp.float32)
    wb = 0.05 * jax.random.normal(k2, (3, 3, 16, 256), jnp.float32)
    got = jax.block_until_ready(
        conv3x3_implicit(_pad_and_phase(xb, 1, jnp.bfloat16), wb, stride=1,
                         out_hw=(16, 16), out_dtype=jnp.float32,
                         row_block=8, cout_block=128))
    want = jax.block_until_ready(_conv_ref(xb, wb, 1, 1))
    np.testing.assert_allclose(np.asarray(got), np.asarray(want),
                               rtol=2e-2, atol=2e-2)

    print("KERNEL_OK")
</pallas_src>

<mosaic_0001>
module attributes {stable_mosaic.version = 11 : i64} {
  func.func @kernel(%arg0: i32, %arg1: i32, %arg2: i32, %arg3: memref<1x36x9x4xbf16, #tpu.memory_space<vmem>>, %arg4: memref<9x4x8xbf16, #tpu.memory_space<vmem>>, %arg5: memref<1x4xf32, #tpu.memory_space<vmem>>, %arg6: memref<1x4xf32, #tpu.memory_space<vmem>>, %arg7: memref<1x8xf32, #tpu.memory_space<vmem>>, %arg8: memref<1x8xf32, #tpu.memory_space<vmem>>, %arg9: memref<1x8x8x8xbf16, #tpu.memory_space<vmem>>) attributes {dimension_semantics = [#tpu.dimension_semantics<parallel>, #tpu.dimension_semantics<parallel>, #tpu.dimension_semantics<parallel>], iteration_bounds = array<i64: 2, 1, 1>, scalar_prefetch = 0 : i64, scratch_operands = 0 : i64, tpu.core_type = #tpu.core_type<tc>, window_params = [{transform_indices = @transform_0, window_bounds = array<i64: 1, 36, 9, 4>}, {transform_indices = @transform_1, window_bounds = array<i64: 9, 4, 8>}, {pipeline_mode = #tpu.pipeline_mode<synchronous>, transform_indices = @transform_2, window_bounds = array<i64: 1, 4>}, {pipeline_mode = #tpu.pipeline_mode<synchronous>, transform_indices = @transform_3, window_bounds = array<i64: 1, 4>}, {transform_indices = @transform_4, window_bounds = array<i64: 1, 8>}, {transform_indices = @transform_5, window_bounds = array<i64: 1, 8>}, {transform_indices = @transform_6, window_bounds = array<i64: 1, 8, 8, 8>}]} {
    %c8_i32 = arith.constant 8 : i32
    %0 = arith.muli %arg1, %c8_i32 : i32
    %c0 = arith.constant 0 : index
    %c0_0 = arith.constant 0 : index
    %1 = vector.load %arg5[%c0, %c0_0] : memref<1x4xf32, #tpu.memory_space<vmem>>, vector<1x4xf32>
    %c0_1 = arith.constant 0 : index
    %c0_2 = arith.constant 0 : index
    %2 = vector.load %arg6[%c0_1, %c0_2] : memref<1x4xf32, #tpu.memory_space<vmem>>, vector<1x4xf32>
    %cst = arith.constant 0.000000e+00 : f32
    %3 = vector.broadcast %cst : f32 to vector<64x8xf32>
    %c0_i32 = arith.constant 0 : i32
    %4 = arith.addi %c0_i32, %0 : i32
    %c0_i32_3 = arith.constant 0 : i32
    %5 = arith.addi %4, %c0_i32_3 : i32
    %c0_4 = arith.constant 0 : index
    %6 = arith.index_cast %5 : i32 to index
    %c0_5 = arith.constant 0 : index
    %c0_6 = arith.constant 0 : index
    %7 = vector.load %arg3[%c0_4, %6, %c0_5, %c0_6] : memref<1x36x9x4xbf16, #tpu.memory_space<vmem>>, vector<1x8x8x4xbf16>
    %8 = vector.shape_cast %7 : vector<1x8x8x4xbf16> to vector<8x8x4xbf16>
    %9 = vector.shape_cast %8 : vector<8x8x4xbf16> to vector<64x4xbf16>
    %10 = arith.extf %9 : vector<64x4xbf16> to vector<64x4xf32>
    %11 = vector.broadcast %1 : vector<1x4xf32> to vector<64x4xf32>
    %12 = arith.mulf %10, %11 : vector<64x4xf32>
    %13 = vector.broadcast %2 : vector<1x4xf32> to vector<64x4xf32>
    %14 = arith.addf %12, %13 : vector<64x4xf32>
    %cst_7 = arith.constant 0.000000e+00 : f32
    %15 = vector.broadcast %cst_7 : f32 to vector<64x4xf32>
    %16 = arith.maximumf %14, %15 : vector<64x4xf32>
    %17 = arith.truncf %16 : vector<64x4xf32> to vector<64x4xbf16>
    %c0_8 = arith.constant 0 : index
    %c0_9 = arith.constant 0 : index
    %c0_10 = arith.constant 0 : index
    %18 = vector.load %arg4[%c0_8, %c0_9, %c0_10] : memref<9x4x8xbf16, #tpu.memory_space<vmem>>, vector<1x4x8xbf16>
    %19 = vector.shape_cast %18 : vector<1x4x8xbf16> to vector<4x8xbf16>
    %cst_11 = arith.constant dense<0.000000e+00> : vector<64x8xf32>
    %20 = tpu.matmul %17, %19, %cst_11 {dimension_numbers = #tpu.dot_dimension_numbers<[1], [0], [0], [1], [0, 0, 1, 1], [], []>} : vector<64x4xbf16>, vector<4x8xbf16>, vector<64x8xf32> -> vector<64x8xf32>
    %21 = arith.addf %3, %20 : vector<64x8xf32>
    %c9_i32 = arith.constant 9 : i32
    %22 = arith.addi %c9_i32, %0 : i32
    %c0_i32_12 = arith.constant 0 : i32
    %23 = arith.addi %22, %c0_i32_12 : i32
    %c0_13 = arith.constant 0 : index
    %24 = arith.index_cast %23 : i32 to index
    %c0_14 = arith.constant 0 : index
    %c0_15 = arith.constant 0 : index
    %25 = vector.load %arg3[%c0_13, %24, %c0_14, %c0_15] : memref<1x36x9x4xbf16, #tpu.memory_space<vmem>>, vector<1x8x8x4xbf16>
    %26 = vector.shape_cast %25 : vector<1x8x8x4xbf16> to vector<8x8x4xbf16>
    %27 = vector.shape_cast %26 : vector<8x8x4xbf16> to vector<64x4xbf16>
    %28 = arith.extf %27 : vector<64x4xbf16> to vector<64x4xf32>
    %29 = vector.broadcast %1 : vector<1x4xf32> to vector<64x4xf32>
    %30 = arith.mulf %28, %29 : vector<64x4xf32>
    %31 = vector.broadcast %2 : vector<1x4xf32> to vector<64x4xf32>
    %32 = arith.addf %30, %31 : vector<64x4xf32>
    %cst_16 = arith.constant 0.000000e+00 : f32
    %33 = vector.broadcast %cst_16 : f32 to vector<64x4xf32>
    %34 = arith.maximumf %32, %33 : vector<64x4xf32>
    %35 = arith.truncf %34 : vector<64x4xf32> to vector<64x4xbf16>
    %c1 = arith.constant 1 : index
    %c0_17 = arith.constant 0 : index
    %c0_18 = arith.constant 0 : index
    %36 = vector.load %arg4[%c1, %c0_17, %c0_18] : memref<9x4x8xbf16, #tpu.memory_space<vmem>>, vector<1x4x8xbf16>
    %37 = vector.shape_cast %36 : vector<1x4x8xbf16> to vector<4x8xbf16>
    %cst_19 = arith.constant dense<0.000000e+00> : vector<64x8xf32>
    %38 = tpu.matmul %35, %37, %cst_19 {dimension_numbers = #tpu.dot_dimension_numbers<[1], [0], [0], [1], [0, 0, 1, 1], [], []>} : vector<64x4xbf16>, vector<4x8xbf16>, vector<64x8xf32> -> vector<64x8xf32>
    %39 = arith.addf %21, %38 : vector<64x8xf32>
    %c0_i32_20 = arith.constant 0 : i32
    %40 = arith.addi %c0_i32_20, %0 : i32
    %c0_i32_21 = arith.constant 0 : i32
    %41 = arith.addi %40, %c0_i32_21 : i32
    %c0_22 = arith.constant 0 : index
    %42 = arith.index_cast %41 : i32 to index
    %c1_23 = arith.constant 1 : index
    %c0_24 = arith.constant 0 : index
    %43 = vector.load %arg3[%c0_22, %42, %c1_23, %c0_24] : memref<1x36x9x4xbf16, #tpu.memory_space<vmem>>, vector<1x8x8x4xbf16>
    %44 = vector.shape_cast %43 : vector<1x8x8x4xbf16> to vector<8x8x4xbf16>
    %45 = vector.shape_cast %44 : vector<8x8x4xbf16> to vector<64x4xbf16>
    %46 = arith.extf %45 : vector<64x4xbf16> to vector<64x4xf32>
    %47 = vector.broadcast %1 : vector<1x4xf32> to vector<64x4xf32>
    %48 = arith.mulf %46, %47 : vector<64x4xf32>
    %49 = vector.broadcast %2 : vector<1x4xf32> to vector<64x4xf32>
    %50 = arith.addf %48, %49 : vector<64x4xf32>
    %cst_25 = arith.constant 0.000000e+00 : f32
    %51 = vector.broadcast %cst_25 : f32 to vector<64x4xf32>
    %52 = arith.maximumf %50, %51 : vector<64x4xf32>
    %53 = arith.truncf %52 : vector<64x4xf32> to vector<64x4xbf16>
    %c2 = arith.constant 2 : index
    %c0_26 = arith.constant 0 : index
    %c0_27 = arith.constant 0 : index
    %54 = vector.load %arg4[%c2, %c0_26, %c0_27] : memref<9x4x8xbf16, #tpu.memory_space<vmem>>, vector<1x4x8xbf16>
    %55 = vector.shape_cast %54 : vector<1x4x8xbf16> to vector<4x8xbf16>
    %cst_28 = arith.constant dense<0.000000e+00> : vector<64x8xf32>
    %56 = tpu.matmul %53, %55, %cst_28 {dimension_numbers = #tpu.dot_dimension_numbers<[1], [0], [0], [1], [0, 0, 1, 1], [], []>} : vector<64x4xbf16>, vector<4x8xbf16>, vector<64x8xf32> -> vector<64x8xf32>
    %57 = arith.addf %39, %56 : vector<64x8xf32>
    %c18_i32 = arith.constant 18 : i32
    %58 = arith.addi %c18_i32, %0 : i32
    %c0_i32_29 = arith.constant 0 : i32
    %59 = arith.addi %58, %c0_i32_29 : i32
    %c0_30 = arith.constant 0 : index
    %60 = arith.index_cast %59 : i32 to index
    %c0_31 = arith.constant 0 : index
    %c0_32 = arith.constant 0 : index
    %61 = vector.load %arg3[%c0_30, %60, %c0_31, %c0_32] : memref<1x36x9x4xbf16, #tpu.memory_space<vmem>>, vector<1x8x8x4xbf16>
    %62 = vector.shape_cast %61 : vector<1x8x8x4xbf16> to vector<8x8x4xbf16>
    %63 = vector.shape_cast %62 : vector<8x8x4xbf16> to vector<64x4xbf16>
    %64 = arith.extf %63 : vector<64x4xbf16> to vector<64x4xf32>
    %65 = vector.broadcast %1 : vector<1x4xf32> to vector<64x4xf32>
    %66 = arith.mulf %64, %65 : vector<64x4xf32>
    %67 = vector.broadcast %2 : vector<1x4xf32> to vector<64x4xf32>
    %68 = arith.addf %66, %67 : vector<64x4xf32>
    %cst_33 = arith.constant 0.000000e+00 : f32
    %69 = vector.broadcast %cst_33 : f32 to vector<64x4xf32>
    %70 = arith.maximumf %68, %69 : vector<64x4xf32>
    %71 = arith.truncf %70 : vector<64x4xf32> to vector<64x4xbf16>
    %c3 = arith.constant 3 : index
    %c0_34 = arith.constant 0 : index
    %c0_35 = arith.constant 0 : index
    %72 = vector.load %arg4[%c3, %c0_34, %c0_35] : memref<9x4x8xbf16, #tpu.memory_space<vmem>>, vector<1x4x8xbf16>
    %73 = vector.shape_cast %72 : vector<1x4x8xbf16> to vector<4x8xbf16>
    %cst_36 = arith.constant dense<0.000000e+00> : vector<64x8xf32>
    %74 = tpu.matmul %71, %73, %cst_36 {dimension_numbers = #tpu.dot_dimension_numbers<[1], [0], [0], [1], [0, 0, 1, 1], [], []>} : vector<64x4xbf16>, vector<4x8xbf16>, vector<64x8xf32> -> vector<64x8xf32>
    %75 = arith.addf %57, %74 : vector<64x8xf32>
    %c27_i32 = arith.constant 27 : i32
    %76 = arith.addi %c27_i32, %0 : i32
    %c0_i32_37 = arith.constant 0 : i32
    %77 = arith.addi %76, %c0_i32_37 : i32
    %c0_38 = arith.constant 0 : index
    %78 = arith.index_cast %77 : i32 to index
    %c0_39 = arith.constant 0 : index
    %c0_40 = arith.constant 0 : index
    %79 = vector.load %arg3[%c0_38, %78, %c0_39, %c0_40] : memref<1x36x9x4xbf16, #tpu.memory_space<vmem>>, vector<1x8x8x4xbf16>
    %80 = vector.shape_cast %79 : vector<1x8x8x4xbf16> to vector<8x8x4xbf16>
    %81 = vector.shape_cast %80 : vector<8x8x4xbf16> to vector<64x4xbf16>
    %82 = arith.extf %81 : vector<64x4xbf16> to vector<64x4xf32>
    %83 = vector.broadcast %1 : vector<1x4xf32> to vector<64x4xf32>
    %84 = arith.mulf %82, %83 : vector<64x4xf32>
    %85 = vector.broadcast %2 : vector<1x4xf32> to vector<64x4xf32>
    %86 = arith.addf %84, %85 : vector<64x4xf32>
    %cst_41 = arith.constant 0.000000e+00 : f32
    %87 = vector.broadcast %cst_41 : f32 to vector<64x4xf32>
    %88 = arith.maximumf %86, %87 : vector<64x4xf32>
    %89 = arith.truncf %88 : vector<64x4xf32> to vector<64x4xbf16>
    %c4 = arith.constant 4 : index
    %c0_42 = arith.constant 0 : index
    %c0_43 = arith.constant 0 : index
    %90 = vector.load %arg4[%c4, %c0_42, %c0_43] : memref<9x4x8xbf16, #tpu.memory_space<vmem>>, vector<1x4x8xbf16>
    %91 = vector.shape_cast %90 : vector<1x4x8xbf16> to vector<4x8xbf16>
    %cst_44 = arith.constant dense<0.000000e+00> : vector<64x8xf32>
    %92 = tpu.matmul %89, %91, %cst_44 {dimension_numbers = #tpu.dot_dimension_numbers<[1], [0], [0], [1], [0, 0, 1, 1], [], []>} : vector<64x4xbf16>, vector<4x8xbf16>, vector<64x8xf32> -> vector<64x8xf32>
    %93 = arith.addf %75, %92 : vector<64x8xf32>
    %c18_i32_45 = arith.constant 18 : i32
    %94 = arith.addi %c18_i32_45, %0 : i32
    %c0_i32_46 = arith.constant 0 : i32
    %95 = arith.addi %94, %c0_i32_46 : i32
    %c0_47 = arith.constant 0 : index
    %96 = arith.index_cast %95 : i32 to index
    %c1_48 = arith.constant 1 : index
    %c0_49 = arith.constant 0 : index
    %97 = vector.load %arg3[%c0_47, %96, %c1_48, %c0_49] : memref<1x36x9x4xbf16, #tpu.memory_space<vmem>>, vector<1x8x8x4xbf16>
    %98 = vector.shape_cast %97 : vector<1x8x8x4xbf16> to vector<8x8x4xbf16>
    %99 = vector.shape_cast %98 : vector<8x8x4xbf16> to vector<64x4xbf16>
    %100 = arith.extf %99 : vector<64x4xbf16> to vector<64x4xf32>
    %101 = vector.broadcast %1 : vector<1x4xf32> to vector<64x4xf32>
    %102 = arith.mulf %100, %101 : vector<64x4xf32>
    %103 = vector.broadcast %2 : vector<1x4xf32> to vector<64x4xf32>
    %104 = arith.addf %102, %103 : vector<64x4xf32>
    %cst_50 = arith.constant 0.000000e+00 : f32
    %105 = vector.broadcast %cst_50 : f32 to vector<64x4xf32>
    %106 = arith.maximumf %104, %105 : vector<64x4xf32>
    %107 = arith.truncf %106 : vector<64x4xf32> to vector<64x4xbf16>
    %c5 = arith.constant 5 : index
    %c0_51 = arith.constant 0 : index
    %c0_52 = arith.constant 0 : index
    %108 = vector.load %arg4[%c5, %c0_51, %c0_52] : memref<9x4x8xbf16, #tpu.memory_space<vmem>>, vector<1x4x8xbf16>
    %109 = vector.shape_cast %108 : vector<1x4x8xbf16> to vector<4x8xbf16>
    %cst_53 = arith.constant dense<0.000000e+00> : vector<64x8xf32>
    %110 = tpu.matmul %107, %109, %cst_53 {dimension_numbers = #tpu.dot_dimension_numbers<[1], [0], [0], [1], [0, 0, 1, 1], [], []>} : vector<64x4xbf16>, vector<4x8xbf16>, vector<64x8xf32> -> vector<64x8xf32>
    %111 = arith.addf %93, %110 : vector<64x8xf32>
    %c0_i32_54 = arith.constant 0 : i32
    %112 = arith.addi %c0_i32_54, %0 : i32
    %c1_i32 = arith.constant 1 : i32
    %113 = arith.addi %112, %c1_i32 : i32
    %c0_55 = arith.constant 0 : index
    %114 = arith.index_cast %113 : i32 to index
    %c0_56 = arith.constant 0 : index
    %c0_57 = arith.constant 0 : index
    %115 = vector.load %arg3[%c0_55, %114, %c0_56, %c0_57] : memref<1x36x9x4xbf16, #tpu.memory_space<vmem>>, vector<1x8x8x4xbf16>
    %116 = vector.shape_cast %115 : vector<1x8x8x4xbf16> to vector<8x8x4xbf16>
    %117 = vector.shape_cast %116 : vector<8x8x4xbf16> to vector<64x4xbf16>
    %118 = arith.extf %117 : vector<64x4xbf16> to vector<64x4xf32>
    %119 = vector.broadcast %1 : vector<1x4xf32> to vector<64x4xf32>
    %120 = arith.mulf %118, %119 : vector<64x4xf32>
    %121 = vector.broadcast %2 : vector<1x4xf32> to vector<64x4xf32>
    %122 = arith.addf %120, %121 : vector<64x4xf32>
    %cst_58 = arith.constant 0.000000e+00 : f32
    %123 = vector.broadcast %cst_58 : f32 to vector<64x4xf32>
    %124 = arith.maximumf %122, %123 : vector<64x4xf32>
    %125 = arith.truncf %124 : vector<64x4xf32> to vector<64x4xbf16>
    %c6 = arith.constant 6 : index
    %c0_59 = arith.constant 0 : index
    %c0_60 = arith.constant 0 : index
    %126 = vector.load %arg4[%c6, %c0_59, %c0_60] : memref<9x4x8xbf16, #tpu.memory_space<vmem>>, vector<1x4x8xbf16>
    %127 = vector.shape_cast %126 : vector<1x4x8xbf16> to vector<4x8xbf16>
    %cst_61 = arith.constant dense<0.000000e+00> : vector<64x8xf32>
    %128 = tpu.matmul %125, %127, %cst_61 {dimension_numbers = #tpu.dot_dimension_numbers<[1], [0], [0], [1], [0, 0, 1, 1], [], []>} : vector<64x4xbf16>, vector<4x8xbf16>, vector<64x8xf32> -> vector<64x8xf32>
    %129 = arith.addf %111, %128 : vector<64x8xf32>
    %c9_i32_62 = arith.constant 9 : i32
    %130 = arith.addi %c9_i32_62, %0 : i32
    %c1_i32_63 = arith.constant 1 : i32
    %131 = arith.addi %130, %c1_i32_63 : i32
    %c0_64 = arith.constant 0 : index
    %132 = arith.index_cast %131 : i32 to index
    %c0_65 = arith.constant 0 : index
    %c0_66 = arith.constant 0 : index
    %133 = vector.load %arg3[%c0_64, %132, %c0_65, %c0_66] : memref<1x36x9x4xbf16, #tpu.memory_space<vmem>>, vector<1x8x8x4xbf16>
    %134 = vector.shape_cast %133 : vector<1x8x8x4xbf16> to vector<8x8x4xbf16>
    %135 = vector.shape_cast %134 : vector<8x8x4xbf16> to vector<64x4xbf16>
    %136 = arith.extf %135 : vector<64x4xbf16> to vector<64x4xf32>
    %137 = vector.broadcast %1 : vector<1x4xf32> to vector<64x4xf32>
    %138 = arith.mulf %136, %137 : vector<64x4xf32>
    %139 = vector.broadcast %2 : vector<1x4xf32> to vector<64x4xf32>
    %140 = arith.addf %138, %139 : vector<64x4xf32>
    %cst_67 = arith.constant 0.000000e+00 : f32
    %141 = vector.broadcast %cst_67 : f32 to vector<64x4xf32>
    %142 = arith.maximumf %140, %141 : vector<64x4xf32>
    %143 = arith.truncf %142 : vector<64x4xf32> to vector<64x4xbf16>
    %c7 = arith.constant 7 : index
    %c0_68 = arith.constant 0 : index
    %c0_69 = arith.constant 0 : index
    %144 = vector.load %arg4[%c7, %c0_68, %c0_69] : memref<9x4x8xbf16, #tpu.memory_space<vmem>>, vector<1x4x8xbf16>
    %145 = vector.shape_cast %144 : vector<1x4x8xbf16> to vector<4x8xbf16>
    %cst_70 = arith.constant dense<0.000000e+00> : vector<64x8xf32>
    %146 = tpu.matmul %143, %145, %cst_70 {dimension_numbers = #tpu.dot_dimension_numbers<[1], [0], [0], [1], [0, 0, 1, 1], [], []>} : vector<64x4xbf16>, vector<4x8xbf16>, vector<64x8xf32> -> vector<64x8xf32>
    %147 = arith.addf %129, %146 : vector<64x8xf32>
    %c0_i32_71 = arith.constant 0 : i32
    %148 = arith.addi %c0_i32_71, %0 : i32
    %c1_i32_72 = arith.constant 1 : i32
    %149 = arith.addi %148, %c1_i32_72 : i32
    %c0_73 = arith.constant 0 : index
    %150 = arith.index_cast %149 : i32 to index
    %c1_74 = arith.constant 1 : index
    %c0_75 = arith.constant 0 : index
    %151 = vector.load %arg3[%c0_73, %150, %c1_74, %c0_75] : memref<1x36x9x4xbf16, #tpu.memory_space<vmem>>, vector<1x8x8x4xbf16>
    %152 = vector.shape_cast %151 : vector<1x8x8x4xbf16> to vector<8x8x4xbf16>
    %153 = vector.shape_cast %152 : vector<8x8x4xbf16> to vector<64x4xbf16>
    %154 = arith.extf %153 : vector<64x4xbf16> to vector<64x4xf32>
    %155 = vector.broadcast %1 : vector<1x4xf32> to vector<64x4xf32>
    %156 = arith.mulf %154, %155 : vector<64x4xf32>
    %157 = vector.broadcast %2 : vector<1x4xf32> to vector<64x4xf32>
    %158 = arith.addf %156, %157 : vector<64x4xf32>
    %cst_76 = arith.constant 0.000000e+00 : f32
    %159 = vector.broadcast %cst_76 : f32 to vector<64x4xf32>
    %160 = arith.maximumf %158, %159 : vector<64x4xf32>
    %161 = arith.truncf %160 : vector<64x4xf32> to vector<64x4xbf16>
    %c8 = arith.constant 8 : index
    %c0_77 = arith.constant 0 : index
    %c0_78 = arith.constant 0 : index
    %162 = vector.load %arg4[%c8, %c0_77, %c0_78] : memref<9x4x8xbf16, #tpu.memory_space<vmem>>, vector<1x4x8xbf16>
    %163 = vector.shape_cast %162 : vector<1x4x8xbf16> to vector<4x8xbf16>
    %cst_79 = arith.constant dense<0.000000e+00> : vector<64x8xf32>
    %164 = tpu.matmul %161, %163, %cst_79 {dimension_numbers = #tpu.dot_dimension_numbers<[1], [0], [0], [1], [0, 0, 1, 1], [], []>} : vector<64x4xbf16>, vector<4x8xbf16>, vector<64x8xf32> -> vector<64x8xf32>
    %165 = arith.addf %147, %164 : vector<64x8xf32>
    %c0_80 = arith.constant 0 : index
    %c0_81 = arith.constant 0 : index
    %166 = vector.load %arg7[%c0_80, %c0_81] : memref<1x8xf32, #tpu.memory_space<vmem>>, vector<1x8xf32>
    %167 = vector.broadcast %166 : vector<1x8xf32> to vector<64x8xf32>
    %168 = arith.mulf %165, %167 : vector<64x8xf32>
    %c0_82 = arith.constant 0 : index
    %c0_83 = arith.constant 0 : index
    %169 = vector.load %arg8[%c0_82, %c0_83] : memref<1x8xf32, #tpu.memory_space<vmem>>, vector<1x8xf32>
    %170 = vector.broadcast %169 : vector<1x8xf32> to vector<64x8xf32>
    %171 = arith.addf %168, %170 : vector<64x8xf32>
    %cst_84 = arith.constant 0.000000e+00 : f32
    %172 = vector.broadcast %cst_84 : f32 to vector<64x8xf32>
    %173 = arith.maximumf %171, %172 : vector<64x8xf32>
    %174 = vector.shape_cast %173 : vector<64x8xf32> to vector<8x8x8xf32>
    %175 = arith.truncf %174 : vector<8x8x8xf32> to vector<8x8x8xbf16>
    %c0_85 = arith.constant 0 : index
    %c0_86 = arith.constant 0 : index
    %c0_87 = arith.constant 0 : index
    %c0_88 = arith.constant 0 : index
    %176 = vector.load %arg9[%c0_85, %c0_86, %c0_87, %c0_88] : memref<1x8x8x8xbf16, #tpu.memory_space<vmem>>, vector<1x8x8x8xbf16>
    %177 = vector.shape_cast %176 : vector<1x8x8x8xbf16> to vector<8x8x8xbf16>
    %178 = vector.shape_cast %175 : vector<8x8x8xbf16> to vector<1x8x8x8xbf16>
    tpu.vector_store %arg9[%c0_85, %c0_86, %c0_87, %c0_88], %178 {strides = array<i32>} : memref<1x8x8x8xbf16, #tpu.memory_space<vmem>>, vector<1x8x8x8xbf16>,
    return
  }
  func.func @transform_0(%arg0: i32, %arg1: i32, %arg2: i32) -> (i32, i32, i32, i32) {
    %c0_i32 = arith.constant 0 : i32
    %c0_i32_0 = arith.constant 0 : i32
    %c0_i32_1 = arith.constant 0 : i32
    %c0_i32_2 = arith.constant 0 : i32
    return %arg0, %c0_i32, %c0_i32_0, %c0_i32_1 : i32, i32, i32, i32
  }
  func.func @transform_1(%arg0: i32, %arg1: i32, %arg2: i32) -> (i32, i32, i32) {
    %c0_i32 = arith.constant 0 : i32
    %c0_i32_0 = arith.constant 0 : i32
    %c0_i32_1 = arith.constant 0 : i32
    return %c0_i32, %c0_i32_0, %arg2 : i32, i32, i32
  }
  func.func @transform_2(%arg0: i32, %arg1: i32, %arg2: i32) -> (i32, i32) {
    %c0_i32 = arith.constant 0 : i32
    %c0_i32_0 = arith.constant 0 : i32
    %c0_i32_1 = arith.constant 0 : i32
    return %c0_i32, %c0_i32_0 : i32, i32
  }
  func.func @transform_3(%arg0: i32, %arg1: i32, %arg2: i32) -> (i32, i32) {
    %c0_i32 = arith.constant 0 : i32
    %c0_i32_0 = arith.constant 0 : i32
    %c0_i32_1 = arith.constant 0 : i32
    return %c0_i32, %c0_i32_0 : i32, i32
  }
  func.func @transform_4(%arg0: i32, %arg1: i32, %arg2: i32) -> (i32, i32) {
    %c0_i32 = arith.constant 0 : i32
    %c0_i32_0 = arith.constant 0 : i32
    return %c0_i32, %arg2 : i32, i32
  }
  func.func @transform_5(%arg0: i32, %arg1: i32, %arg2: i32) -> (i32, i32) {
    %c0_i32 = arith.constant 0 : i32
    %c0_i32_0 = arith.constant 0 : i32
    return %c0_i32, %arg2 : i32, i32
  }
  func.func @transform_6(%arg0: i32, %arg1: i32, %arg2: i32) -> (i32, i32, i32, i32) {
    %c0_i32 = arith.constant 0 : i32
    %c0_i32_0 = arith.constant 0 : i32
    return %arg0, %arg1, %c0_i32, %arg2 : i32, i32, i32, i32
  }
}

module attributes {stable_mosaic.version = 11 : i64} {
  func.func @kernel(%arg0: i32, %arg1: i32, %arg2: i32, %arg3: memref<1x10x10x8xbf16, #tpu.memory_space<vmem>>, %arg4: memref<9x8x8xbf16, #tpu.memory_space<vmem>>, %arg5: memref<1x36x9x4xbf16, #tpu.memory_space<vmem>>, %arg6: memref<1x4xf32, #tpu.memory_space<vmem>>, %arg7: memref<1x4xf32, #tpu.memory_space<vmem>>, %arg8: memref<4x8xbf16, #tpu.memory_space<vmem>>, %arg9: memref<1x8x8x8xf32, #tpu.memory_space<vmem>>) attributes {dimension_semantics = [#tpu.dimension_semantics<parallel>, #tpu.dimension_semantics<parallel>, #tpu.dimension_semantics<parallel>], iteration_bounds = array<i64: 2, 1, 1>, scalar_prefetch = 0 : i64, scratch_operands = 0 : i64, tpu.core_type = #tpu.core_type<tc>, window_params = [{transform_indices = @transform_0, window_bounds = array<i64: 1, 10, 10, 8>}, {transform_indices = @transform_1, window_bounds = array<i64: 9, 8, 8>}, {transform_indices = @transform_2, window_bounds = array<i64: 1, 36, 9, 4>}, {pipeline_mode = #tpu.pipeline_mode<synchronous>, transform_indices = @transform_3, window_bounds = array<i64: 1, 4>}, {pipeline_mode = #tpu.pipeline_mode<synchronous>, transform_indices = @transform_4, window_bounds = array<i64: 1, 4>}, {transform_indices = @transform_5, window_bounds = array<i64: 4, 8>}, {transform_indices = @transform_6, window_bounds = array<i64: 1, 8, 8, 8>}]} {
    %c8_i32 = arith.constant 8 : i32
    %0 = arith.muli %arg1, %c8_i32 : i32
    %cst = arith.constant 0.000000e+00 : f32
    %1 = vector.broadcast %cst : f32 to vector<64x8xf32>
    %c0_i32 = arith.constant 0 : i32
    %2 = arith.addi %c0_i32, %0 : i32
    %c0_i32_0 = arith.constant 0 : i32
    %3 = arith.addi %2, %c0_i32_0 : i32
    %c0 = arith.constant 0 : index
    %4 = arith.index_cast %3 : i32 to index
    %c0_1 = arith.constant 0 : index
    %c0_2 = arith.constant 0 : index
    %5 = vector.load %arg3[%c0, %4, %c0_1, %c0_2] : memref<1x10x10x8xbf16, #tpu.memory_space<vmem>>, vector<1x8x8x8xbf16>
    %6 = vector.shape_cast %5 : vector<1x8x8x8xbf16> to vector<8x8x8xbf16>
    %7 = vector.shape_cast %6 : vector<8x8x8xbf16> to vector<64x8xbf16>
    %c0_3 = arith.constant 0 : index
    %c0_4 = arith.constant 0 : index
    %c0_5 = arith.constant 0 : index
    %8 = vector.load %arg4[%c0_3, %c0_4, %c0_5] : memref<9x8x8xbf16, #tpu.memory_space<vmem>>, vector<1x8x8xbf16>
    %9 = vector.shape_cast %8 : vector<1x8x8xbf16> to vector<8x8xbf16>
    %cst_6 = arith.constant dense<0.000000e+00> : vector<64x8xf32>
    %10 = tpu.matmul %7, %9, %cst_6 {dimension_numbers = #tpu.dot_dimension_numbers<[1], [0], [0], [1], [0, 0, 1, 1], [], []>} : vector<64x8xbf16>, vector<8x8xbf16>, vector<64x8xf32> -> vector<64x8xf32>
    %11 = arith.addf %1, %10 : vector<64x8xf32>
    %c0_i32_7 = arith.constant 0 : i32
    %12 = arith.addi %c0_i32_7, %0 : i32
    %c0_i32_8 = arith.constant 0 : i32
    %13 = arith.addi %12, %c0_i32_8 : i32
    %c0_9 = arith.constant 0 : index
    %14 = arith.index_cast %13 : i32 to index
    %c1 = arith.constant 1 : index
    %c0_10 = arith.constant 0 : index
    %15 = vector.load %arg3[%c0_9, %14, %c1, %c0_10] : memref<1x10x10x8xbf16, #tpu.memory_space<vmem>>, vector<1x8x8x8xbf16>
    %16 = vector.shape_cast %15 : vector<1x8x8x8xbf16> to vector<8x8x8xbf16>
    %17 = vector.shape_cast %16 : vector<8x8x8xbf16> to vector<64x8xbf16>
    %c1_11 = arith.constant 1 : index
    %c0_12 = arith.constant 0 : index
    %c0_13 = arith.constant 0 : index
    %18 = vector.load %arg4[%c1_11, %c0_12, %c0_13] : memref<9x8x8xbf16, #tpu.memory_space<vmem>>, vector<1x8x8xbf16>
    %19 = vector.shape_cast %18 : vector<1x8x8xbf16> to vector<8x8xbf16>
    %cst_14 = arith.constant dense<0.000000e+00> : vector<64x8xf32>
    %20 = tpu.matmul %17, %19, %cst_14 {dimension_numbers = #tpu.dot_dimension_numbers<[1], [0], [0], [1], [0, 0, 1, 1], [], []>} : vector<64x8xbf16>, vector<8x8xbf16>, vector<64x8xf32> -> vector<64x8xf32>
    %21 = arith.addf %11, %20 : vector<64x8xf32>
    %c0_i32_15 = arith.constant 0 : i32
    %22 = arith.addi %c0_i32_15, %0 : i32
    %c0_i32_16 = arith.constant 0 : i32
    %23 = arith.addi %22, %c0_i32_16 : i32
    %c0_17 = arith.constant 0 : index
    %24 = arith.index_cast %23 : i32 to index
    %c2 = arith.constant 2 : index
    %c0_18 = arith.constant 0 : index
    %25 = vector.load %arg3[%c0_17, %24, %c2, %c0_18] : memref<1x10x10x8xbf16, #tpu.memory_space<vmem>>, vector<1x8x8x8xbf16>
    %26 = vector.shape_cast %25 : vector<1x8x8x8xbf16> to vector<8x8x8xbf16>
    %27 = vector.shape_cast %26 : vector<8x8x8xbf16> to vector<64x8xbf16>
    %c2_19 = arith.constant 2 : index
    %c0_20 = arith.constant 0 : index
    %c0_21 = arith.constant 0 : index
    %28 = vector.load %arg4[%c2_19, %c0_20, %c0_21] : memref<9x8x8xbf16, #tpu.memory_space<vmem>>, vector<1x8x8xbf16>
    %29 = vector.shape_cast %28 : vector<1x8x8xbf16> to vector<8x8xbf16>
    %cst_22 = arith.constant dense<0.000000e+00> : vector<64x8xf32>
    %30 = tpu.matmul %27, %29, %cst_22 {dimension_numbers = #tpu.dot_dimension_numbers<[1], [0], [0], [1], [0, 0, 1, 1], [], []>} : vector<64x8xbf16>, vector<8x8xbf16>, vector<64x8xf32> -> vector<64x8xf32>
    %31 = arith.addf %21, %30 : vector<64x8xf32>
    %c0_i32_23 = arith.constant 0 : i32
    %32 = arith.addi %c0_i32_23, %0 : i32
    %c1_i32 = arith.constant 1 : i32
    %33 = arith.addi %32, %c1_i32 : i32
    %c0_24 = arith.constant 0 : index
    %34 = arith.index_cast %33 : i32 to index
    %c0_25 = arith.constant 0 : index
    %c0_26 = arith.constant 0 : index
    %35 = vector.load %arg3[%c0_24, %34, %c0_25, %c0_26] : memref<1x10x10x8xbf16, #tpu.memory_space<vmem>>, vector<1x8x8x8xbf16>
    %36 = vector.shape_cast %35 : vector<1x8x8x8xbf16> to vector<8x8x8xbf16>
    %37 = vector.shape_cast %36 : vector<8x8x8xbf16> to vector<64x8xbf16>
    %c3 = arith.constant 3 : index
    %c0_27 = arith.constant 0 : index
    %c0_28 = arith.constant 0 : index
    %38 = vector.load %arg4[%c3, %c0_27, %c0_28] : memref<9x8x8xbf16, #tpu.memory_space<vmem>>, vector<1x8x8xbf16>
    %39 = vector.shape_cast %38 : vector<1x8x8xbf16> to vector<8x8xbf16>
    %cst_29 = arith.constant dense<0.000000e+00> : vector<64x8xf32>
    %40 = tpu.matmul %37, %39, %cst_29 {dimension_numbers = #tpu.dot_dimension_numbers<[1], [0], [0], [1], [0, 0, 1, 1], [], []>} : vector<64x8xbf16>, vector<8x8xbf16>, vector<64x8xf32> -> vector<64x8xf32>
    %41 = arith.addf %31, %40 : vector<64x8xf32>
    %c0_i32_30 = arith.constant 0 : i32
    %42 = arith.addi %c0_i32_30, %0 : i32
    %c1_i32_31 = arith.constant 1 : i32
    %43 = arith.addi %42, %c1_i32_31 : i32
    %c0_32 = arith.constant 0 : index
    %44 = arith.index_cast %43 : i32 to index
    %c1_33 = arith.constant 1 : index
    %c0_34 = arith.constant 0 : index
    %45 = vector.load %arg3[%c0_32, %44, %c1_33, %c0_34] : memref<1x10x10x8xbf16, #tpu.memory_space<vmem>>, vector<1x8x8x8xbf16>
    %46 = vector.shape_cast %45 : vector<1x8x8x8xbf16> to vector<8x8x8xbf16>
    %47 = vector.shape_cast %46 : vector<8x8x8xbf16> to vector<64x8xbf16>
    %c4 = arith.constant 4 : index
    %c0_35 = arith.constant 0 : index
    %c0_36 = arith.constant 0 : index
    %48 = vector.load %arg4[%c4, %c0_35, %c0_36] : memref<9x8x8xbf16, #tpu.memory_space<vmem>>, vector<1x8x8xbf16>
    %49 = vector.shape_cast %48 : vector<1x8x8xbf16> to vector<8x8xbf16>
    %cst_37 = arith.constant dense<0.000000e+00> : vector<64x8xf32>
    %50 = tpu.matmul %47, %49, %cst_37 {dimension_numbers = #tpu.dot_dimension_numbers<[1], [0], [0], [1], [0, 0, 1, 1], [], []>} : vector<64x8xbf16>, vector<8x8xbf16>, vector<64x8xf32> -> vector<64x8xf32>
    %51 = arith.addf %41, %50 : vector<64x8xf32>
    %c0_i32_38 = arith.constant 0 : i32
    %52 = arith.addi %c0_i32_38, %0 : i32
    %c1_i32_39 = arith.constant 1 : i32
    %53 = arith.addi %52, %c1_i32_39 : i32
    %c0_40 = arith.constant 0 : index
    %54 = arith.index_cast %53 : i32 to index
    %c2_41 = arith.constant 2 : index
    %c0_42 = arith.constant 0 : index
    %55 = vector.load %arg3[%c0_40, %54, %c2_41, %c0_42] : memref<1x10x10x8xbf16, #tpu.memory_space<vmem>>, vector<1x8x8x8xbf16>
    %56 = vector.shape_cast %55 : vector<1x8x8x8xbf16> to vector<8x8x8xbf16>
    %57 = vector.shape_cast %56 : vector<8x8x8xbf16> to vector<64x8xbf16>
    %c5 = arith.constant 5 : index
    %c0_43 = arith.constant 0 : index
    %c0_44 = arith.constant 0 : index
    %58 = vector.load %arg4[%c5, %c0_43, %c0_44] : memref<9x8x8xbf16, #tpu.memory_space<vmem>>, vector<1x8x8xbf16>
    %59 = vector.shape_cast %58 : vector<1x8x8xbf16> to vector<8x8xbf16>
    %cst_45 = arith.constant dense<0.000000e+00> : vector<64x8xf32>
    %60 = tpu.matmul %57, %59, %cst_45 {dimension_numbers = #tpu.dot_dimension_numbers<[1], [0], [0], [1], [0, 0, 1, 1], [], []>} : vector<64x8xbf16>, vector<8x8xbf16>, vector<64x8xf32> -> vector<64x8xf32>
    %61 = arith.addf %51, %60 : vector<64x8xf32>
    %c0_i32_46 = arith.constant 0 : i32
    %62 = arith.addi %c0_i32_46, %0 : i32
    %c2_i32 = arith.constant 2 : i32
    %63 = arith.addi %62, %c2_i32 : i32
    %c0_47 = arith.constant 0 : index
    %64 = arith.index_cast %63 : i32 to index
    %c0_48 = arith.constant 0 : index
    %c0_49 = arith.constant 0 : index
    %65 = vector.load %arg3[%c0_47, %64, %c0_48, %c0_49] : memref<1x10x10x8xbf16, #tpu.memory_space<vmem>>, vector<1x8x8x8xbf16>
    %66 = vector.shape_cast %65 : vector<1x8x8x8xbf16> to vector<8x8x8xbf16>
    %67 = vector.shape_cast %66 : vector<8x8x8xbf16> to vector<64x8xbf16>
    %c6 = arith.constant 6 : index
    %c0_50 = arith.constant 0 : index
    %c0_51 = arith.constant 0 : index
    %68 = vector.load %arg4[%c6, %c0_50, %c0_51] : memref<9x8x8xbf16, #tpu.memory_space<vmem>>, vector<1x8x8xbf16>
    %69 = vector.shape_cast %68 : vector<1x8x8xbf16> to vector<8x8xbf16>
    %cst_52 = arith.constant dense<0.000000e+00> : vector<64x8xf32>
    %70 = tpu.matmul %67, %69, %cst_52 {dimension_numbers = #tpu.dot_dimension_numbers<[1], [0], [0], [1], [0, 0, 1, 1], [], []>} : vector<64x8xbf16>, vector<8x8xbf16>, vector<64x8xf32> -> vector<64x8xf32>
    %71 = arith.addf %61, %70 : vector<64x8xf32>
    %c0_i32_53 = arith.constant 0 : i32
    %72 = arith.addi %c0_i32_53, %0 : i32
    %c2_i32_54 = arith.constant 2 : i32
    %73 = arith.addi %72, %c2_i32_54 : i32
    %c0_55 = arith.constant 0 : index
    %74 = arith.index_cast %73 : i32 to index
    %c1_56 = arith.constant 1 : index
    %c0_57 = arith.constant 0 : index
    %75 = vector.load %arg3[%c0_55, %74, %c1_56, %c0_57] : memref<1x10x10x8xbf16, #tpu.memory_space<vmem>>, vector<1x8x8x8xbf16>
    %76 = vector.shape_cast %75 : vector<1x8x8x8xbf16> to vector<8x8x8xbf16>
    %77 = vector.shape_cast %76 : vector<8x8x8xbf16> to vector<64x8xbf16>
    %c7 = arith.constant 7 : index
    %c0_58 = arith.constant 0 : index
    %c0_59 = arith.constant 0 : index
    %78 = vector.load %arg4[%c7, %c0_58, %c0_59] : memref<9x8x8xbf16, #tpu.memory_space<vmem>>, vector<1x8x8xbf16>
    %79 = vector.shape_cast %78 : vector<1x8x8xbf16> to vector<8x8xbf16>
    %cst_60 = arith.constant dense<0.000000e+00> : vector<64x8xf32>
    %80 = tpu.matmul %77, %79, %cst_60 {dimension_numbers = #tpu.dot_dimension_numbers<[1], [0], [0], [1], [0, 0, 1, 1], [], []>} : vector<64x8xbf16>, vector<8x8xbf16>, vector<64x8xf32> -> vector<64x8xf32>
    %81 = arith.addf %71, %80 : vector<64x8xf32>
    %c0_i32_61 = arith.constant 0 : i32
    %82 = arith.addi %c0_i32_61, %0 : i32
    %c2_i32_62 = arith.constant 2 : i32
    %83 = arith.addi %82, %c2_i32_62 : i32
    %c0_63 = arith.constant 0 : index
    %84 = arith.index_cast %83 : i32 to index
    %c2_64 = arith.constant 2 : index
    %c0_65 = arith.constant 0 : index
    %85 = vector.load %arg3[%c0_63, %84, %c2_64, %c0_65] : memref<1x10x10x8xbf16, #tpu.memory_space<vmem>>, vector<1x8x8x8xbf16>
    %86 = vector.shape_cast %85 : vector<1x8x8x8xbf16> to vector<8x8x8xbf16>
    %87 = vector.shape_cast %86 : vector<8x8x8xbf16> to vector<64x8xbf16>
    %c8 = arith.constant 8 : index
    %c0_66 = arith.constant 0 : index
    %c0_67 = arith.constant 0 : index
    %88 = vector.load %arg4[%c8, %c0_66, %c0_67] : memref<9x8x8xbf16, #tpu.memory_space<vmem>>, vector<1x8x8xbf16>
    %89 = vector.shape_cast %88 : vector<1x8x8xbf16> to vector<8x8xbf16>
    %cst_68 = arith.constant dense<0.000000e+00> : vector<64x8xf32>
    %90 = tpu.matmul %87, %89, %cst_68 {dimension_numbers = #tpu.dot_dimension_numbers<[1], [0], [0], [1], [0, 0, 1, 1], [], []>} : vector<64x8xbf16>, vector<8x8xbf16>, vector<64x8xf32> -> vector<64x8xf32>
    %91 = arith.addf %81, %90 : vector<64x8xf32>
    %c0_69 = arith.constant 0 : index
    %c0_70 = arith.constant 0 : index
    %92 = vector.load %arg6[%c0_69, %c0_70] : memref<1x4xf32, #tpu.memory_space<vmem>>, vector<1x4xf32>
    %c0_71 = arith.constant 0 : index
    %c0_72 = arith.constant 0 : index
    %93 = vector.load %arg7[%c0_71, %c0_72] : memref<1x4xf32, #tpu.memory_space<vmem>>, vector<1x4xf32>
    %c27_i32 = arith.constant 27 : i32
    %94 = arith.addi %c27_i32, %0 : i32
    %c0_i32_73 = arith.constant 0 : i32
    %95 = arith.addi %94, %c0_i32_73 : i32
    %c0_74 = arith.constant 0 : index
    %96 = arith.index_cast %95 : i32 to index
    %c0_75 = arith.constant 0 : index
    %c0_76 = arith.constant 0 : index
    %97 = vector.load %arg5[%c0_74, %96, %c0_75, %c0_76] : memref<1x36x9x4xbf16, #tpu.memory_space<vmem>>, vector<1x8x8x4xbf16>
    %98 = vector.shape_cast %97 : vector<1x8x8x4xbf16> to vector<8x8x4xbf16>
    %99 = vector.shape_cast %98 : vector<8x8x4xbf16> to vector<64x4xbf16>
    %100 = arith.extf %99 : vector<64x4xbf16> to vector<64x4xf32>
    %101 = vector.broadcast %92 : vector<1x4xf32> to vector<64x4xf32>
    %102 = arith.mulf %100, %101 : vector<64x4xf32>
    %103 = vector.broadcast %93 : vector<1x4xf32> to vector<64x4xf32>
    %104 = arith.addf %102, %103 : vector<64x4xf32>
    %cst_77 = arith.constant 0.000000e+00 : f32
    %105 = vector.broadcast %cst_77 : f32 to vector<64x4xf32>
    %106 = arith.maximumf %104, %105 : vector<64x4xf32>
    %107 = arith.truncf %106 : vector<64x4xf32> to vector<64x4xbf16>
    %c0_78 = arith.constant 0 : index
    %c0_79 = arith.constant 0 : index
    %108 = vector.load %arg8[%c0_78, %c0_79] : memref<4x8xbf16, #tpu.memory_space<vmem>>, vector<4x8xbf16>
    %cst_80 = arith.constant dense<0.000000e+00> : vector<64x8xf32>
    %109 = tpu.matmul %107, %108, %cst_80 {dimension_numbers = #tpu.dot_dimension_numbers<[1], [0], [0], [1], [0, 0, 1, 1], [], []>} : vector<64x4xbf16>, vector<4x8xbf16>, vector<64x8xf32> -> vector<64x8xf32>
    %110 = arith.addf %91, %109 : vector<64x8xf32>
    %111 = vector.shape_cast %110 : vector<64x8xf32> to vector<8x8x8xf32>
    %c0_81 = arith.constant 0 : index
    %c0_82 = arith.constant 0 : index
    %c0_83 = arith.constant 0 : index
    %c0_84 = arith.constant 0 : index
    %112 = vector.load %arg9[%c0_81, %c0_82, %c0_83, %c0_84] : memref<1x8x8x8xf32, #tpu.memory_space<vmem>>, vector<1x8x8x8xf32>
    %113 = vector.shape_cast %112 : vector<1x8x8x8xf32> to vector<8x8x8xf32>
    %114 = vector.shape_cast %111 : vector<8x8x8xf32> to vector<1x8x8x8xf32>
    tpu.vector_store %arg9[%c0_81, %c0_82, %c0_83, %c0_84], %114 {strides = array<i32>} : memref<1x8x8x8xf32, #tpu.memory_space<vmem>>, vector<1x8x8x8xf32>,
    return
  }
  func.func @transform_0(%arg0: i32, %arg1: i32, %arg2: i32) -> (i32, i32, i32, i32) {
    %c0_i32 = arith.constant 0 : i32
    %c0_i32_0 = arith.constant 0 : i32
    %c0_i32_1 = arith.constant 0 : i32
    %c0_i32_2 = arith.constant 0 : i32
    return %arg0, %c0_i32, %c0_i32_0, %c0_i32_1 : i32, i32, i32, i32
  }
  func.func @transform_1(%arg0: i32, %arg1: i32, %arg2: i32) -> (i32, i32, i32) {
    %c0_i32 = arith.constant 0 : i32
    %c0_i32_0 = arith.constant 0 : i32
    %c0_i32_1 = arith.constant 0 : i32
    return %c0_i32, %c0_i32_0, %arg2 : i32, i32, i32
  }
  func.func @transform_2(%arg0: i32, %arg1: i32, %arg2: i32) -> (i32, i32, i32, i32) {
    %c0_i32 = arith.constant 0 : i32
    %c0_i32_0 = arith.constant 0 : i32
    %c0_i32_1 = arith.constant 0 : i32
    %c0_i32_2 = arith.constant 0 : i32
    return %arg0, %c0_i32, %c0_i32_0, %c0_i32_1 : i32, i32, i32, i32
  }
  func.func @transform_3(%arg0: i32, %arg1: i32, %arg2: i32) -> (i32, i32) {
    %c0_i32 = arith.constant 0 : i32
    %c0_i32_0 = arith.constant 0 : i32
    %c0_i32_1 = arith.constant 0 : i32
    return %c0_i32, %c0_i32_0 : i32, i32
  }
  func.func @transform_4(%arg0: i32, %arg1: i32, %arg2: i32) -> (i32, i32) {
    %c0_i32 = arith.constant 0 : i32
    %c0_i32_0 = arith.constant 0 : i32
    %c0_i32_1 = arith.constant 0 : i32
    return %c0_i32, %c0_i32_0 : i32, i32
  }
  func.func @transform_5(%arg0: i32, %arg1: i32, %arg2: i32) -> (i32, i32) {
    %c0_i32 = arith.constant 0 : i32
    %c0_i32_0 = arith.constant 0 : i32
    return %c0_i32, %arg2 : i32, i32
  }
  func.func @transform_6(%arg0: i32, %arg1: i32, %arg2: i32) -> (i32, i32, i32, i32) {
    %c0_i32 = arith.constant 0 : i32
    %c0_i32_0 = arith.constant 0 : i32
    return %arg0, %arg1, %c0_i32, %arg2 : i32, i32, i32, i32
  }
}

module attributes {stable_mosaic.version = 11 : i64} {
  func.func @kernel(%arg0: i32, %arg1: i32, %arg2: i32, %arg3: memref<1x10x10x8xbf16, #tpu.memory_space<vmem>>, %arg4: memref<9x8x8xbf16, #tpu.memory_space<vmem>>, %arg5: memref<1x8x8x8xf32, #tpu.memory_space<vmem>>, %arg6: memref<1x8x8x8xf32, #tpu.memory_space<vmem>>) attributes {dimension_semantics = [#tpu.dimension_semantics<parallel>, #tpu.dimension_semantics<parallel>, #tpu.dimension_semantics<parallel>], iteration_bounds = array<i64: 2, 1, 1>, scalar_prefetch = 0 : i64, scratch_operands = 0 : i64, tpu.core_type = #tpu.core_type<tc>, window_params = [{transform_indices = @transform_0, window_bounds = array<i64: 1, 10, 10, 8>}, {transform_indices = @transform_1, window_bounds = array<i64: 9, 8, 8>}, {transform_indices = @transform_2, window_bounds = array<i64: 1, 8, 8, 8>}, {transform_indices = @transform_3, window_bounds = array<i64: 1, 8, 8, 8>}]} {
    %c8_i32 = arith.constant 8 : i32
    %0 = arith.muli %arg1, %c8_i32 : i32
    %cst = arith.constant 0.000000e+00 : f32
    %1 = vector.broadcast %cst : f32 to vector<64x8xf32>
    %c0_i32 = arith.constant 0 : i32
    %2 = arith.addi %c0_i32, %0 : i32
    %c0_i32_0 = arith.constant 0 : i32
    %3 = arith.addi %2, %c0_i32_0 : i32
    %c0 = arith.constant 0 : index
    %4 = arith.index_cast %3 : i32 to index
    %c0_1 = arith.constant 0 : index
    %c0_2 = arith.constant 0 : index
    %5 = vector.load %arg3[%c0, %4, %c0_1, %c0_2] : memref<1x10x10x8xbf16, #tpu.memory_space<vmem>>, vector<1x8x8x8xbf16>
    %6 = vector.shape_cast %5 : vector<1x8x8x8xbf16> to vector<8x8x8xbf16>
    %7 = vector.shape_cast %6 : vector<8x8x8xbf16> to vector<64x8xbf16>
    %c0_3 = arith.constant 0 : index
    %c0_4 = arith.constant 0 : index
    %c0_5 = arith.constant 0 : index
    %8 = vector.load %arg4[%c0_3, %c0_4, %c0_5] : memref<9x8x8xbf16, #tpu.memory_space<vmem>>, vector<1x8x8xbf16>
    %9 = vector.shape_cast %8 : vector<1x8x8xbf16> to vector<8x8xbf16>
    %cst_6 = arith.constant dense<0.000000e+00> : vector<64x8xf32>
    %10 = tpu.matmul %7, %9, %cst_6 {dimension_numbers = #tpu.dot_dimension_numbers<[1], [0], [0], [1], [0, 0, 1, 1], [], []>} : vector<64x8xbf16>, vector<8x8xbf16>, vector<64x8xf32> -> vector<64x8xf32>
    %11 = arith.addf %1, %10 : vector<64x8xf32>
    %c0_i32_7 = arith.constant 0 : i32
    %12 = arith.addi %c0_i32_7, %0 : i32
    %c0_i32_8 = arith.constant 0 : i32
    %13 = arith.addi %12, %c0_i32_8 : i32
    %c0_9 = arith.constant 0 : index
    %14 = arith.index_cast %13 : i32 to index
    %c1 = arith.constant 1 : index
    %c0_10 = arith.constant 0 : index
    %15 = vector.load %arg3[%c0_9, %14, %c1, %c0_10] : memref<1x10x10x8xbf16, #tpu.memory_space<vmem>>, vector<1x8x8x8xbf16>
    %16 = vector.shape_cast %15 : vector<1x8x8x8xbf16> to vector<8x8x8xbf16>
    %17 = vector.shape_cast %16 : vector<8x8x8xbf16> to vector<64x8xbf16>
    %c1_11 = arith.constant 1 : index
    %c0_12 = arith.constant 0 : index
    %c0_13 = arith.constant 0 : index
    %18 = vector.load %arg4[%c1_11, %c0_12, %c0_13] : memref<9x8x8xbf16, #tpu.memory_space<vmem>>, vector<1x8x8xbf16>
    %19 = vector.shape_cast %18 : vector<1x8x8xbf16> to vector<8x8xbf16>
    %cst_14 = arith.constant dense<0.000000e+00> : vector<64x8xf32>
    %20 = tpu.matmul %17, %19, %cst_14 {dimension_numbers = #tpu.dot_dimension_numbers<[1], [0], [0], [1], [0, 0, 1, 1], [], []>} : vector<64x8xbf16>, vector<8x8xbf16>, vector<64x8xf32> -> vector<64x8xf32>
    %21 = arith.addf %11, %20 : vector<64x8xf32>
    %c0_i32_15 = arith.constant 0 : i32
    %22 = arith.addi %c0_i32_15, %0 : i32
    %c0_i32_16 = arith.constant 0 : i32
    %23 = arith.addi %22, %c0_i32_16 : i32
    %c0_17 = arith.constant 0 : index
    %24 = arith.index_cast %23 : i32 to index
    %c2 = arith.constant 2 : index
    %c0_18 = arith.constant 0 : index
    %25 = vector.load %arg3[%c0_17, %24, %c2, %c0_18] : memref<1x10x10x8xbf16, #tpu.memory_space<vmem>>, vector<1x8x8x8xbf16>
    %26 = vector.shape_cast %25 : vector<1x8x8x8xbf16> to vector<8x8x8xbf16>
    %27 = vector.shape_cast %26 : vector<8x8x8xbf16> to vector<64x8xbf16>
    %c2_19 = arith.constant 2 : index
    %c0_20 = arith.constant 0 : index
    %c0_21 = arith.constant 0 : index
    %28 = vector.load %arg4[%c2_19, %c0_20, %c0_21] : memref<9x8x8xbf16, #tpu.memory_space<vmem>>, vector<1x8x8xbf16>
    %29 = vector.shape_cast %28 : vector<1x8x8xbf16> to vector<8x8xbf16>
    %cst_22 = arith.constant dense<0.000000e+00> : vector<64x8xf32>
    %30 = tpu.matmul %27, %29, %cst_22 {dimension_numbers = #tpu.dot_dimension_numbers<[1], [0], [0], [1], [0, 0, 1, 1], [], []>} : vector<64x8xbf16>, vector<8x8xbf16>, vector<64x8xf32> -> vector<64x8xf32>
    %31 = arith.addf %21, %30 : vector<64x8xf32>
    %c0_i32_23 = arith.constant 0 : i32
    %32 = arith.addi %c0_i32_23, %0 : i32
    %c1_i32 = arith.constant 1 : i32
    %33 = arith.addi %32, %c1_i32 : i32
    %c0_24 = arith.constant 0 : index
    %34 = arith.index_cast %33 : i32 to index
    %c0_25 = arith.constant 0 : index
    %c0_26 = arith.constant 0 : index
    %35 = vector.load %arg3[%c0_24, %34, %c0_25, %c0_26] : memref<1x10x10x8xbf16, #tpu.memory_space<vmem>>, vector<1x8x8x8xbf16>
    %36 = vector.shape_cast %35 : vector<1x8x8x8xbf16> to vector<8x8x8xbf16>
    %37 = vector.shape_cast %36 : vector<8x8x8xbf16> to vector<64x8xbf16>
    %c3 = arith.constant 3 : index
    %c0_27 = arith.constant 0 : index
    %c0_28 = arith.constant 0 : index
    %38 = vector.load %arg4[%c3, %c0_27, %c0_28] : memref<9x8x8xbf16, #tpu.memory_space<vmem>>, vector<1x8x8xbf16>
    %39 = vector.shape_cast %38 : vector<1x8x8xbf16> to vector<8x8xbf16>
    %cst_29 = arith.constant dense<0.000000e+00> : vector<64x8xf32>
    %40 = tpu.matmul %37, %39, %cst_29 {dimension_numbers = #tpu.dot_dimension_numbers<[1], [0], [0], [1], [0, 0, 1, 1], [], []>} : vector<64x8xbf16>, vector<8x8xbf16>, vector<64x8xf32> -> vector<64x8xf32>
    %41 = arith.addf %31, %40 : vector<64x8xf32>
    %c0_i32_30 = arith.constant 0 : i32
    %42 = arith.addi %c0_i32_30, %0 : i32
    %c1_i32_31 = arith.constant 1 : i32
    %43 = arith.addi %42, %c1_i32_31 : i32
    %c0_32 = arith.constant 0 : index
    %44 = arith.index_cast %43 : i32 to index
    %c1_33 = arith.constant 1 : index
    %c0_34 = arith.constant 0 : index
    %45 = vector.load %arg3[%c0_32, %44, %c1_33, %c0_34] : memref<1x10x10x8xbf16, #tpu.memory_space<vmem>>, vector<1x8x8x8xbf16>
    %46 = vector.shape_cast %45 : vector<1x8x8x8xbf16> to vector<8x8x8xbf16>
    %47 = vector.shape_cast %46 : vector<8x8x8xbf16> to vector<64x8xbf16>
    %c4 = arith.constant 4 : index
    %c0_35 = arith.constant 0 : index
    %c0_36 = arith.constant 0 : index
    %48 = vector.load %arg4[%c4, %c0_35, %c0_36] : memref<9x8x8xbf16, #tpu.memory_space<vmem>>, vector<1x8x8xbf16>
    %49 = vector.shape_cast %48 : vector<1x8x8xbf16> to vector<8x8xbf16>
    %cst_37 = arith.constant dense<0.000000e+00> : vector<64x8xf32>
    %50 = tpu.matmul %47, %49, %cst_37 {dimension_numbers = #tpu.dot_dimension_numbers<[1], [0], [0], [1], [0, 0, 1, 1], [], []>} : vector<64x8xbf16>, vector<8x8xbf16>, vector<64x8xf32> -> vector<64x8xf32>
    %51 = arith.addf %41, %50 : vector<64x8xf32>
    %c0_i32_38 = arith.constant 0 : i32
    %52 = arith.addi %c0_i32_38, %0 : i32
    %c1_i32_39 = arith.constant 1 : i32
    %53 = arith.addi %52, %c1_i32_39 : i32
    %c0_40 = arith.constant 0 : index
    %54 = arith.index_cast %53 : i32 to index
    %c2_41 = arith.constant 2 : index
    %c0_42 = arith.constant 0 : index
    %55 = vector.load %arg3[%c0_40, %54, %c2_41, %c0_42] : memref<1x10x10x8xbf16, #tpu.memory_space<vmem>>, vector<1x8x8x8xbf16>
    %56 = vector.shape_cast %55 : vector<1x8x8x8xbf16> to vector<8x8x8xbf16>
    %57 = vector.shape_cast %56 : vector<8x8x8xbf16> to vector<64x8xbf16>
    %c5 = arith.constant 5 : index
    %c0_43 = arith.constant 0 : index
    %c0_44 = arith.constant 0 : index
    %58 = vector.load %arg4[%c5, %c0_43, %c0_44] : memref<9x8x8xbf16, #tpu.memory_space<vmem>>, vector<1x8x8xbf16>
    %59 = vector.shape_cast %58 : vector<1x8x8xbf16> to vector<8x8xbf16>
    %cst_45 = arith.constant dense<0.000000e+00> : vector<64x8xf32>
    %60 = tpu.matmul %57, %59, %cst_45 {dimension_numbers = #tpu.dot_dimension_numbers<[1], [0], [0], [1], [0, 0, 1, 1], [], []>} : vector<64x8xbf16>, vector<8x8xbf16>, vector<64x8xf32> -> vector<64x8xf32>
    %61 = arith.addf %51, %60 : vector<64x8xf32>
    %c0_i32_46 = arith.constant 0 : i32
    %62 = arith.addi %c0_i32_46, %0 : i32
    %c2_i32 = arith.constant 2 : i32
    %63 = arith.addi %62, %c2_i32 : i32
    %c0_47 = arith.constant 0 : index
    %64 = arith.index_cast %63 : i32 to index
    %c0_48 = arith.constant 0 : index
    %c0_49 = arith.constant 0 : index
    %65 = vector.load %arg3[%c0_47, %64, %c0_48, %c0_49] : memref<1x10x10x8xbf16, #tpu.memory_space<vmem>>, vector<1x8x8x8xbf16>
    %66 = vector.shape_cast %65 : vector<1x8x8x8xbf16> to vector<8x8x8xbf16>
    %67 = vector.shape_cast %66 : vector<8x8x8xbf16> to vector<64x8xbf16>
    %c6 = arith.constant 6 : index
    %c0_50 = arith.constant 0 : index
    %c0_51 = arith.constant 0 : index
    %68 = vector.load %arg4[%c6, %c0_50, %c0_51] : memref<9x8x8xbf16, #tpu.memory_space<vmem>>, vector<1x8x8xbf16>
    %69 = vector.shape_cast %68 : vector<1x8x8xbf16> to vector<8x8xbf16>
    %cst_52 = arith.constant dense<0.000000e+00> : vector<64x8xf32>
    %70 = tpu.matmul %67, %69, %cst_52 {dimension_numbers = #tpu.dot_dimension_numbers<[1], [0], [0], [1], [0, 0, 1, 1], [], []>} : vector<64x8xbf16>, vector<8x8xbf16>, vector<64x8xf32> -> vector<64x8xf32>
    %71 = arith.addf %61, %70 : vector<64x8xf32>
    %c0_i32_53 = arith.constant 0 : i32
    %72 = arith.addi %c0_i32_53, %0 : i32
    %c2_i32_54 = arith.constant 2 : i32
    %73 = arith.addi %72, %c2_i32_54 : i32
    %c0_55 = arith.constant 0 : index
    %74 = arith.index_cast %73 : i32 to index
    %c1_56 = arith.constant 1 : index
    %c0_57 = arith.constant 0 : index
    %75 = vector.load %arg3[%c0_55, %74, %c1_56, %c0_57] : memref<1x10x10x8xbf16, #tpu.memory_space<vmem>>, vector<1x8x8x8xbf16>
    %76 = vector.shape_cast %75 : vector<1x8x8x8xbf16> to vector<8x8x8xbf16>
    %77 = vector.shape_cast %76 : vector<8x8x8xbf16> to vector<64x8xbf16>
    %c7 = arith.constant 7 : index
    %c0_58 = arith.constant 0 : index
    %c0_59 = arith.constant 0 : index
    %78 = vector.load %arg4[%c7, %c0_58, %c0_59] : memref<9x8x8xbf16, #tpu.memory_space<vmem>>, vector<1x8x8xbf16>
    %79 = vector.shape_cast %78 : vector<1x8x8xbf16> to vector<8x8xbf16>
    %cst_60 = arith.constant dense<0.000000e+00> : vector<64x8xf32>
    %80 = tpu.matmul %77, %79, %cst_60 {dimension_numbers = #tpu.dot_dimension_numbers<[1], [0], [0], [1], [0, 0, 1, 1], [], []>} : vector<64x8xbf16>, vector<8x8xbf16>, vector<64x8xf32> -> vector<64x8xf32>
    %81 = arith.addf %71, %80 : vector<64x8xf32>
    %c0_i32_61 = arith.constant 0 : i32
    %82 = arith.addi %c0_i32_61, %0 : i32
    %c2_i32_62 = arith.constant 2 : i32
    %83 = arith.addi %82, %c2_i32_62 : i32
    %c0_63 = arith.constant 0 : index
    %84 = arith.index_cast %83 : i32 to index
    %c2_64 = arith.constant 2 : index
    %c0_65 = arith.constant 0 : index
    %85 = vector.load %arg3[%c0_63, %84, %c2_64, %c0_65] : memref<1x10x10x8xbf16, #tpu.memory_space<vmem>>, vector<1x8x8x8xbf16>
    %86 = vector.shape_cast %85 : vector<1x8x8x8xbf16> to vector<8x8x8xbf16>
    %87 = vector.shape_cast %86 : vector<8x8x8xbf16> to vector<64x8xbf16>
    %c8 = arith.constant 8 : index
    %c0_66 = arith.constant 0 : index
    %c0_67 = arith.constant 0 : index
    %88 = vector.load %arg4[%c8, %c0_66, %c0_67] : memref<9x8x8xbf16, #tpu.memory_space<vmem>>, vector<1x8x8xbf16>
    %89 = vector.shape_cast %88 : vector<1x8x8xbf16> to vector<8x8xbf16>
    %cst_68 = arith.constant dense<0.000000e+00> : vector<64x8xf32>
    %90 = tpu.matmul %87, %89, %cst_68 {dimension_numbers = #tpu.dot_dimension_numbers<[1], [0], [0], [1], [0, 0, 1, 1], [], []>} : vector<64x8xbf16>, vector<8x8xbf16>, vector<64x8xf32> -> vector<64x8xf32>
    %91 = arith.addf %81, %90 : vector<64x8xf32>
    %c0_69 = arith.constant 0 : index
    %c0_70 = arith.constant 0 : index
    %c0_71 = arith.constant 0 : index
    %c0_72 = arith.constant 0 : index
    %92 = vector.load %arg5[%c0_69, %c0_70, %c0_71, %c0_72] : memref<1x8x8x8xf32, #tpu.memory_space<vmem>>, vector<1x8x8x8xf32>
    %93 = vector.shape_cast %92 : vector<1x8x8x8xf32> to vector<8x8x8xf32>
    %94 = vector.shape_cast %93 : vector<8x8x8xf32> to vector<64x8xf32>
    %95 = arith.addf %91, %94 : vector<64x8xf32>
    %96 = vector.shape_cast %95 : vector<64x8xf32> to vector<8x8x8xf32>
    %c0_73 = arith.constant 0 : index
    %c0_74 = arith.constant 0 : index
    %c0_75 = arith.constant 0 : index
    %c0_76 = arith.constant 0 : index
    %97 = vector.load %arg6[%c0_73, %c0_74, %c0_75, %c0_76] : memref<1x8x8x8xf32, #tpu.memory_space<vmem>>, vector<1x8x8x8xf32>
    %98 = vector.shape_cast %97 : vector<1x8x8x8xf32> to vector<8x8x8xf32>
    %99 = vector.shape_cast %96 : vector<8x8x8xf32> to vector<1x8x8x8xf32>
    tpu.vector_store %arg6[%c0_73, %c0_74, %c0_75, %c0_76], %99 {strides = array<i32>} : memref<1x8x8x8xf32, #tpu.memory_space<vmem>>, vector<1x8x8x8xf32>,
    return
  }
  func.func @transform_0(%arg0: i32, %arg1: i32, %arg2: i32) -> (i32, i32, i32, i32) {
    %c0_i32 = arith.constant 0 : i32
    %c0_i32_0 = arith.constant 0 : i32
    %c0_i32_1 = arith.constant 0 : i32
    %c0_i32_2 = arith.constant 0 : i32
    return %arg0, %c0_i32, %c0_i32_0, %c0_i32_1 : i32, i32, i32, i32
  }
  func.func @transform_1(%arg0: i32, %arg1: i32, %arg2: i32) -> (i32, i32, i32) {
    %c0_i32 = arith.constant 0 : i32
    %c0_i32_0 = arith.constant 0 : i32
    %c0_i32_1 = arith.constant 0 : i32
    return %c0_i32, %c0_i32_0, %arg2 : i32, i32, i32
  }
  func.func @transform_2(%arg0: i32, %arg1: i32, %arg2: i32) -> (i32, i32, i32, i32) {
    %c0_i32 = arith.constant 0 : i32
    %c0_i32_0 = arith.constant 0 : i32
    return %arg0, %arg1, %c0_i32, %arg2 : i32, i32, i32, i32
  }
  func.func @transform_3(%arg0: i32, %arg1: i32, %arg2: i32) -> (i32, i32, i32, i32) {
    %c0_i32 = arith.constant 0 : i32
    %c0_i32_0 = arith.constant 0 : i32
    return %arg0, %arg1, %c0_i32, %arg2 : i32, i32, i32, i32
  }
}

module attributes {stable_mosaic.version = 11 : i64} {
  func.func @kernel(%arg0: i32, %arg1: i32, %arg2: i32, %arg3: memref<1x10x10x8xbf16, #tpu.memory_space<vmem>>, %arg4: memref<9x8x8xbf16, #tpu.memory_space<vmem>>, %arg5: memref<1x8xf32, #tpu.memory_space<vmem>>, %arg6: memref<1x8xf32, #tpu.memory_space<vmem>>, %arg7: memref<1x8xf32, #tpu.memory_space<vmem>>, %arg8: memref<1x8xf32, #tpu.memory_space<vmem>>, %arg9: memref<1x8x8x8xbf16, #tpu.memory_space<vmem>>) attributes {dimension_semantics = [#tpu.dimension_semantics<parallel>, #tpu.dimension_semantics<parallel>, #tpu.dimension_semantics<parallel>], iteration_bounds = array<i64: 2, 1, 1>, scalar_prefetch = 0 : i64, scratch_operands = 0 : i64, tpu.core_type = #tpu.core_type<tc>, window_params = [{transform_indices = @transform_0, window_bounds = array<i64: 1, 10, 10, 8>}, {transform_indices = @transform_1, window_bounds = array<i64: 9, 8, 8>}, {pipeline_mode = #tpu.pipeline_mode<synchronous>, transform_indices = @transform_2, window_bounds = array<i64: 1, 8>}, {pipeline_mode = #tpu.pipeline_mode<synchronous>, transform_indices = @transform_3, window_bounds = array<i64: 1, 8>}, {transform_indices = @transform_4, window_bounds = array<i64: 1, 8>}, {transform_indices = @transform_5, window_bounds = array<i64: 1, 8>}, {transform_indices = @transform_6, window_bounds = array<i64: 1, 8, 8, 8>}]} {
    %c8_i32 = arith.constant 8 : i32
    %0 = arith.muli %arg1, %c8_i32 : i32
    %c0 = arith.constant 0 : index
    %c0_0 = arith.constant 0 : index
    %1 = vector.load %arg5[%c0, %c0_0] : memref<1x8xf32, #tpu.memory_space<vmem>>, vector<1x8xf32>
    %c0_1 = arith.constant 0 : index
    %c0_2 = arith.constant 0 : index
    %2 = vector.load %arg6[%c0_1, %c0_2] : memref<1x8xf32, #tpu.memory_space<vmem>>, vector<1x8xf32>
    %cst = arith.constant 0.000000e+00 : f32
    %3 = vector.broadcast %cst : f32 to vector<64x8xf32>
    %c0_i32 = arith.constant 0 : i32
    %4 = arith.addi %c0_i32, %0 : i32
    %c0_i32_3 = arith.constant 0 : i32
    %5 = arith.addi %4, %c0_i32_3 : i32
    %c0_4 = arith.constant 0 : index
    %6 = arith.index_cast %5 : i32 to index
    %c0_5 = arith.constant 0 : index
    %c0_6 = arith.constant 0 : index
    %7 = vector.load %arg3[%c0_4, %6, %c0_5, %c0_6] : memref<1x10x10x8xbf16, #tpu.memory_space<vmem>>, vector<1x8x8x8xbf16>
    %8 = vector.shape_cast %7 : vector<1x8x8x8xbf16> to vector<8x8x8xbf16>
    %9 = vector.shape_cast %8 : vector<8x8x8xbf16> to vector<64x8xbf16>
    %10 = arith.extf %9 : vector<64x8xbf16> to vector<64x8xf32>
    %11 = vector.broadcast %1 : vector<1x8xf32> to vector<64x8xf32>
    %12 = arith.mulf %10, %11 : vector<64x8xf32>
    %13 = vector.broadcast %2 : vector<1x8xf32> to vector<64x8xf32>
    %14 = arith.addf %12, %13 : vector<64x8xf32>
    %cst_7 = arith.constant 0.000000e+00 : f32
    %15 = vector.broadcast %cst_7 : f32 to vector<64x8xf32>
    %16 = arith.maximumf %14, %15 : vector<64x8xf32>
    %17 = arith.truncf %16 : vector<64x8xf32> to vector<64x8xbf16>
    %c0_8 = arith.constant 0 : index
    %c0_9 = arith.constant 0 : index
    %c0_10 = arith.constant 0 : index
    %18 = vector.load %arg4[%c0_8, %c0_9, %c0_10] : memref<9x8x8xbf16, #tpu.memory_space<vmem>>, vector<1x8x8xbf16>
    %19 = vector.shape_cast %18 : vector<1x8x8xbf16> to vector<8x8xbf16>
    %cst_11 = arith.constant dense<0.000000e+00> : vector<64x8xf32>
    %20 = tpu.matmul %17, %19, %cst_11 {dimension_numbers = #tpu.dot_dimension_numbers<[1], [0], [0], [1], [0, 0, 1, 1], [], []>} : vector<64x8xbf16>, vector<8x8xbf16>, vector<64x8xf32> -> vector<64x8xf32>
    %21 = arith.addf %3, %20 : vector<64x8xf32>
    %c0_i32_12 = arith.constant 0 : i32
    %22 = arith.addi %c0_i32_12, %0 : i32
    %c0_i32_13 = arith.constant 0 : i32
    %23 = arith.addi %22, %c0_i32_13 : i32
    %c0_14 = arith.constant 0 : index
    %24 = arith.index_cast %23 : i32 to index
    %c1 = arith.constant 1 : index
    %c0_15 = arith.constant 0 : index
    %25 = vector.load %arg3[%c0_14, %24, %c1, %c0_15] : memref<1x10x10x8xbf16, #tpu.memory_space<vmem>>, vector<1x8x8x8xbf16>
    %26 = vector.shape_cast %25 : vector<1x8x8x8xbf16> to vector<8x8x8xbf16>
    %27 = vector.shape_cast %26 : vector<8x8x8xbf16> to vector<64x8xbf16>
    %28 = arith.extf %27 : vector<64x8xbf16> to vector<64x8xf32>
    %29 = vector.broadcast %1 : vector<1x8xf32> to vector<64x8xf32>
    %30 = arith.mulf %28, %29 : vector<64x8xf32>
    %31 = vector.broadcast %2 : vector<1x8xf32> to vector<64x8xf32>
    %32 = arith.addf %30, %31 : vector<64x8xf32>
    %cst_16 = arith.constant 0.000000e+00 : f32
    %33 = vector.broadcast %cst_16 : f32 to vector<64x8xf32>
    %34 = arith.maximumf %32, %33 : vector<64x8xf32>
    %35 = arith.truncf %34 : vector<64x8xf32> to vector<64x8xbf16>
    %c1_17 = arith.constant 1 : index
    %c0_18 = arith.constant 0 : index
    %c0_19 = arith.constant 0 : index
    %36 = vector.load %arg4[%c1_17, %c0_18, %c0_19] : memref<9x8x8xbf16, #tpu.memory_space<vmem>>, vector<1x8x8xbf16>
    %37 = vector.shape_cast %36 : vector<1x8x8xbf16> to vector<8x8xbf16>
    %cst_20 = arith.constant dense<0.000000e+00> : vector<64x8xf32>
    %38 = tpu.matmul %35, %37, %cst_20 {dimension_numbers = #tpu.dot_dimension_numbers<[1], [0], [0], [1], [0, 0, 1, 1], [], []>} : vector<64x8xbf16>, vector<8x8xbf16>, vector<64x8xf32> -> vector<64x8xf32>
    %39 = arith.addf %21, %38 : vector<64x8xf32>
    %c0_i32_21 = arith.constant 0 : i32
    %40 = arith.addi %c0_i32_21, %0 : i32
    %c0_i32_22 = arith.constant 0 : i32
    %41 = arith.addi %40, %c0_i32_22 : i32
    %c0_23 = arith.constant 0 : index
    %42 = arith.index_cast %41 : i32 to index
    %c2 = arith.constant 2 : index
    %c0_24 = arith.constant 0 : index
    %43 = vector.load %arg3[%c0_23, %42, %c2, %c0_24] : memref<1x10x10x8xbf16, #tpu.memory_space<vmem>>, vector<1x8x8x8xbf16>
    %44 = vector.shape_cast %43 : vector<1x8x8x8xbf16> to vector<8x8x8xbf16>
    %45 = vector.shape_cast %44 : vector<8x8x8xbf16> to vector<64x8xbf16>
    %46 = arith.extf %45 : vector<64x8xbf16> to vector<64x8xf32>
    %47 = vector.broadcast %1 : vector<1x8xf32> to vector<64x8xf32>
    %48 = arith.mulf %46, %47 : vector<64x8xf32>
    %49 = vector.broadcast %2 : vector<1x8xf32> to vector<64x8xf32>
    %50 = arith.addf %48, %49 : vector<64x8xf32>
    %cst_25 = arith.constant 0.000000e+00 : f32
    %51 = vector.broadcast %cst_25 : f32 to vector<64x8xf32>
    %52 = arith.maximumf %50, %51 : vector<64x8xf32>
    %53 = arith.truncf %52 : vector<64x8xf32> to vector<64x8xbf16>
    %c2_26 = arith.constant 2 : index
    %c0_27 = arith.constant 0 : index
    %c0_28 = arith.constant 0 : index
    %54 = vector.load %arg4[%c2_26, %c0_27, %c0_28] : memref<9x8x8xbf16, #tpu.memory_space<vmem>>, vector<1x8x8xbf16>
    %55 = vector.shape_cast %54 : vector<1x8x8xbf16> to vector<8x8xbf16>
    %cst_29 = arith.constant dense<0.000000e+00> : vector<64x8xf32>
    %56 = tpu.matmul %53, %55, %cst_29 {dimension_numbers = #tpu.dot_dimension_numbers<[1], [0], [0], [1], [0, 0, 1, 1], [], []>} : vector<64x8xbf16>, vector<8x8xbf16>, vector<64x8xf32> -> vector<64x8xf32>
    %57 = arith.addf %39, %56 : vector<64x8xf32>
    %c0_i32_30 = arith.constant 0 : i32
    %58 = arith.addi %c0_i32_30, %0 : i32
    %c1_i32 = arith.constant 1 : i32
    %59 = arith.addi %58, %c1_i32 : i32
    %c0_31 = arith.constant 0 : index
    %60 = arith.index_cast %59 : i32 to index
    %c0_32 = arith.constant 0 : index
    %c0_33 = arith.constant 0 : index
    %61 = vector.load %arg3[%c0_31, %60, %c0_32, %c0_33] : memref<1x10x10x8xbf16, #tpu.memory_space<vmem>>, vector<1x8x8x8xbf16>
    %62 = vector.shape_cast %61 : vector<1x8x8x8xbf16> to vector<8x8x8xbf16>
    %63 = vector.shape_cast %62 : vector<8x8x8xbf16> to vector<64x8xbf16>
    %64 = arith.extf %63 : vector<64x8xbf16> to vector<64x8xf32>
    %65 = vector.broadcast %1 : vector<1x8xf32> to vector<64x8xf32>
    %66 = arith.mulf %64, %65 : vector<64x8xf32>
    %67 = vector.broadcast %2 : vector<1x8xf32> to vector<64x8xf32>
    %68 = arith.addf %66, %67 : vector<64x8xf32>
    %cst_34 = arith.constant 0.000000e+00 : f32
    %69 = vector.broadcast %cst_34 : f32 to vector<64x8xf32>
    %70 = arith.maximumf %68, %69 : vector<64x8xf32>
    %71 = arith.truncf %70 : vector<64x8xf32> to vector<64x8xbf16>
    %c3 = arith.constant 3 : index
    %c0_35 = arith.constant 0 : index
    %c0_36 = arith.constant 0 : index
    %72 = vector.load %arg4[%c3, %c0_35, %c0_36] : memref<9x8x8xbf16, #tpu.memory_space<vmem>>, vector<1x8x8xbf16>
    %73 = vector.shape_cast %72 : vector<1x8x8xbf16> to vector<8x8xbf16>
    %cst_37 = arith.constant dense<0.000000e+00> : vector<64x8xf32>
    %74 = tpu.matmul %71, %73, %cst_37 {dimension_numbers = #tpu.dot_dimension_numbers<[1], [0], [0], [1], [0, 0, 1, 1], [], []>} : vector<64x8xbf16>, vector<8x8xbf16>, vector<64x8xf32> -> vector<64x8xf32>
    %75 = arith.addf %57, %74 : vector<64x8xf32>
    %c0_i32_38 = arith.constant 0 : i32
    %76 = arith.addi %c0_i32_38, %0 : i32
    %c1_i32_39 = arith.constant 1 : i32
    %77 = arith.addi %76, %c1_i32_39 : i32
    %c0_40 = arith.constant 0 : index
    %78 = arith.index_cast %77 : i32 to index
    %c1_41 = arith.constant 1 : index
    %c0_42 = arith.constant 0 : index
    %79 = vector.load %arg3[%c0_40, %78, %c1_41, %c0_42] : memref<1x10x10x8xbf16, #tpu.memory_space<vmem>>, vector<1x8x8x8xbf16>
    %80 = vector.shape_cast %79 : vector<1x8x8x8xbf16> to vector<8x8x8xbf16>
    %81 = vector.shape_cast %80 : vector<8x8x8xbf16> to vector<64x8xbf16>
    %82 = arith.extf %81 : vector<64x8xbf16> to vector<64x8xf32>
    %83 = vector.broadcast %1 : vector<1x8xf32> to vector<64x8xf32>
    %84 = arith.mulf %82, %83 : vector<64x8xf32>
    %85 = vector.broadcast %2 : vector<1x8xf32> to vector<64x8xf32>
    %86 = arith.addf %84, %85 : vector<64x8xf32>
    %cst_43 = arith.constant 0.000000e+00 : f32
    %87 = vector.broadcast %cst_43 : f32 to vector<64x8xf32>
    %88 = arith.maximumf %86, %87 : vector<64x8xf32>
    %89 = arith.truncf %88 : vector<64x8xf32> to vector<64x8xbf16>
    %c4 = arith.constant 4 : index
    %c0_44 = arith.constant 0 : index
    %c0_45 = arith.constant 0 : index
    %90 = vector.load %arg4[%c4, %c0_44, %c0_45] : memref<9x8x8xbf16, #tpu.memory_space<vmem>>, vector<1x8x8xbf16>
    %91 = vector.shape_cast %90 : vector<1x8x8xbf16> to vector<8x8xbf16>
    %cst_46 = arith.constant dense<0.000000e+00> : vector<64x8xf32>
    %92 = tpu.matmul %89, %91, %cst_46 {dimension_numbers = #tpu.dot_dimension_numbers<[1], [0], [0], [1], [0, 0, 1, 1], [], []>} : vector<64x8xbf16>, vector<8x8xbf16>, vector<64x8xf32> -> vector<64x8xf32>
    %93 = arith.addf %75, %92 : vector<64x8xf32>
    %c0_i32_47 = arith.constant 0 : i32
    %94 = arith.addi %c0_i32_47, %0 : i32
    %c1_i32_48 = arith.constant 1 : i32
    %95 = arith.addi %94, %c1_i32_48 : i32
    %c0_49 = arith.constant 0 : index
    %96 = arith.index_cast %95 : i32 to index
    %c2_50 = arith.constant 2 : index
    %c0_51 = arith.constant 0 : index
    %97 = vector.load %arg3[%c0_49, %96, %c2_50, %c0_51] : memref<1x10x10x8xbf16, #tpu.memory_space<vmem>>, vector<1x8x8x8xbf16>
    %98 = vector.shape_cast %97 : vector<1x8x8x8xbf16> to vector<8x8x8xbf16>
    %99 = vector.shape_cast %98 : vector<8x8x8xbf16> to vector<64x8xbf16>
    %100 = arith.extf %99 : vector<64x8xbf16> to vector<64x8xf32>
    %101 = vector.broadcast %1 : vector<1x8xf32> to vector<64x8xf32>
    %102 = arith.mulf %100, %101 : vector<64x8xf32>
    %103 = vector.broadcast %2 : vector<1x8xf32> to vector<64x8xf32>
    %104 = arith.addf %102, %103 : vector<64x8xf32>
    %cst_52 = arith.constant 0.000000e+00 : f32
    %105 = vector.broadcast %cst_52 : f32 to vector<64x8xf32>
    %106 = arith.maximumf %104, %105 : vector<64x8xf32>
    %107 = arith.truncf %106 : vector<64x8xf32> to vector<64x8xbf16>
    %c5 = arith.constant 5 : index
    %c0_53 = arith.constant 0 : index
    %c0_54 = arith.constant 0 : index
    %108 = vector.load %arg4[%c5, %c0_53, %c0_54] : memref<9x8x8xbf16, #tpu.memory_space<vmem>>, vector<1x8x8xbf16>
    %109 = vector.shape_cast %108 : vector<1x8x8xbf16> to vector<8x8xbf16>
    %cst_55 = arith.constant dense<0.000000e+00> : vector<64x8xf32>
    %110 = tpu.matmul %107, %109, %cst_55 {dimension_numbers = #tpu.dot_dimension_numbers<[1], [0], [0], [1], [0, 0, 1, 1], [], []>} : vector<64x8xbf16>, vector<8x8xbf16>, vector<64x8xf32> -> vector<64x8xf32>
    %111 = arith.addf %93, %110 : vector<64x8xf32>
    %c0_i32_56 = arith.constant 0 : i32
    %112 = arith.addi %c0_i32_56, %0 : i32
    %c2_i32 = arith.constant 2 : i32
    %113 = arith.addi %112, %c2_i32 : i32
    %c0_57 = arith.constant 0 : index
    %114 = arith.index_cast %113 : i32 to index
    %c0_58 = arith.constant 0 : index
    %c0_59 = arith.constant 0 : index
    %115 = vector.load %arg3[%c0_57, %114, %c0_58, %c0_59] : memref<1x10x10x8xbf16, #tpu.memory_space<vmem>>, vector<1x8x8x8xbf16>
    %116 = vector.shape_cast %115 : vector<1x8x8x8xbf16> to vector<8x8x8xbf16>
    %117 = vector.shape_cast %116 : vector<8x8x8xbf16> to vector<64x8xbf16>
    %118 = arith.extf %117 : vector<64x8xbf16> to vector<64x8xf32>
    %119 = vector.broadcast %1 : vector<1x8xf32> to vector<64x8xf32>
    %120 = arith.mulf %118, %119 : vector<64x8xf32>
    %121 = vector.broadcast %2 : vector<1x8xf32> to vector<64x8xf32>
    %122 = arith.addf %120, %121 : vector<64x8xf32>
    %cst_60 = arith.constant 0.000000e+00 : f32
    %123 = vector.broadcast %cst_60 : f32 to vector<64x8xf32>
    %124 = arith.maximumf %122, %123 : vector<64x8xf32>
    %125 = arith.truncf %124 : vector<64x8xf32> to vector<64x8xbf16>
    %c6 = arith.constant 6 : index
    %c0_61 = arith.constant 0 : index
    %c0_62 = arith.constant 0 : index
    %126 = vector.load %arg4[%c6, %c0_61, %c0_62] : memref<9x8x8xbf16, #tpu.memory_space<vmem>>, vector<1x8x8xbf16>
    %127 = vector.shape_cast %126 : vector<1x8x8xbf16> to vector<8x8xbf16>
    %cst_63 = arith.constant dense<0.000000e+00> : vector<64x8xf32>
    %128 = tpu.matmul %125, %127, %cst_63 {dimension_numbers = #tpu.dot_dimension_numbers<[1], [0], [0], [1], [0, 0, 1, 1], [], []>} : vector<64x8xbf16>, vector<8x8xbf16>, vector<64x8xf32> -> vector<64x8xf32>
    %129 = arith.addf %111, %128 : vector<64x8xf32>
    %c0_i32_64 = arith.constant 0 : i32
    %130 = arith.addi %c0_i32_64, %0 : i32
    %c2_i32_65 = arith.constant 2 : i32
    %131 = arith.addi %130, %c2_i32_65 : i32
    %c0_66 = arith.constant 0 : index
    %132 = arith.index_cast %131 : i32 to index
    %c1_67 = arith.constant 1 : index
    %c0_68 = arith.constant 0 : index
    %133 = vector.load %arg3[%c0_66, %132, %c1_67, %c0_68] : memref<1x10x10x8xbf16, #tpu.memory_space<vmem>>, vector<1x8x8x8xbf16>
    %134 = vector.shape_cast %133 : vector<1x8x8x8xbf16> to vector<8x8x8xbf16>
    %135 = vector.shape_cast %134 : vector<8x8x8xbf16> to vector<64x8xbf16>
    %136 = arith.extf %135 : vector<64x8xbf16> to vector<64x8xf32>
    %137 = vector.broadcast %1 : vector<1x8xf32> to vector<64x8xf32>
    %138 = arith.mulf %136, %137 : vector<64x8xf32>
    %139 = vector.broadcast %2 : vector<1x8xf32> to vector<64x8xf32>
    %140 = arith.addf %138, %139 : vector<64x8xf32>
    %cst_69 = arith.constant 0.000000e+00 : f32
    %141 = vector.broadcast %cst_69 : f32 to vector<64x8xf32>
    %142 = arith.maximumf %140, %141 : vector<64x8xf32>
    %143 = arith.truncf %142 : vector<64x8xf32> to vector<64x8xbf16>
    %c7 = arith.constant 7 : index
    %c0_70 = arith.constant 0 : index
    %c0_71 = arith.constant 0 : index
    %144 = vector.load %arg4[%c7, %c0_70, %c0_71] : memref<9x8x8xbf16, #tpu.memory_space<vmem>>, vector<1x8x8xbf16>
    %145 = vector.shape_cast %144 : vector<1x8x8xbf16> to vector<8x8xbf16>
    %cst_72 = arith.constant dense<0.000000e+00> : vector<64x8xf32>
    %146 = tpu.matmul %143, %145, %cst_72 {dimension_numbers = #tpu.dot_dimension_numbers<[1], [0], [0], [1], [0, 0, 1, 1], [], []>} : vector<64x8xbf16>, vector<8x8xbf16>, vector<64x8xf32> -> vector<64x8xf32>
    %147 = arith.addf %129, %146 : vector<64x8xf32>
    %c0_i32_73 = arith.constant 0 : i32
    %148 = arith.addi %c0_i32_73, %0 : i32
    %c2_i32_74 = arith.constant 2 : i32
    %149 = arith.addi %148, %c2_i32_74 : i32
    %c0_75 = arith.constant 0 : index
    %150 = arith.index_cast %149 : i32 to index
    %c2_76 = arith.constant 2 : index
    %c0_77 = arith.constant 0 : index
    %151 = vector.load %arg3[%c0_75, %150, %c2_76, %c0_77] : memref<1x10x10x8xbf16, #tpu.memory_space<vmem>>, vector<1x8x8x8xbf16>
    %152 = vector.shape_cast %151 : vector<1x8x8x8xbf16> to vector<8x8x8xbf16>
    %153 = vector.shape_cast %152 : vector<8x8x8xbf16> to vector<64x8xbf16>
    %154 = arith.extf %153 : vector<64x8xbf16> to vector<64x8xf32>
    %155 = vector.broadcast %1 : vector<1x8xf32> to vector<64x8xf32>
    %156 = arith.mulf %154, %155 : vector<64x8xf32>
    %157 = vector.broadcast %2 : vector<1x8xf32> to vector<64x8xf32>
    %158 = arith.addf %156, %157 : vector<64x8xf32>
    %cst_78 = arith.constant 0.000000e+00 : f32
    %159 = vector.broadcast %cst_78 : f32 to vector<64x8xf32>
    %160 = arith.maximumf %158, %159 : vector<64x8xf32>
    %161 = arith.truncf %160 : vector<64x8xf32> to vector<64x8xbf16>
    %c8 = arith.constant 8 : index
    %c0_79 = arith.constant 0 : index
    %c0_80 = arith.constant 0 : index
    %162 = vector.load %arg4[%c8, %c0_79, %c0_80] : memref<9x8x8xbf16, #tpu.memory_space<vmem>>, vector<1x8x8xbf16>
    %163 = vector.shape_cast %162 : vector<1x8x8xbf16> to vector<8x8xbf16>
    %cst_81 = arith.constant dense<0.000000e+00> : vector<64x8xf32>
    %164 = tpu.matmul %161, %163, %cst_81 {dimension_numbers = #tpu.dot_dimension_numbers<[1], [0], [0], [1], [0, 0, 1, 1], [], []>} : vector<64x8xbf16>, vector<8x8xbf16>, vector<64x8xf32> -> vector<64x8xf32>
    %165 = arith.addf %147, %164 : vector<64x8xf32>
    %c0_82 = arith.constant 0 : index
    %c0_83 = arith.constant 0 : index
    %166 = vector.load %arg7[%c0_82, %c0_83] : memref<1x8xf32, #tpu.memory_space<vmem>>, vector<1x8xf32>
    %167 = vector.broadcast %166 : vector<1x8xf32> to vector<64x8xf32>
    %168 = arith.mulf %165, %167 : vector<64x8xf32>
    %c0_84 = arith.constant 0 : index
    %c0_85 = arith.constant 0 : index
    %169 = vector.load %arg8[%c0_84, %c0_85] : memref<1x8xf32, #tpu.memory_space<vmem>>, vector<1x8xf32>
    %170 = vector.broadcast %169 : vector<1x8xf32> to vector<64x8xf32>
    %171 = arith.addf %168, %170 : vector<64x8xf32>
    %cst_86 = arith.constant 0.000000e+00 : f32
    %172 = vector.broadcast %cst_86 : f32 to vector<64x8xf32>
    %173 = arith.maximumf %171, %172 : vector<64x8xf32>
    %174 = vector.shape_cast %173 : vector<64x8xf32> to vector<8x8x8xf32>
    %175 = arith.truncf %174 : vector<8x8x8xf32> to vector<8x8x8xbf16>
    %c0_87 = arith.constant 0 : index
    %c0_88 = arith.constant 0 : index
    %c0_89 = arith.constant 0 : index
    %c0_90 = arith.constant 0 : index
    %176 = vector.load %arg9[%c0_87, %c0_88, %c0_89, %c0_90] : memref<1x8x8x8xbf16, #tpu.memory_space<vmem>>, vector<1x8x8x8xbf16>
    %177 = vector.shape_cast %176 : vector<1x8x8x8xbf16> to vector<8x8x8xbf16>
    %178 = vector.shape_cast %175 : vector<8x8x8xbf16> to vector<1x8x8x8xbf16>
    tpu.vector_store %arg9[%c0_87, %c0_88, %c0_89, %c0_90], %178 {strides = array<i32>} : memref<1x8x8x8xbf16, #tpu.memory_space<vmem>>, vector<1x8x8x8xbf16>,
    return
  }
  func.func @transform_0(%arg0: i32, %arg1: i32, %arg2: i32) -> (i32, i32, i32, i32) {
    %c0_i32 = arith.constant 0 : i32
    %c0_i32_0 = arith.constant 0 : i32
    %c0_i32_1 = arith.constant 0 : i32
    %c0_i32_2 = arith.constant 0 : i32
    return %arg0, %c0_i32, %c0_i32_0, %c0_i32_1 : i32, i32, i32, i32
  }
  func.func @transform_1(%arg0: i32, %arg1: i32, %arg2: i32) -> (i32, i32, i32) {
    %c0_i32 = arith.constant 0 : i32
    %c0_i32_0 = arith.constant 0 : i32
    %c0_i32_1 = arith.constant 0 : i32
    return %c0_i32, %c0_i32_0, %arg2 : i32, i32, i32
  }
  func.func @transform_2(%arg0: i32, %arg1: i32, %arg2: i32) -> (i32, i32) {
    %c0_i32 = arith.constant 0 : i32
    %c0_i32_0 = arith.constant 0 : i32
    %c0_i32_1 = arith.constant 0 : i32
    return %c0_i32, %c0_i32_0 : i32, i32
  }
  func.func @transform_3(%arg0: i32, %arg1: i32, %arg2: i32) -> (i32, i32) {
    %c0_i32 = arith.constant 0 : i32
    %c0_i32_0 = arith.constant 0 : i32
    %c0_i32_1 = arith.constant 0 : i32
    return %c0_i32, %c0_i32_0 : i32, i32
  }
  func.func @transform_4(%arg0: i32, %arg1: i32, %arg2: i32) -> (i32, i32) {
    %c0_i32 = arith.constant 0 : i32
    %c0_i32_0 = arith.constant 0 : i32
    return %c0_i32, %arg2 : i32, i32
  }
  func.func @transform_5(%arg0: i32, %arg1: i32, %arg2: i32) -> (i32, i32) {
    %c0_i32 = arith.constant 0 : i32
    %c0_i32_0 = arith.constant 0 : i32
    return %c0_i32, %arg2 : i32, i32
  }
  func.func @transform_6(%arg0: i32, %arg1: i32, %arg2: i32) -> (i32, i32, i32, i32) {
    %c0_i32 = arith.constant 0 : i32
    %c0_i32_0 = arith.constant 0 : i32
    return %arg0, %arg1, %c0_i32, %arg2 : i32, i32, i32, i32
  }
}

</mosaic_0001>

<bundles_post_ra>
// kernel: _lambda_.4
= control target key start
LH: loop header
LB: loop body
LE: loop exit
PB: predicated region body
PF: predicated region fallthrough
CT: control target
= control target key end

     0   :  { %s2593_s21 = smov 0   ;;  %s2595_s22 = smov 0   ;;  %s3075_s0 = inlined_call_operand.vmem [shape: bf16[2,36,9,4], index: 0, kind: input, shape index: {}]   ;;  %s3076_s1 = inlined_call_operand.vmem [shape: bf16[9,4,8], index: 1, kind: input, shape index: {}]   ;;  %s3077_s2 = inlined_call_operand.vmem [shape: f32[1,4], index: 2, kind: input, shape index: {}]   ;;  %s3078_s3 = inlined_call_operand.vmem [shape: f32[1,4], index: 3, kind: input, shape index: {}]   ;;  %s3079_s4 = inlined_call_operand.vmem [shape: f32[1,8], index: 4, kind: input, shape index: {}]   ;;  %s3080_s5 = inlined_call_operand.vmem [shape: f32[1,8], index: 5, kind: input, shape index: {}]   ;;  %s3081_s6 = inlined_call_operand.vmem [shape: bf16[2,8,8,8], index: 6, kind: output, shape index: {}]  }
   0x1   :  { %s2597_s23 = smov 0  }
   0x2 LB: > { %s35_s24 = sadd.s32 1, %s2552_s22  ;;  %p2169_p0 = scmp.ge.s32.totalorder %s2556_s23, 1  ;;  %s2556_s23 = sphi %s2597_s23, %s16_s23   ;;  %s2552_s22 = sphi %s2595_s22, %s3085_s22   ;;  %s2548_s21 = sphi %s2593_s21, %s3084_s21  }
   0x3   : > { %p37_p1 = scmp.ge.s32.totalorder %s35_s24, 2  ;;  %p260_p2 = scmp.lt.s32.totalorder %s2556_s23, 3 }
   0x5   : > { %s3087_s24 = smov (%p37_p1, %s35_s24), 0  ;;  %p261_p3 = pnand %p2169_p0, %p260_p2 }
   0x6   : > { %v2183_v0 = vld [vmem:[%s3076_s1 + $0x2] sm:$0x3] (!%p261_p3)  ;;  %vm462_vm0 = vcmask (!%p261_p3), 1041408   ;;  %v2617_v1 = vld [vmem:[%s3076_s1 + $0x8] sm:$0x3] (!%p261_p3)  ;;  %p307_p4 = scmp.lt.s32.totalorder (!%p261_p3), %s2548_s21, 1 }
   0x7   : > { %264 = sbr.rel (%p261_p3) target bundleno = 393 (0x189), region = 44  ;;  %2497 = vmatprep.subr.msk.bf16.mxu1 (!%p261_p3), %vm462_vm0, %v2183_v0  ;;  %2501 = vmatprep.subr.msk.bf16.mxu0 (!%p261_p3), %vm462_vm0, %v2617_v1  ;;  %v464_v2 = vsel (!%p261_p3), %vm462_vm0, %v2183_v0, 0  ;;  %v2625_v3 = vsel (!%p261_p3), %vm462_vm0, %v2617_v1, 0  ;;  %v398_v4 = vld [vmem:[%s3076_s1] sm:$0x3] (!%p261_p3)  ;;  %vm449_vm1 = vcmask (!%p261_p3), 31744  }
   0x8   : > { %2342 = vmatpush3.bf16.msra.mxu1 (!%p261_p3), %v464_v2  ;;  %2382 = vmatpush3.bf16.msra.mxu0 (!%p261_p3), %v2625_v3  ;;  %v2239_v5 = vld [vmem:[%s3076_s1 + $0xa] sm:$0x3] (!%p261_p3)  ;;  %v2642_v6 = vld [vmem:[%s3076_s1 + $0xc] sm:$0x3] (!%p261_p3)  ;;  %v2647_v7 = vld [vmem:[%s3076_s1 + $0x4] sm:$0x3] (!%p261_p3) }
   0x9   : > { %2498 = vmatprep.subr.msk.bf16.mxu1 (!%p261_p3), %vm462_vm0, %v398_v4  ;;  %2503 = vmatprep.subr.msk.bf16.mxu0 (!%p261_p3), %vm462_vm0, %v2239_v5  ;;  %v2650_v8 = vsel (!%p261_p3), %vm462_vm0, %v398_v4, 0  ;;  %v2653_v9 = vsel (!%p261_p3), %vm462_vm0, %v2239_v5, 0  ;;  %v2658_v10 = vld [vmem:[%s3076_s1 + $0xe] sm:$0x3] (!%p261_p3)  ;;  %v2663_v11 = vld [vmem:[%s3076_s1 + $0x6] sm:$0x3] (!%p261_p3) }
   0xa   : > { %v2673_v12 = vld [vmem:[%s3077_s2] ss:$0 sm:$0xff] (!%p261_p3)  ;;  %v2677_v13 = vsel (!%p261_p3), %vm462_vm0, %v2642_v6, 0  ;;  %v2681_v14 = vsel (!%p261_p3), %vm462_vm0, %v2647_v7, 0  ;;  %v2685_v15 = vsel (!%p261_p3), %vm462_vm0, %v2658_v10, 0  ;;  %v2689_v16 = vsel (!%p261_p3), %vm462_vm0, %v2663_v11, 0 }
   0xb   : > { %v2698_v25 = vld [vmem:[%s3078_s3] ss:$0 sm:$0xff] (!%p261_p3)  ;;  %vm627_vm2 = vsmask.f32 (!%p261_p3), 3328  ;;  %vm628_vm3 = vsmask.f32 (!%p261_p3), 7440 }
   0xc   : > { %vm2744_vm4 = vmor (!%p261_p3), %vm627_vm2, %vm628_vm3  ;;  %vm1998_vm5 = vcmask (!%p261_p3), 60416  }
   0xe   : > { %s3089_s21 = smov (!%p307_p4, %s2548_s21), 1 }
   0xf   : > { %s2507_s9 = smul.u32 288, %s3089_s21  ;;  %s2295_s15 = sshll.u32 %s3089_s21, 5 }
  0x10   : > { %s3048_s18 = scalar_lea.vmem %s3081_s6, %s2295_s15 }
  0x11   : > { %s2668_s20 = scalar_lea.vmem %s3075_s0, %s2507_s9 }
  0x12   : > { %v2175_v17 = vld [vmem:[%s2668_s20 + $0x48] ss:$8 sps:$4 sm:$0xff]   ;;  %v2210_v18 = vld [vmem:[%s2668_s20 + $0xd8] ss:$8 sps:$4 sm:$0xff]   ;;  %v2224_v61 = vld [vmem:[%s2668_s20 + $0x94] sm:$0x1] }
  0x13   : > { %v2177_v19 = vld [vmem:[%s2668_s20 + $0x58] ss:$8 sps:$4 sm:$0xff]   ;;  %v411_v20 = vunpack.c.l.bf16 %v2175_v17  ;;  %v412_v21 = vunpack.c.h.bf16 %v2175_v17  ;;  %v1026_v22 = vunpack.c.l.bf16 %v2210_v18  ;;  %v1027_v23 = vunpack.c.h.bf16 %v2210_v18  ;;  %v2212_v24 = vld [vmem:[%s2668_s20 + $0xe8] ss:$8 sps:$4 sm:$0xff]  }
  0x14   : > { %v413_v26 = vunpack.c.l.bf16 %v2177_v19  ;;  %v414_v27 = vunpack.c.h.bf16 %v2177_v19  ;;  %v1028_v28 = vunpack.c.l.bf16 %v2212_v24  ;;  %v1029_v29 = vunpack.c.h.bf16 %v2212_v24  ;;  %v2179_v46 = vld [vmem:[%s2668_s20 + $0x68] ss:$8 sps:$4 sm:$0xff]   ;;  %v2181_v51 = vld [vmem:[%s2668_s20 + $0x78] ss:$8 sps:$4 sm:$0xff]  }
  0x15   : > { %v419_v30 = vmul.f32 %v2673_v12, %v411_v20  ;;  %v420_v31 = vmul.f32 %v2673_v12, %v412_v21  ;;  %v1034_v32 = vmul.f32 %v2673_v12, %v1026_v22  ;;  %v1035_v33 = vmul.f32 %v2673_v12, %v1027_v23  ;;  %v2223_v56 = vld [vmem:[%s2668_s20 + $0x90] sm:$0xf]  ;;  %v2225_v62 = vld [vmem:[%s2668_s20 + $0x98] sm:$0xf] }
  0x16   : > { %v421_v34 = vmul.f32 %v2673_v12, %v413_v26  ;;  %v422_v35 = vmul.f32 %v2673_v12, %v414_v27  ;;  %v1036_v36 = vmul.f32 %v2673_v12, %v1028_v28  ;;  %v1037_v37 = vmul.f32 %v2673_v12, %v1029_v29  ;;  %v2226_v27 = vld [vmem:[%s2668_s20 + $0x9c] sm:$0x1] }
  0x17   : > { %v427_v38 = vadd.f32 %v2698_v25, %v419_v30  ;;  %v428_v39 = vadd.f32 %v2698_v25, %v420_v31  ;;  %v1042_v40 = vadd.f32 %v2698_v25, %v1034_v32  ;;  %v1043_v41 = vadd.f32 %v2698_v25, %v1035_v33  ;;  %v2227_v30 = vld [vmem:[%s2668_s20 + $0xa0] sm:$0xf] }
  0x18   : > { %v429_v42 = vadd.f32 %v2698_v25, %v421_v34  ;;  %v430_v43 = vadd.f32 %v2698_v25, %v422_v35  ;;  %v1044_v44 = vadd.f32 %v2698_v25, %v1036_v36  ;;  %v1045_v45 = vadd.f32 %v2698_v25, %v1037_v37  ;;  %v2228_v37 = vld [vmem:[%s2668_s20 + $0xa4] sm:$0x1] }
  0x19   : > { %v435_v47 = vmax.f32 %v427_v38, 0.0  ;;  %v436_v48 = vmax.f32 %v428_v39, 0.0  ;;  %v1050_v49 = vmax.f32 %v1042_v40, 0.0  ;;  %v1051_v50 = vmax.f32 %v1043_v41, 0.0 }
  0x1a   : > { %v437_v52 = vmax.f32 %v429_v42, 0.0  ;;  %v438_v53 = vmax.f32 %v430_v43, 0.0  ;;  %v1052_v54 = vmax.f32 %v1044_v44, 0.0  ;;  %v1053_v55 = vmax.f32 %v1045_v45, 0.0  ;;  %v2230_v45 = vld [vmem:[%s2668_s20 + $0xac] sm:$0x1] }
  0x1b   : > { %v443_v57 = vpack.c.bf16 %v436_v48, %v435_v47  ;;  %v1058_v58 = vpack.c.bf16 %v1051_v50, %v1050_v49  ;;  %v415_v59 = vunpack.c.l.bf16 %v2179_v46  ;;  %v416_v60 = vunpack.c.h.bf16 %v2179_v46 }
  0x1c   : > { %v444_v63 = vpack.c.bf16 %v438_v53, %v437_v52  ;;  %v1059_v0 = vpack.c.bf16 %v1053_v55, %v1052_v54  ;;  %v417_v2 = vunpack.c.l.bf16 %v2181_v51  ;;  %v418_v4 = vunpack.c.h.bf16 %v2181_v51  ;;  %v342_v51 = vld [vmem:[%s2668_s20] ss:$8 sps:$4 sm:$0xff]  }
  0x1d   : > { %2343 = vmatprep.mubr.msk.bf16.mxu1 %vm449_vm1, %v443_v57  ;;  %2383 = vmatprep.mubr.msk.bf16.mxu0 %vm449_vm1, %v1058_v58  ;;  %v423_v5 = vmul.f32 %v2673_v12, %v415_v59  ;;  %v424_v17 = vmul.f32 %v2673_v12, %v416_v60  ;;  %v1169_v18 = vshrl.u32 %v2223_v56, 16  ;;  %v1172_v19 = vshll.u32 %v2223_v56, 16  ;;  %v344_v60 = vld [vmem:[%s2668_s20 + $0x10] ss:$8 sps:$4 sm:$0xff]  }
  0x1e   : > { %2344 = vmatmul.mubr.msk.bf16.vlgmr.msra.gmra.mrb[0].mxu1 %vm449_vm1, %v444_v63  ;;  %2384 = vmatmul.mubr.msk.bf16.vlgmr.msra.gmra.mrb[0].mxu0 %vm449_vm1, %v1059_v0  ;;  %v425_v20 = vmul.f32 %v2673_v12, %v417_v2  ;;  %v426_v21 = vmul.f32 %v2673_v12, %v418_v4  ;;  %v1178_v22 = vshll.u32 %v2224_v61, 16  ;;  %v1183_v23 = vshrl.u32 %v2225_v62, 16 }
  0x1f   : > { %2352 = vmatpush3.bf16.msra.mxu1 %v2650_v8  ;;  %2392 = vmatpush3.bf16.msra.mxu0 %v2653_v9  ;;  %v431_v24 = vadd.f32 %v2698_v25, %v423_v5  ;;  %v432_v26 = vadd.f32 %v2698_v25, %v424_v17  ;;  %v1171_v28 = vrot.slane %v1169_v18, 4  ;;  %v1174_v29 = vrot.slane %v1172_v19, 5 }
  0x20   : > { %v433_v31 = vadd.f32 %v2698_v25, %v425_v20  ;;  %v434_v32 = vadd.f32 %v2698_v25, %v426_v21  ;;  %v1180_v33 = vrot.slane %v1178_v22, 5  ;;  %v1185_v34 = vrot.slane %v1183_v23, 4  ;;  %2504 = vmatprep.subr.msk.bf16.mxu0 %vm462_vm0, %v2642_v6  ;;  %2499 = vmatprep.subr.msk.bf16.mxu1 %vm462_vm0, %v2647_v7  ;;  %v2229_v6 = vld [vmem:[%s2668_s20 + $0xa8] sm:$0xf] }
  0x21   : > { %v439_v8 = vmax.f32 %v431_v24, 0.0  ;;  %v440_v9 = vmax.f32 %v432_v26, 0.0  ;;  %v1175_v35 = vor.u32 %v1174_v29, %v1171_v28  ;;  %v1186_v36 = vshll.u32 %v2225_v62, 16 }
  0x22   : > { %v441_v38 = vmax.f32 %v433_v31, 0.0  ;;  %v442_v39 = vmax.f32 %v434_v32, 0.0  ;;  %v1192_v41 = vshll.u32 %v2226_v27, 16  ;;  %v1197_v42 = vshrl.u32 %v2227_v30, 16  ;;  %v2231_v31 = vld [vmem:[%s2668_s20 + $0xb0] sm:$0xf] }
  0x23   : > { %v445_v43 = vpack.c.bf16 %v440_v9, %v439_v8  ;;  %v1176_v44 = vrot.slane %v1175_v35, 4  ;;  %v1188_v7 = vrot.slane %v1186_v36, 5  ;;  %v1200_v46 = vshll.u32 %v2227_v30, 16 }
  0x24   : > { %v446_v47 = vpack.c.bf16 %v442_v39, %v441_v38  ;;  %v1194_v48 = vrot.slane %v1192_v41, 5  ;;  %v1199_v49 = vrot.slane %v1197_v42, 4  ;;  %v1206_v50 = vshll.u32 %v2228_v37, 16 }
  0x25   : > { %2347 = vmatprep.mubr.msk.bf16.mxu1 %vm449_vm1, %v445_v43  ;;  %v1181_v52 = vsel %vm2744_vm4, %v1176_v44, %v1180_v33  ;;  %v1189_v53 = vor.u32 %v1188_v7, %v1185_v34  ;;  %v1202_v54 = vrot.slane %v1200_v46, 5  ;;  %v1211_v55 = vshrl.u32 %v2229_v6, 16  ;;  %v2233_v46 = vld [vmem:[%s2668_s20 + $0xb8] sm:$0xf] }
  0x26   : > { %2348 = vmatmul.mubr.msk.bf16.gmra.mrb[4].mxu1 %vm449_vm1, %v446_v47  ;;  %v1288_v56 = vunpack.c.l.bf16 %v1181_v52  ;;  %v1208_v57 = vrot.slane %v1206_v50, 5  ;;  %v1214_v58 = vshll.u32 %v2229_v6, 16  ;;  %v1220_v59 = vshll.u32 %v2230_v45, 16  ;;  %v2232_v6 = vld [vmem:[%s2668_s20 + $0xb4] sm:$0x1] }
  0x27   : > { %v1190_v61 = vrot.slane %v1189_v53, 4  ;;  %v1203_v62 = vor.u32 %v1202_v54, %v1199_v49  ;;  %v1213_v63 = vrot.slane %v1211_v55, 4  ;;  %v350_v0 = vunpack.c.l.bf16 %v342_v51  ;;  %v2234_v54 = vld [vmem:[%s2668_s20 + $0xbc] sm:$0x1] }
  0x28   : > { %v1296_v2 = vmul.f32 %v2673_v12, %v1288_v56  ;;  %v1216_v4 = vrot.slane %v1214_v58, 5  ;;  %v1222_v5 = vrot.slane %v1220_v59, 5  ;;  %v351_v17 = vunpack.c.h.bf16 %v342_v51  ;;  %v2235_v56 = vld [vmem:[%s2668_s20 + $0xc0] sm:$0xf] }
  0x29   : > { %v1195_v18 = vsel %vm2744_vm4, %v1190_v61, %v1194_v48  ;;  %v1204_v19 = vrot.slane %v1203_v62, 4  ;;  %v364_v20 = vmul.f32 %v2673_v12, %v350_v0  ;;  %v352_v21 = vunpack.c.l.bf16 %v344_v60  ;;  %v2236_v61 = vld [vmem:[%s2668_s20 + $0xc4] sm:$0x1] }
  0x2a   : > { %v1289_v22 = vunpack.c.l.bf16 %v1195_v18  ;;  %v1304_v23 = vadd.f32 %v2698_v25, %v1296_v2  ;;  %v1217_v24 = vor.u32 %v1216_v4, %v1213_v63  ;;  %v365_v26 = vmul.f32 %v2673_v12, %v351_v17  ;;  %v2237_v4 = vld [vmem:[%s2668_s20 + $0xc8] sm:$0xf] }
  0x2b   : > { %v1209_v27 = vsel %vm2744_vm4, %v1204_v19, %v1208_v57  ;;  %v378_v28 = vadd.f32 %v2698_v25, %v364_v20  ;;  %v353_v29 = vunpack.c.h.bf16 %v344_v60  ;;  %v366_v30 = vmul.f32 %v2673_v12, %v352_v21 }
  0x2c   : > { %v1297_v32 = vmul.f32 %v2673_v12, %v1289_v22  ;;  %v1312_v33 = vmax.f32 %v1304_v23, 0.0  ;;  %v1218_v34 = vrot.slane %v1217_v24, 4  ;;  %v1290_v8 = vunpack.c.l.bf16 %v1209_v27  ;;  %v2238_v22 = vld [vmem:[%s2668_s20 + $0xcc] sm:$0x1] }
  0x2d   : > { %v379_v9 = vadd.f32 %v2698_v25, %v365_v26  ;;  %v386_v35 = vmax.f32 %v378_v28, 0.0  ;;  %v367_v36 = vmul.f32 %v2673_v12, %v353_v29  ;;  %v380_v37 = vadd.f32 %v2698_v25, %v366_v30  ;;  %v346_v30 = vld [vmem:[%s2668_s20 + $0x20] ss:$8 sps:$4 sm:$0xff]  }
  0x2e   : > { %v1305_v38 = vadd.f32 %v2698_v25, %v1297_v32  ;;  %v1223_v39 = vsel %vm2744_vm4, %v1218_v34, %v1222_v5  ;;  %v1298_v41 = vmul.f32 %v2673_v12, %v1290_v8  ;;  %v1225_v42 = vshrl.u32 %v2231_v31, 16  ;;  %v348_v8 = vld [vmem:[%s2668_s20 + $0x30] ss:$8 sps:$4 sm:$0xff]  }
  0x2f   : > { %v1291_v43 = vunpack.c.l.bf16 %v1223_v39  ;;  %v387_v44 = vmax.f32 %v379_v9, 0.0  ;;  %v381_v7 = vadd.f32 %v2698_v25, %v367_v36  ;;  %v388_v45 = vmax.f32 %v380_v37, 0.0 }
  0x30   : > { %v1313_v47 = vmax.f32 %v1305_v38, 0.0  ;;  %v1306_v48 = vadd.f32 %v2698_v25, %v1298_v41  ;;  %v1227_v49 = vrot.slane %v1225_v42, 4  ;;  %v1228_v50 = vshll.u32 %v2231_v31, 16 }
  0x31   : > { %v1299_v51 = vmul.f32 %v2673_v12, %v1291_v43  ;;  %v394_v52 = vpack.c.bf16 %v387_v44, %v386_v35  ;;  %v389_v53 = vmax.f32 %v381_v7, 0.0  ;;  %v1234_v55 = vshll.u32 %v2232_v6, 16 }
  0x32   : > { %v1320_v57 = vpack.c.bf16 %v1313_v47, %v1312_v33  ;;  %v1314_v58 = vmax.f32 %v1306_v48, 0.0  ;;  %v1230_v59 = vrot.slane %v1228_v50, 5  ;;  %v1239_v60 = vshrl.u32 %v2233_v46, 16 }
  0x33   : > { %v1307_v62 = vadd.f32 %v2698_v25, %v1299_v51  ;;  %2353 = vmatprep.mubr.msk.bf16.mxu1 %vm449_vm1, %v394_v52  ;;  %v395_v63 = vpack.c.bf16 %v389_v53, %v388_v45  ;;  %v1236_v0 = vrot.slane %v1234_v55, 5  ;;  %v1242_v2 = vshll.u32 %v2233_v46, 16 }
  0x34   : > { %2393 = vmatprep.mubr.msk.bf16.mxu0 %vm449_vm1, %v1320_v57  ;;  %v1231_v5 = vor.u32 %v1230_v59, %v1227_v49  ;;  %v1241_v17 = vrot.slane %v1239_v60, 4  ;;  %v1248_v18 = vshll.u32 %v2234_v54, 16  ;;  %v1253_v19 = vshrl.u32 %v2235_v56, 16  ;;  %v2244_v57 = vld [vmem:[%s2668_s20 + $0x8] ss:$8 sps:$4 sm:$0xff]  }
  0x35   : > { %v1315_v20 = vmax.f32 %v1307_v62, 0.0  ;;  %2354 = vmatmul.mubr.msk.bf16.vlgmr.msra.gmra.mrb[0].mxu1 %vm449_vm1, %v395_v63  ;;  %v1244_v21 = vrot.slane %v1242_v2, 5  ;;  %v1256_v23 = vshll.u32 %v2235_v56, 16  ;;  %v1262_v24 = vshll.u32 %v2236_v61, 16 }
  0x36   : > { %2362 = vmatpush3.bf16.msra.mxu1 %v2681_v14  ;;  %v1232_v26 = vrot.slane %v1231_v5, 4  ;;  %v1250_v27 = vrot.slane %v1248_v18, 5  ;;  %v1255_v28 = vrot.slane %v1253_v19, 4  ;;  %v1267_v29 = vshrl.u32 %v2237_v4, 16 }
  0x37   : > { %v1321_v31 = vpack.c.bf16 %v1315_v20, %v1314_v58  ;;  %v1245_v32 = vor.u32 %v1244_v21, %v1241_v17  ;;  %v1258_v33 = vrot.slane %v1256_v23, 5  ;;  %v1264_v34 = vrot.slane %v1262_v24, 5  ;;  %2500 = vmatprep.subr.msk.bf16.mxu1 %vm462_vm0, %v2663_v11 }
  0x38   : > { %v1237_v9 = vsel %vm2744_vm4, %v1232_v26, %v1236_v0  ;;  %v1269_v35 = vrot.slane %v1267_v29, 4  ;;  %v1270_v36 = vshll.u32 %v2237_v4, 16  ;;  %v1276_v37 = vshll.u32 %v2238_v22, 16  ;;  %v2246_v4 = vld [vmem:[%s2668_s20 + $0x18] ss:$8 sps:$4 sm:$0xff]  }
  0x39   : > { %2394 = vmatmul.mubr.msk.bf16.vlgmr.msra.gmra.mrb[0].mxu0 %vm449_vm1, %v1321_v31  ;;  %v1246_v14 = vrot.slane %v1245_v32, 4  ;;  %v1292_v38 = vunpack.c.l.bf16 %v1237_v9  ;;  %v1259_v39 = vor.u32 %v1258_v33, %v1255_v28  ;;  %v354_v41 = vunpack.c.l.bf16 %v346_v30  ;;  %v611_v29 = vld [vmem:[%s2668_s20] sm:$0xf] }
  0x3a   : > { %2402 = vmatpush3.bf16.msra.mxu0 %v2677_v13  ;;  %v1272_v6 = vrot.slane %v1270_v36, 5  ;;  %v1278_v42 = vrot.slane %v1276_v37, 5  ;;  %v355_v43 = vunpack.c.h.bf16 %v346_v30  ;;  %v356_v44 = vunpack.c.l.bf16 %v348_v8 }
  0x3b   : > { %v1251_v11 = vsel %vm2744_vm4, %v1246_v14, %v1250_v27  ;;  %v1300_v7 = vmul.f32 %v2673_v12, %v1292_v38  ;;  %v1260_v45 = vrot.slane %v1259_v39, 4  ;;  %v368_v46 = vmul.f32 %v2673_v12, %v354_v41  ;;  %2505 = vmatprep.subr.msk.bf16.mxu0 %vm462_vm0, %v2658_v10  ;;  %v613_v38 = vld [vmem:[%s2668_s20 + $0x8] sm:$0xf] }
  0x3c   : > { %v1293_v47 = vunpack.c.l.bf16 %v1251_v11  ;;  %v1273_v48 = vor.u32 %v1272_v6, %v1269_v35  ;;  %v369_v13 = vmul.f32 %v2673_v12, %v355_v43  ;;  %v357_v49 = vunpack.c.h.bf16 %v348_v8 }
  0x3d   : > { %v1308_v50 = vadd.f32 %v2698_v25, %v1300_v7  ;;  %v1265_v51 = vsel %vm2744_vm4, %v1260_v45, %v1264_v34  ;;  %v382_v52 = vadd.f32 %v2698_v25, %v368_v46  ;;  %v370_v53 = vmul.f32 %v2673_v12, %v356_v44  ;;  %v612_v34 = vld [vmem:[%s2668_s20 + $0x4] sm:$0x1]  ;;  %v614_v44 = vld [vmem:[%s2668_s20 + $0xc] sm:$0x1] }
  0x3e   : > { %v1301_v54 = vmul.f32 %v2673_v12, %v1293_v47  ;;  %v1274_v55 = vrot.slane %v1273_v48, 4  ;;  %v1294_v56 = vunpack.c.l.bf16 %v1265_v51  ;;  %v383_v10 = vadd.f32 %v2698_v25, %v369_v13  ;;  %v615_v48 = vld [vmem:[%s2668_s20 + $0x10] sm:$0xf] }
  0x3f   : > { %v1316_v58 = vmax.f32 %v1308_v50, 0.0  ;;  %v390_v59 = vmax.f32 %v382_v52, 0.0  ;;  %v371_v60 = vmul.f32 %v2673_v12, %v357_v49  ;;  %v384_v61 = vadd.f32 %v2698_v25, %v370_v53  ;;  %v616_v52 = vld [vmem:[%s2668_s20 + $0x14] sm:$0x1] }
  0x40   : > { %v1309_v62 = vadd.f32 %v2698_v25, %v1301_v54  ;;  %v1279_v63 = vsel %vm2744_vm4, %v1274_v55, %v1278_v42  ;;  %v1302_v0 = vmul.f32 %v2673_v12, %v1294_v56  ;;  %v391_v2 = vmax.f32 %v383_v10, 0.0  ;;  %v617_v10 = vld [vmem:[%s2668_s20 + $0x18] sm:$0xf] }
  0x41   : > { %v1295_v5 = vunpack.c.l.bf16 %v1279_v63  ;;  %v385_v17 = vadd.f32 %v2698_v25, %v371_v60  ;;  %v392_v18 = vmax.f32 %v384_v61, 0.0  ;;  %v1426_v19 = vunpack.c.l.bf16 %v2244_v57 }
  0x42   : > { %v1317_v20 = vmax.f32 %v1309_v62, 0.0  ;;  %v1310_v21 = vadd.f32 %v2698_v25, %v1302_v0  ;;  %v396_v22 = vpack.c.bf16 %v391_v2, %v390_v59  ;;  %v1427_v23 = vunpack.c.h.bf16 %v2244_v57  ;;  %v618_v0 = vld [vmem:[%s2668_s20 + $0x1c] sm:$0x1] }
  0x43   : > { %v1303_v24 = vmul.f32 %v2673_v12, %v1295_v5  ;;  %v393_v26 = vmax.f32 %v385_v17, 0.0  ;;  %v1434_v27 = vmul.f32 %v2673_v12, %v1426_v19  ;;  %v1428_v28 = vunpack.c.l.bf16 %v2246_v4  ;;  %v2248_v19 = vld [vmem:[%s2668_s20 + $0x28] ss:$8 sps:$4 sm:$0xff]  }
  0x44   : > { %v1322_v30 = vpack.c.bf16 %v1317_v20, %v1316_v58  ;;  %v1318_v31 = vmax.f32 %v1310_v21, 0.0  ;;  %2357 = vmatprep.mubr.msk.bf16.mxu1 %vm449_vm1, %v396_v22  ;;  %v1435_v32 = vmul.f32 %v2673_v12, %v1427_v23  ;;  %v1429_v33 = vunpack.c.h.bf16 %v2246_v4 }
  0x45   : > { %v1311_v8 = vadd.f32 %v2698_v25, %v1303_v24  ;;  %v397_v9 = vpack.c.bf16 %v393_v26, %v392_v18  ;;  %v1442_v35 = vadd.f32 %v2698_v25, %v1434_v27  ;;  %v1436_v36 = vmul.f32 %v2673_v12, %v1428_v28  ;;  %v2250_v24 = vld [vmem:[%s2668_s20 + $0x38] ss:$8 sps:$4 sm:$0xff]  }
  0x46   : > { %2397 = vmatprep.mubr.msk.bf16.mxu0 %vm449_vm1, %v1322_v30  ;;  %v1443_v37 = vadd.f32 %v2698_v25, %v1435_v32  ;;  %v1437_v14 = vmul.f32 %v2673_v12, %v1429_v33  ;;  %v631_v39 = vshrl.u32 %v611_v29, 16  ;;  %v634_v41 = vshll.u32 %v611_v29, 16 }
  0x47   : > { %v1319_v6 = vmax.f32 %v1311_v8, 0.0  ;;  %2358 = vmatmul.mubr.msk.bf16.gmra.mrb[4].mxu1 %vm449_vm1, %v397_v9  ;;  %v1450_v42 = vmax.f32 %v1442_v35, 0.0  ;;  %v1444_v43 = vadd.f32 %v2698_v25, %v1436_v36  ;;  %v640_v11 = vshll.u32 %v612_v34, 16 }
  0x48   : > { %v1451_v7 = vmax.f32 %v1443_v37, 0.0  ;;  %v1445_v45 = vadd.f32 %v2698_v25, %v1437_v14  ;;  %v633_v46 = vrot.slane %v631_v39, 4  ;;  %v636_v47 = vrot.slane %v634_v41, 5  ;;  %v2857_v39 = vld [vmem:[%s3076_s1 + $0x10] sm:$0x3] }
  0x49   : > { %v1323_v13 = vpack.c.bf16 %v1319_v6, %v1318_v31  ;;  %v1452_v49 = vmax.f32 %v1444_v43, 0.0  ;;  %v642_v50 = vrot.slane %v640_v11, 5  ;;  %v645_v51 = vshrl.u32 %v613_v38, 16 }
  0x4a   : > { %v1458_v53 = vpack.c.bf16 %v1451_v7, %v1450_v42  ;;  %v1453_v54 = vmax.f32 %v1445_v45, 0.0  ;;  %v637_v55 = vor.u32 %v636_v47, %v633_v46  ;;  %v648_v56 = vshll.u32 %v613_v38, 16 }
  0x4b   : > { %2398 = vmatmul.mubr.msk.bf16.gmra.mrb[4].mxu0 %vm449_vm1, %v1323_v13  ;;  %v647_v57 = vrot.slane %v645_v51, 4  ;;  %v654_v58 = vshll.u32 %v614_v44, 16  ;;  %v659_v59 = vshrl.u32 %v615_v48, 16  ;;  %v662_v60 = vshll.u32 %v615_v48, 16 }
  0x4c   : > { %2403 = vmatprep.mubr.msk.bf16.mxu0 %vm449_vm1, %v1458_v53  ;;  %v1459_v61 = vpack.c.bf16 %v1453_v54, %v1452_v49  ;;  %v638_v62 = vrot.slane %v637_v55, 4  ;;  %v650_v63 = vrot.slane %v648_v56, 5  ;;  %v668_v2 = vshll.u32 %v616_v52, 16  ;;  %v619_v49 = vld [vmem:[%s2668_s20 + $0x20] sm:$0xf] }
  0x4d   : > { %v656_v4 = vrot.slane %v654_v58, 5  ;;  %v661_v5 = vrot.slane %v659_v59, 4  ;;  %v664_v17 = vrot.slane %v662_v60, 5  ;;  %v673_v18 = vshrl.u32 %v617_v10, 16  ;;  %v621_v59 = vld [vmem:[%s2668_s20 + $0x28] sm:$0xf] }
  0x4e   : > { %v643_v20 = vsel %vm2744_vm4, %v638_v62, %v642_v50  ;;  %v651_v21 = vor.u32 %v650_v63, %v647_v57  ;;  %v670_v22 = vrot.slane %v668_v2, 5  ;;  %v676_v23 = vshll.u32 %v617_v10, 16  ;;  %v620_v10 = vld [vmem:[%s2668_s20 + $0x24] sm:$0x1] }
  0x4f   : > { %v750_v26 = vunpack.c.l.bf16 %v643_v20  ;;  %v665_v27 = vor.u32 %v664_v17, %v661_v5  ;;  %v675_v28 = vrot.slane %v673_v18, 4  ;;  %v682_v29 = vshll.u32 %v618_v0, 16  ;;  %v623_v20 = vld [vmem:[%s2668_s20 + $0x30] sm:$0xf] }
  0x50   : > { %v652_v30 = vrot.slane %v651_v21, 4  ;;  %v678_v31 = vrot.slane %v676_v23, 5  ;;  %v1430_v32 = vunpack.c.l.bf16 %v2248_v19  ;;  %v1431_v33 = vunpack.c.h.bf16 %v2248_v19 }
  0x51   : > { %v758_v34 = vmul.f32 %v2673_v12, %v750_v26  ;;  %v666_v8 = vrot.slane %v665_v27, 4  ;;  %v684_v9 = vrot.slane %v682_v29, 5  ;;  %v1432_v35 = vunpack.c.l.bf16 %v2250_v24  ;;  %v624_v26 = vld [vmem:[%s2668_s20 + $0x34] sm:$0x1] }
  0x52   : > { %v657_v36 = vsel %vm2744_vm4, %v652_v30, %v656_v4  ;;  %v679_v37 = vor.u32 %v678_v31, %v675_v28  ;;  %v1438_v14 = vmul.f32 %v2673_v12, %v1430_v32  ;;  %v1439_v38 = vmul.f32 %v2673_v12, %v1431_v33  ;;  %v622_v4 = vld [vmem:[%s2668_s20 + $0x2c] sm:$0x1]  ;;  %v625_v31 = vld [vmem:[%s2668_s20 + $0x38] sm:$0xf] }
  0x53   : > { %2404 = vmatmul.mubr.msk.bf16.vlgmr.msra.gmra.mrb[0].mxu0 %vm449_vm1, %v1459_v61  ;;  %v751_v41 = vunpack.c.l.bf16 %v657_v36  ;;  %v766_v6 = vadd.f32 %v2698_v25, %v758_v34  ;;  %v671_v42 = vsel %vm2744_vm4, %v666_v8, %v670_v22  ;;  %v1433_v43 = vunpack.c.h.bf16 %v2250_v24 }
  0x54   : > { %2412 = vmatpush3.bf16.msra.mxu0 %v2685_v15  ;;  %v680_v44 = vrot.slane %v679_v37, 4  ;;  %v752_v11 = vunpack.c.l.bf16 %v671_v42  ;;  %v1446_v7 = vadd.f32 %v2698_v25, %v1438_v14  ;;  %v1447_v45 = vadd.f32 %v2698_v25, %v1439_v38  ;;  %v626_v37 = vld [vmem:[%s2668_s20 + $0x3c] sm:$0x1] }
  0x55   : > { %v759_v46 = vmul.f32 %v2673_v12, %v751_v41  ;;  %v774_v47 = vmax.f32 %v766_v6, 0.0  ;;  %v1440_v48 = vmul.f32 %v2673_v12, %v1432_v35  ;;  %v1441_v13 = vmul.f32 %v2673_v12, %v1433_v43  ;;  %2506 = vmatprep.subr.msk.bf16.mxu0 %vm462_vm0, %v2857_v39  ;;  %v2257_v43 = vld [vmem:[%s2668_s20 + $0x50] ss:$8 sps:$4 sm:$0xff]  }
  0x56   : > { %v685_v15 = vsel %vm2744_vm4, %v680_v44, %v684_v9  ;;  %v760_v50 = vmul.f32 %v2673_v12, %v752_v11  ;;  %v1454_v51 = vmax.f32 %v1446_v7, 0.0  ;;  %v1455_v52 = vmax.f32 %v1447_v45, 0.0 }
  0x57   : > { %v767_v53 = vadd.f32 %v2698_v25, %v759_v46  ;;  %v753_v54 = vunpack.c.l.bf16 %v685_v15  ;;  %v1448_v55 = vadd.f32 %v2698_v25, %v1440_v48  ;;  %v1449_v56 = vadd.f32 %v2698_v25, %v1441_v13  ;;  %v2259_v46 = vld [vmem:[%s2668_s20 + $0x60] ss:$8 sps:$4 sm:$0xff]  }
  0x58   : > { %v768_v57 = vadd.f32 %v2698_v25, %v760_v50  ;;  %v1460_v58 = vpack.c.bf16 %v1455_v52, %v1454_v51  ;;  %v687_v60 = vshrl.u32 %v619_v49, 16  ;;  %v690_v61 = vshll.u32 %v619_v49, 16 }
  0x59   : > { %v775_v62 = vmax.f32 %v767_v53, 0.0  ;;  %v761_v63 = vmul.f32 %v2673_v12, %v753_v54  ;;  %v1456_v0 = vmax.f32 %v1448_v55, 0.0  ;;  %v1457_v2 = vmax.f32 %v1449_v56, 0.0 }
  0x5a   : > { %v776_v5 = vmax.f32 %v768_v57, 0.0  ;;  %2407 = vmatprep.mubr.msk.bf16.mxu0 %vm449_vm1, %v1460_v58  ;;  %v689_v17 = vrot.slane %v687_v60, 4  ;;  %v692_v18 = vrot.slane %v690_v61, 5  ;;  %v696_v19 = vshll.u32 %v620_v10, 16 }
  0x5b   : > { %v782_v21 = vpack.c.bf16 %v775_v62, %v774_v47  ;;  %v769_v22 = vadd.f32 %v2698_v25, %v761_v63  ;;  %v1461_v23 = vpack.c.bf16 %v1457_v2, %v1456_v0  ;;  %v701_v24 = vshrl.u32 %v621_v59, 16 }
  0x5c   : > { %v693_v27 = vor.u32 %v692_v18, %v689_v17  ;;  %v698_v28 = vrot.slane %v696_v19, 5  ;;  %v704_v29 = vshll.u32 %v621_v59, 16  ;;  %v710_v30 = vshll.u32 %v622_v4, 16  ;;  %v2197_v19 = vld [vmem:[%s2668_s20 + $0x90] ss:$8 sps:$4 sm:$0xff]  }
  0x5d   : > { %2363 = vmatprep.mubr.msk.bf16.mxu1 %vm449_vm1, %v782_v21  ;;  %v777_v32 = vmax.f32 %v769_v22, 0.0  ;;  %2408 = vmatmul.mubr.msk.bf16.gmra.mrb[4].mxu0 %vm449_vm1, %v1461_v23  ;;  %v703_v33 = vrot.slane %v701_v24, 4  ;;  %v715_v34 = vshrl.u32 %v623_v20, 16  ;;  %v718_v8 = vshll.u32 %v623_v20, 16 }
  0x5e   : > { %v694_v9 = vrot.slane %v693_v27, 4  ;;  %v706_v35 = vrot.slane %v704_v29, 5  ;;  %v712_v36 = vrot.slane %v710_v30, 5  ;;  %v724_v14 = vshll.u32 %v624_v26, 16  ;;  %v2199_v29 = vld [vmem:[%s2668_s20 + $0xa0] ss:$8 sps:$4 sm:$0xff]  }
  0x5f   : > { %v783_v38 = vpack.c.bf16 %v777_v32, %v776_v5  ;;  %v717_v41 = vrot.slane %v715_v34, 4  ;;  %v720_v6 = vrot.slane %v718_v8, 5  ;;  %v729_v42 = vshrl.u32 %v625_v31, 16 }
  0x60   : > { %v699_v44 = vsel %vm2744_vm4, %v694_v9, %v698_v28  ;;  %v707_v11 = vor.u32 %v706_v35, %v703_v33  ;;  %v726_v7 = vrot.slane %v724_v14, 5  ;;  %v732_v45 = vshll.u32 %v625_v31, 16 }
  0x61   : > { %2364 = vmatmul.mubr.msk.bf16.vlgmr.msra.gmra.mrb[0].mxu1 %vm449_vm1, %v783_v38  ;;  %v754_v47 = vunpack.c.l.bf16 %v699_v44  ;;  %v721_v48 = vor.u32 %v720_v6, %v717_v41  ;;  %v731_v13 = vrot.slane %v729_v42, 4  ;;  %v738_v49 = vshll.u32 %v626_v37, 16  ;;  %v2263_v6 = vld [vmem:[%s2668_s20 + $0x80] ss:$8 sps:$4 sm:$0xff]  }
  0x62   : > { %2372 = vmatpush3.bf16.msra.mxu1 %v2689_v16  ;;  %v708_v15 = vrot.slane %v707_v11, 4  ;;  %v734_v50 = vrot.slane %v732_v45, 5  ;;  %v1564_v51 = vunpack.c.l.bf16 %v2257_v43  ;;  %v1565_v52 = vunpack.c.h.bf16 %v2257_v43 }
  0x63   : > { %v762_v53 = vmul.f32 %v2673_v12, %v754_v47  ;;  %v722_v54 = vrot.slane %v721_v48, 4  ;;  %v740_v55 = vrot.slane %v738_v49, 5  ;;  %v1566_v56 = vunpack.c.l.bf16 %v2259_v46  ;;  %2502 = vmatprep.subr.msk.bf16.mxu1 %vm462_vm0, %v2617_v1 }
  0x64   : > { %v713_v10 = vsel %vm2744_vm4, %v708_v15, %v712_v36  ;;  %v735_v57 = vor.u32 %v734_v50, %v731_v13  ;;  %v1572_v58 = vmul.f32 %v2673_v12, %v1564_v51  ;;  %v1573_v16 = vmul.f32 %v2673_v12, %v1565_v52  ;;  %v2261_v36 = vld [vmem:[%s2668_s20 + $0x70] ss:$8 sps:$4 sm:$0xff]  }
  0x65   : > { %v755_v59 = vunpack.c.l.bf16 %v713_v10  ;;  %v770_v60 = vadd.f32 %v2698_v25, %v762_v53  ;;  %v727_v61 = vsel %vm2744_vm4, %v722_v54, %v726_v7  ;;  %v1567_v62 = vunpack.c.h.bf16 %v2259_v46  ;;  %v2201_v53 = vld [vmem:[%s2668_s20 + $0xb0] ss:$8 sps:$4 sm:$0xff]  }
  0x66   : > { %v736_v63 = vrot.slane %v735_v57, 4  ;;  %v756_v0 = vunpack.c.l.bf16 %v727_v61  ;;  %v1580_v1 = vadd.f32 %v2698_v25, %v1572_v58  ;;  %v1581_v2 = vadd.f32 %v2698_v25, %v1573_v16 }
  0x67   : > { %v763_v4 = vmul.f32 %v2673_v12, %v755_v59  ;;  %v778_v5 = vmax.f32 %v770_v60, 0.0  ;;  %v1574_v17 = vmul.f32 %v2673_v12, %v1566_v56  ;;  %v1575_v18 = vmul.f32 %v2673_v12, %v1567_v62 }
  0x68   : > { %v741_v20 = vsel %vm2744_vm4, %v736_v63, %v740_v55  ;;  %v764_v21 = vmul.f32 %v2673_v12, %v756_v0  ;;  %v1588_v22 = vmax.f32 %v1580_v1, 0.0  ;;  %v1589_v23 = vmax.f32 %v1581_v2, 0.0  ;;  %v2203_v0 = vld [vmem:[%s2668_s20 + $0xc0] ss:$8 sps:$4 sm:$0xff]  }
  0x69   : > { %v771_v24 = vadd.f32 %v2698_v25, %v763_v4  ;;  %v757_v26 = vunpack.c.l.bf16 %v741_v20  ;;  %v1582_v27 = vadd.f32 %v2698_v25, %v1574_v17  ;;  %v1583_v28 = vadd.f32 %v2698_v25, %v1575_v18  ;;  %v2270_v17 = vld [vmem:[%s2668_s20 + $0x8] sm:$0xf] }
  0x6a   : > { %v772_v30 = vadd.f32 %v2698_v25, %v764_v21  ;;  %v1596_v31 = vpack.c.bf16 %v1589_v23, %v1588_v22  ;;  %v1877_v32 = vsel %vm462_vm0, %v2857_v39, 0  ;;  %v888_v33 = vunpack.c.l.bf16 %v2197_v19 }
  0x6b   : > { %v779_v34 = vmax.f32 %v771_v24, 0.0  ;;  %v765_v8 = vmul.f32 %v2673_v12, %v757_v26  ;;  %v1590_v9 = vmax.f32 %v1582_v27, 0.0  ;;  %v1591_v35 = vmax.f32 %v1583_v28, 0.0  ;;  %v2271_v27 = vld [vmem:[%s2668_s20 + $0xc] sm:$0x1] }
  0x6c   : > { %v780_v37 = vmax.f32 %v772_v30, 0.0  ;;  %2413 = vmatprep.mubr.msk.bf16.mxu0 %vm449_vm1, %v1596_v31  ;;  %v889_v14 = vunpack.c.h.bf16 %v2197_v19  ;;  %v896_v38 = vmul.f32 %v2673_v12, %v888_v33  ;;  %v890_v41 = vunpack.c.l.bf16 %v2199_v29 }
  0x6d   : > { %v784_v42 = vpack.c.bf16 %v779_v34, %v778_v5  ;;  %v773_v43 = vadd.f32 %v2698_v25, %v765_v8  ;;  %v1597_v44 = vpack.c.bf16 %v1591_v35, %v1590_v9  ;;  %v891_v39 = vunpack.c.h.bf16 %v2199_v29  ;;  %v2272_v8 = vld [vmem:[%s2668_s20 + $0x10] sm:$0xf]  ;;  %v2273_v9 = vld [vmem:[%s2668_s20 + $0x14] sm:$0x1] }
  0x6e   : > { %v897_v11 = vmul.f32 %v2673_v12, %v889_v14  ;;  %v904_v7 = vadd.f32 %v2698_v25, %v896_v38  ;;  %v898_v45 = vmul.f32 %v2673_v12, %v890_v41  ;;  %v1568_v46 = vunpack.c.l.bf16 %v2261_v36 }
  0x6f   : > { %2367 = vmatprep.mubr.msk.bf16.mxu1 %vm449_vm1, %v784_v42  ;;  %v781_v47 = vmax.f32 %v773_v43, 0.0  ;;  %2414 = vmatmul.mubr.msk.bf16.vlgmr.msra.gmra.mrb[0].mxu0 %vm449_vm1, %v1597_v44  ;;  %v899_v48 = vmul.f32 %v2673_v12, %v891_v39  ;;  %v1569_v13 = vunpack.c.h.bf16 %v2261_v36  ;;  %v1570_v49 = vunpack.c.l.bf16 %v2263_v6  ;;  %v2274_v44 = vld [vmem:[%s2668_s20 + $0x18] sm:$0xf] }
  0x70   : > { %2422 = vmatpush3.bf16.msra.mxu0 %v1877_v32  ;;  %v905_v15 = vadd.f32 %v2698_v25, %v897_v11  ;;  %v912_v50 = vmax.f32 %v904_v7, 0.0  ;;  %v906_v51 = vadd.f32 %v2698_v25, %v898_v45  ;;  %v1576_v52 = vmul.f32 %v2673_v12, %v1568_v46  ;;  %v2275_v45 = vld [vmem:[%s2668_s20 + $0x1c] sm:$0x1] }
  0x71   : > { %v785_v54 = vpack.c.bf16 %v781_v47, %v780_v37  ;;  %v907_v55 = vadd.f32 %v2698_v25, %v899_v48  ;;  %v1577_v56 = vmul.f32 %v2673_v12, %v1569_v13  ;;  %v1571_v10 = vunpack.c.h.bf16 %v2263_v6 }
  0x72   : > { %v913_v57 = vmax.f32 %v905_v15, 0.0  ;;  %v914_v58 = vmax.f32 %v906_v51, 0.0  ;;  %v1584_v16 = vadd.f32 %v2698_v25, %v1576_v52  ;;  %v1578_v59 = vmul.f32 %v2673_v12, %v1570_v49  ;;  %v2277_v51 = vld [vmem:[%s2668_s20 + $0x24] sm:$0x1] }
  0x73   : > { %2368 = vmatmul.mubr.msk.bf16.gmra.mrb[4].mxu1 %vm449_vm1, %v785_v54  ;;  %v915_v60 = vmax.f32 %v907_v55, 0.0  ;;  %v1585_v61 = vadd.f32 %v2698_v25, %v1577_v56  ;;  %v1579_v62 = vmul.f32 %v2673_v12, %v1571_v10  ;;  %v892_v63 = vunpack.c.l.bf16 %v2201_v53 }
  0x74   : > { %v920_v1 = vpack.c.bf16 %v913_v57, %v912_v50  ;;  %v1592_v2 = vmax.f32 %v1584_v16, 0.0  ;;  %v1586_v4 = vadd.f32 %v2698_v25, %v1578_v59  ;;  %v893_v5 = vunpack.c.h.bf16 %v2201_v53  ;;  %v2214_v16 = vld [vmem:[%s2668_s20 + $0xf8] ss:$8 sps:$4 sm:$0xff]  }
  0x75   : > { %v921_v18 = vpack.c.bf16 %v915_v60, %v914_v58  ;;  %v1593_v19 = vmax.f32 %v1585_v61, 0.0  ;;  %v1587_v20 = vadd.f32 %v2698_v25, %v1579_v62  ;;  %v900_v21 = vmul.f32 %v2673_v12, %v892_v63  ;;  %v2278_v63 = vld [vmem:[%s2668_s20 + $0x28] sm:$0xf] }
  0x76   : > { %2373 = vmatprep.mubr.msk.bf16.mxu1 %vm449_vm1, %v920_v1  ;;  %v1594_v22 = vmax.f32 %v1586_v4, 0.0  ;;  %v901_v23 = vmul.f32 %v2673_v12, %v893_v5  ;;  %v894_v24 = vunpack.c.l.bf16 %v2203_v0  ;;  %v895_v26 = vunpack.c.h.bf16 %v2203_v0 }
  0x77   : > { %v1598_v28 = vpack.c.bf16 %v1593_v19, %v1592_v2  ;;  %v1595_v29 = vmax.f32 %v1587_v20, 0.0  ;;  %v908_v30 = vadd.f32 %v2698_v25, %v900_v21  ;;  %v1707_v31 = vshrl.u32 %v2270_v17, 16  ;;  %v2981_v21 = vld [vmem:[%s3077_s2] ss:$0 sm:$0xff] }
  0x78   : > { %v909_v32 = vadd.f32 %v2698_v25, %v901_v23  ;;  %v902_v33 = vmul.f32 %v2673_v12, %v894_v24  ;;  %v903_v34 = vmul.f32 %v2673_v12, %v895_v26  ;;  %v1710_v35 = vshll.u32 %v2270_v17, 16 }
  0x79   : > { %2417 = vmatprep.mubr.msk.bf16.mxu0 %vm449_vm1, %v1598_v28  ;;  %v1599_v36 = vpack.c.bf16 %v1595_v29, %v1594_v22  ;;  %v916_v37 = vmax.f32 %v908_v30, 0.0  ;;  %v1709_v14 = vrot.slane %v1707_v31, 4  ;;  %v1716_v38 = vshll.u32 %v2271_v27, 16  ;;  %v2989_v30 = vld [vmem:[%s3078_s3] ss:$0 sm:$0xff] }
  0x7a   : > { %v917_v41 = vmax.f32 %v909_v32, 0.0  ;;  %v910_v6 = vadd.f32 %v2698_v25, %v902_v33  ;;  %v911_v42 = vadd.f32 %v2698_v25, %v903_v34  ;;  %v1712_v43 = vrot.slane %v1710_v35, 5  ;;  %v2276_v25 = vld [vmem:[%s2668_s20 + $0x20] sm:$0xf] }
  0x7b   : > { %2374 = vmatmul.mubr.msk.bf16.vlgmr.msra.gmra.mrb[0].mxu1 %vm449_vm1, %v921_v18  ;;  %2418 = vmatmul.mubr.msk.bf16.gmra.mrb[4].mxu0 %vm449_vm1, %v1599_v36  ;;  %v1718_v12 = vrot.slane %v1716_v38, 5  ;;  %v1721_v39 = vshrl.u32 %v2272_v8, 16  ;;  %v1724_v11 = vshll.u32 %v2272_v8, 16  ;;  %v1730_v7 = vshll.u32 %v2273_v9, 16 }
  0x7c   : > { %2432 = vmatpush3.bf16.msra.mxu1 %v2625_v3  ;;  %v922_v46 = vpack.c.bf16 %v917_v41, %v916_v37  ;;  %v918_v47 = vmax.f32 %v910_v6, 0.0  ;;  %v919_v48 = vmax.f32 %v911_v42, 0.0  ;;  %v1713_v13 = vor.u32 %v1712_v43, %v1709_v14  ;;  %v2279_v37 = vld [vmem:[%s2668_s20 + $0x2c] sm:$0x1]  ;;  %v2280_v14 = vld [vmem:[%s2668_s20 + $0x30] sm:$0xf] }
  0x7d   : > { %v1723_v49 = vrot.slane %v1721_v39, 4  ;;  %v1726_v15 = vrot.slane %v1724_v11, 5  ;;  %v1732_v50 = vrot.slane %v1730_v7, 5  ;;  %v1735_v52 = vshrl.u32 %v2274_v44, 16  ;;  %v2281_v7 = vld [vmem:[%s2668_s20 + $0x34] sm:$0x1] }
  0x7e   : > { %2377 = vmatprep.mubr.msk.bf16.mxu1 %vm449_vm1, %v922_v46  ;;  %v923_v53 = vpack.c.bf16 %v919_v48, %v918_v47  ;;  %v1714_v54 = vrot.slane %v1713_v13, 4  ;;  %v1738_v55 = vshll.u32 %v2274_v44, 16  ;;  %v1744_v56 = vshll.u32 %v2275_v45, 16 }
  0x7f   : > { %v1727_v10 = vor.u32 %v1726_v15, %v1723_v49  ;;  %v1737_v3 = vrot.slane %v1735_v52, 4  ;;  %v1749_v57 = vshrl.u32 %v2276_v25, 16  ;;  %v1752_v58 = vshll.u32 %v2276_v25, 16  ;;  %v2216_v15 = vld [vmem:[%s2668_s20 + $0x108] ss:$8 sps:$4 sm:$0xff]  }
  0x80   : > { %v1719_v59 = vsel %vm2744_vm4, %v1714_v54, %v1718_v12  ;;  %v1740_v60 = vrot.slane %v1738_v55, 5  ;;  %v1746_v61 = vrot.slane %v1744_v56, 5  ;;  %v1758_v62 = vshll.u32 %v2277_v51, 16 }
  0x81   : > { %v1728_v0 = vrot.slane %v1727_v10, 4  ;;  %v1826_v1 = vunpack.c.l.bf16 %v1719_v59  ;;  %v1751_v2 = vrot.slane %v1749_v57, 4  ;;  %v1754_v4 = vrot.slane %v1752_v58, 5 }
  0x82   : > { %v1741_v5 = vor.u32 %v1740_v60, %v1737_v3  ;;  %v1760_v17 = vrot.slane %v1758_v62, 5  ;;  %v1030_v18 = vunpack.c.l.bf16 %v2214_v16  ;;  %v1031_v19 = vunpack.c.h.bf16 %v2214_v16  ;;  %v2282_v3 = vld [vmem:[%s2668_s20 + $0x38] sm:$0xf]  ;;  %v2283_v60 = vld [vmem:[%s2668_s20 + $0x3c] sm:$0x1] }
  0x83   : > { %2378 = vmatmul.mubr.msk.bf16.gmra.mrb[4].mxu1 %vm449_vm1, %v923_v53  ;;  %v1733_v20 = vsel %vm2744_vm4, %v1728_v0, %v1732_v50  ;;  %v1834_v22 = vmul.f32 %v2981_v21, %v1826_v1  ;;  %v1755_v23 = vor.u32 %v1754_v4, %v1751_v2  ;;  %v1763_v24 = vshrl.u32 %v2278_v63, 16  ;;  %v2284_v4 = vld [vmem:[%s2668_s20 + $0x40] sm:$0xf] }
  0x84   : > { %v1827_v26 = vunpack.c.l.bf16 %v1733_v20  ;;  %v1742_v27 = vrot.slane %v1741_v5, 4  ;;  %v1038_v28 = vmul.f32 %v2981_v21, %v1030_v18  ;;  %v1039_v29 = vmul.f32 %v2981_v21, %v1031_v19 }
  0x85   : > { %v1842_v31 = vadd.f32 %v2989_v30, %v1834_v22  ;;  %v1756_v32 = vrot.slane %v1755_v23, 4  ;;  %v1765_v33 = vrot.slane %v1763_v24, 4  ;;  %v1766_v34 = vshll.u32 %v2278_v63, 16 }
  0x86   : > { %v1835_v8 = vmul.f32 %v2981_v21, %v1827_v26  ;;  %v1747_v9 = vsel %vm2744_vm4, %v1742_v27, %v1746_v61  ;;  %v1046_v35 = vadd.f32 %v2989_v30, %v1038_v28  ;;  %v1047_v36 = vadd.f32 %v2989_v30, %v1039_v29  ;;  %v2285_v26 = vld [vmem:[%s2668_s20 + $0x44] sm:$0x1] }
  0x87   : > { %v1850_v38 = vmax.f32 %v1842_v31, 0.0  ;;  %v1761_v41 = vsel %vm2744_vm4, %v1756_v32, %v1760_v17  ;;  %v1828_v6 = vunpack.c.l.bf16 %v1747_v9  ;;  %v1768_v42 = vrot.slane %v1766_v34, 5 }
  0x88   : > { %v1843_v43 = vadd.f32 %v2989_v30, %v1835_v8  ;;  %v1829_v44 = vunpack.c.l.bf16 %v1761_v41  ;;  %v1054_v12 = vmax.f32 %v1046_v35, 0.0  ;;  %v1055_v39 = vmax.f32 %v1047_v36, 0.0 }
  0x89   : > { %v1836_v11 = vmul.f32 %v2981_v21, %v1828_v6  ;;  %v1769_v45 = vor.u32 %v1768_v42, %v1765_v33  ;;  %v1772_v46 = vshll.u32 %v2279_v37, 16  ;;  %v1777_v47 = vshrl.u32 %v2280_v14, 16 }
  0x8a   : > { %v1851_v48 = vmax.f32 %v1843_v43, 0.0  ;;  %v1837_v13 = vmul.f32 %v2981_v21, %v1829_v44  ;;  %v1060_v25 = vpack.c.bf16 %v1055_v39, %v1054_v12  ;;  %v1780_v49 = vshll.u32 %v2280_v14, 16 }
  0x8b   : > { %v1844_v50 = vadd.f32 %v2989_v30, %v1836_v11  ;;  %v1770_v51 = vrot.slane %v1769_v45, 4  ;;  %v1774_v52 = vrot.slane %v1772_v46, 5  ;;  %v1779_v53 = vrot.slane %v1777_v47, 4 }
  0x8c   : > { %v1858_v54 = vpack.c.bf16 %v1851_v48, %v1850_v38  ;;  %v1845_v55 = vadd.f32 %v2989_v30, %v1837_v13  ;;  %2387 = vmatprep.mubr.msk.bf16.mxu1 %vm449_vm1, %v1060_v25  ;;  %v1782_v56 = vrot.slane %v1780_v49, 5  ;;  %v1786_v10 = vshll.u32 %v2281_v7, 16 }
  0x8d   : > { %v1852_v57 = vmax.f32 %v1844_v50, 0.0  ;;  %v1775_v58 = vsel %vm2744_vm4, %v1770_v51, %v1774_v52  ;;  %v1032_v16 = vunpack.c.l.bf16 %v2216_v15  ;;  %v1033_v59 = vunpack.c.h.bf16 %v2216_v15 }
  0x8e   : > { %2423 = vmatprep.mubr.msk.bf16.mxu0 %vm449_vm1, %v1858_v54  ;;  %v1853_v61 = vmax.f32 %v1845_v55, 0.0  ;;  %v1783_v62 = vor.u32 %v1782_v56, %v1779_v53  ;;  %v1788_v63 = vrot.slane %v1786_v10, 5  ;;  %v1830_v0 = vunpack.c.l.bf16 %v1775_v58 }
  0x8f   : > { %v1040_v1 = vmul.f32 %v2981_v21, %v1032_v16  ;;  %v1041_v2 = vmul.f32 %v2981_v21, %v1033_v59  ;;  %v1791_v5 = vshrl.u32 %v2282_v3, 16  ;;  %v1794_v17 = vshll.u32 %v2282_v3, 16  ;;  %v2291_v3 = vld [vmem:[%s3079_s4] ss:$0 sm:$0xff] }
  0x90   : > { %v1859_v18 = vpack.c.bf16 %v1853_v61, %v1852_v57  ;;  %v1784_v19 = vrot.slane %v1783_v62, 4  ;;  %v1838_v20 = vmul.f32 %v2981_v21, %v1830_v0  ;;  %v1800_v22 = vshll.u32 %v2283_v60, 16 }
  0x91   : > { %v1048_v23 = vadd.f32 %v2989_v30, %v1040_v1  ;;  %v1049_v24 = vadd.f32 %v2989_v30, %v1041_v2  ;;  %v1793_v27 = vrot.slane %v1791_v5, 4  ;;  %v1796_v28 = vrot.slane %v1794_v17, 5 }
  0x92   : > { %2424 = vmatmul.mubr.msk.bf16.vlgmr.msra.gmra.mrb[0].mxu0 %vm449_vm1, %v1859_v18  ;;  %v1789_v29 = vsel %vm2744_vm4, %v1784_v19, %v1788_v63  ;;  %v1846_v31 = vadd.f32 %v2989_v30, %v1838_v20  ;;  %v1802_v32 = vrot.slane %v1800_v22, 5  ;;  %v1805_v33 = vshrl.u32 %v2284_v4, 16 }
  0x93   : > { %v1831_v34 = vunpack.c.l.bf16 %v1789_v29  ;;  %v1056_v8 = vmax.f32 %v1048_v23, 0.0  ;;  %v1057_v9 = vmax.f32 %v1049_v24, 0.0  ;;  %v1797_v35 = vor.u32 %v1796_v28, %v1793_v27 }
  0x94   : > { %v1807_v36 = vrot.slane %v1805_v33, 4  ;;  %v1808_v37 = vshll.u32 %v2284_v4, 16  ;;  %v1814_v14 = vshll.u32 %v2285_v26, 16  ;;  %v1854_v44 = vmax.f32 %v1846_v31, 0.0 }
  0x95   : > { %v1839_v38 = vmul.f32 %v2981_v21, %v1831_v34  ;;  %v1061_v41 = vpack.c.bf16 %v1057_v9, %v1056_v8  ;;  %v1798_v6 = vrot.slane %v1797_v35, 4 }
  0x96   : > { %v1810_v42 = vrot.slane %v1808_v37, 5  ;;  %v1816_v11 = vrot.slane %v1814_v14, 5 }
  0x97   : > { %v1847_v43 = vadd.f32 %v2989_v30, %v1839_v38  ;;  %2388 = vmatmul.mubr.msk.bf16.vlgmr.msra.gmra.mrb[4].mxu1 %vm449_vm1, %v1061_v41  ;;  %v1803_v12 = vsel %vm2744_vm4, %v1798_v6, %v1802_v32 }
  0x98   : > { %v1811_v39 = vor.u32 %v1810_v42, %v1807_v36  ;;  %v1832_v7 = vunpack.c.l.bf16 %v1803_v12 }
  0x99   : > { %v1855_v45 = vmax.f32 %v1847_v43, 0.0 }
  0x9a   : > { %v1812_v46 = vrot.slane %v1811_v39, 4  ;;  %v1840_v47 = vmul.f32 %v2981_v21, %v1832_v7 }
  0x9b   : > { %v1860_v48 = vpack.c.bf16 %v1855_v45, %v1854_v44 }
  0x9c   : > { %v1817_v13 = vsel %vm2744_vm4, %v1812_v46, %v1816_v11  ;;  %v1848_v49 = vadd.f32 %v2989_v30, %v1840_v47 }
  0x9d   : > { %2427 = vmatprep.mubr.msk.bf16.mxu0 %vm449_vm1, %v1860_v48  ;;  %v1833_v25 = vunpack.c.l.bf16 %v1817_v13 }
  0x9e   : > { %v1856_v51 = vmax.f32 %v1848_v49, 0.0 }
  0x9f   : > { %v1841_v15 = vmul.f32 %v2981_v21, %v1833_v25  ;;  %v2292_v21 = vld [vmem:[%s3080_s5] ss:$0 sm:$0xff] }
  0xa1   : > { %v1849_v50 = vadd.f32 %v2989_v30, %v1841_v15 }
  0xa3   : > { %v1857_v52 = vmax.f32 %v1849_v50, 0.0 }
  0xa5   : > { %v1861_v53 = vpack.c.bf16 %v1857_v52, %v1856_v51 }
  0xa7   : > { %2428 = vmatmul.mubr.msk.bf16.gmra.mrb[4].mxu0 %vm449_vm1, %v1861_v53 }
 0x14e   : > { %v2375_v54 = vpop.f32.mrb[0].mxu1 }
 0x14f   : > { %v975_v55 = vpop.f32.mrb[1].mxu1 }
 0x150   : > { %v2376_v56 = vpop.f32.mrb[2].mxu1 }
 0x151   : > { %v978_v40 = vpop.f32.mrb[3].mxu1 }
 0x165   : > { %v2425_v10 = vpop.f32.mrb[0].mxu0 }
 0x166   : > { %v2433_v57 = vadd.f32 %v2425_v10, %v2375_v54  ;;  %v1913_v58 = vpop.f32.mrb[1].mxu0 }
 0x167   : > { %v2434_v30 = vadd.f32 %v1913_v58, %v975_v55  ;;  %v2426_v16 = vpop.f32.mrb[2].mxu0 }
 0x168   : > { %v1961_v59 = vmul.f32 %v2433_v57, %v2291_v3  ;;  %v2435_v60 = vadd.f32 %v2426_v16, %v2376_v56  ;;  %v1916_v61 = vpop.f32.mrb[3].mxu0 }
 0x169   : > { %v1959_v62 = vmul.f32 %v2434_v30, %v2291_v3  ;;  %v2436_v63 = vadd.f32 %v1916_v61, %v978_v40 }
 0x16a   : > { %v1976_v0 = vadd.f32 %v2292_v21, %v1961_v59  ;;  %v1962_v1 = vmul.f32 %v2435_v60, %v2291_v3  ;;  %v2389_v2 = vpop.f32.mrb[4].mxu1 }
 0x16b   : > { %v1974_v4 = vadd.f32 %v2292_v21, %v1959_v62  ;;  %v1960_v5 = vmul.f32 %v2436_v63, %v2291_v3  ;;  %v1129_v17 = vpop.f32.mrb[5].mxu1 }
 0x16c   : > { %v1984_v18 = vmax.f32 %v1976_v0, 0.0  ;;  %v1977_v19 = vadd.f32 %v2292_v21, %v1962_v1  ;;  %v2390_v20 = vpop.f32.mrb[6].mxu1 }
 0x16d   : > { %v1982_v22 = vmax.f32 %v1974_v4, 0.0  ;;  %v1975_v23 = vadd.f32 %v2292_v21, %v1960_v5  ;;  %v1132_v24 = vpop.f32.mrb[7].mxu1 }
 0x16e   : > { %v1992_v26 = vpack.c.bf16 %v1984_v18, %v1984_v18  ;;  %v1985_v27 = vmax.f32 %v1977_v19, 0.0 }
 0x16f   : > { %v1990_v28 = vpack.c.bf16 %v1982_v22, %v1982_v22  ;;  %v1983_v29 = vmax.f32 %v1975_v23, 0.0 }
 0x170   : > { %2001 = vst.msk [vmem:[%s3048_s18 + $0x8] sm:$0xf] %vm1998_vm5, %v1992_v26  ;;  %v1993_v31 = vpack.c.bf16 %v1985_v27, %v1985_v27 }
 0x171   : > { %1999 = vst.msk [vmem:[%s3048_s18] sm:$0xf] %vm1998_vm5, %v1990_v28  ;;  %v1991_v32 = vpack.c.bf16 %v1983_v29, %v1983_v29 }
 0x172   : > { %2002 = vst.msk [vmem:[%s3048_s18 + $0xc] sm:$0xf] %vm1998_vm5, %v1993_v31 }
 0x173   : > { %2000 = vst.msk [vmem:[%s3048_s18 + $0x4] sm:$0xf] %vm1998_vm5, %v1991_v32 }
 0x17a   : > { %v2429_v33 = vpop.f32.mrb[4].mxu0 }
 0x17b   : > { %v2437_v34 = vadd.f32 %v2429_v33, %v2389_v2  ;;  %v1929_v8 = vpop.f32.mrb[5].mxu0 }
 0x17c   : > { %v2438_v9 = vadd.f32 %v1929_v8, %v1129_v17  ;;  %v2430_v35 = vpop.f32.mrb[6].mxu0 }
 0x17d   : > { %v1965_v36 = vmul.f32 %v2437_v34, %v2291_v3  ;;  %v2439_v37 = vadd.f32 %v2430_v35, %v2390_v20  ;;  %v1932_v14 = vpop.f32.mrb[7].mxu0 }
 0x17e   : > { %v1963_v38 = vmul.f32 %v2438_v9, %v2291_v3  ;;  %v2440_v41 = vadd.f32 %v1932_v14, %v1132_v24 }
 0x17f   : > { %v1980_v6 = vadd.f32 %v2292_v21, %v1965_v36  ;;  %v1966_v42 = vmul.f32 %v2439_v37, %v2291_v3 }
 0x180   : > { %v1978_v43 = vadd.f32 %v2292_v21, %v1963_v38  ;;  %v1964_v44 = vmul.f32 %v2440_v41, %v2291_v3 }
 0x181   : > { %v1988_v12 = vmax.f32 %v1980_v6, 0.0  ;;  %v1981_v39 = vadd.f32 %v2292_v21, %v1966_v42 }
 0x182   : > { %v1986_v11 = vmax.f32 %v1978_v43, 0.0  ;;  %v1979_v7 = vadd.f32 %v2292_v21, %v1964_v44 }
 0x183   : > { %v1996_v45 = vpack.c.bf16 %v1988_v12, %v1988_v12  ;;  %v1989_v46 = vmax.f32 %v1981_v39, 0.0 }
 0x184   : > { %v1994_v47 = vpack.c.bf16 %v1986_v11, %v1986_v11  ;;  %v1987_v48 = vmax.f32 %v1979_v7, 0.0 }
 0x185   : > { %2005 = vst.msk [vmem:[%s3048_s18 + $0x18] sm:$0xf] %vm1998_vm5, %v1996_v45  ;;  %v1997_v13 = vpack.c.bf16 %v1989_v46, %v1989_v46 }
 0x186   : > { %2003 = vst.msk [vmem:[%s3048_s18 + $0x10] sm:$0xf] %vm1998_vm5, %v1994_v47  ;;  %v1995_v25 = vpack.c.bf16 %v1987_v48, %v1987_v48 }
 0x187   : > { %2006 = vst.msk [vmem:[%s3048_s18 + $0x1c] sm:$0xf] %vm1998_vm5, %v1997_v13 }
 0x188   : > { %2004 = vst.msk [vmem:[%s3048_s18 + $0x14] sm:$0xf] %vm1998_vm5, %v1995_v25 }
 0x189 PF: > { %s16_s23 = sadd.s32 1, %s2556_s23   ;;  %s3084_s21 = smov %s2552_s22 }
 0x18a   : > { %p13_p5 = scmp.ge.s32.totalorder %s16_s23, 4   ;;  %s3085_s22 = smov %s3087_s24 }
 0x18c   :  { %15 = sbr.rel (!%p13_p5) target bundleno = 2 (0x2), region = 97 }

// kernel: _lambda_.5
= control target key start
LH: loop header
LB: loop body
LE: loop exit
PB: predicated region body
PF: predicated region fallthrough
CT: control target
= control target key end

     0   :  { %s2694_s21 = smov 0   ;;  %s2696_s22 = smov 0   ;;  %s3273_s0 = inlined_call_operand.vmem [shape: bf16[2,10,10,8], index: 0, kind: input, shape index: {}]   ;;  %s3274_s1 = inlined_call_operand.vmem [shape: bf16[9,8,8], index: 1, kind: input, shape index: {}]   ;;  %s3275_s2 = inlined_call_operand.vmem [shape: bf16[2,36,9,4], index: 2, kind: input, shape index: {}]   ;;  %s3276_s3 = inlined_call_operand.vmem [shape: f32[1,4], index: 3, kind: input, shape index: {}]   ;;  %s3277_s4 = inlined_call_operand.vmem [shape: f32[1,4], index: 4, kind: input, shape index: {}]   ;;  %s3278_s5 = inlined_call_operand.vmem [shape: bf16[4,8], index: 5, kind: input, shape index: {}]   ;;  %s3279_s6 = inlined_call_operand.vmem [shape: f32[2,8,8,8], index: 6, kind: output, shape index: {}]  }
   0x1   :  { %s2698_s23 = smov 0  }
   0x2 LB: > { %s35_s24 = sadd.s32 1, %s2653_s22  ;;  %p2175_p0 = scmp.ge.s32.totalorder %s2657_s23, 1  ;;  %s2657_s23 = sphi %s2698_s23, %s16_s23   ;;  %s2653_s22 = sphi %s2696_s22, %s3287_s22   ;;  %s2649_s21 = sphi %s2694_s21, %s3286_s21  }
   0x3   : > { %p37_p1 = scmp.ge.s32.totalorder %s35_s24, 2  ;;  %p263_p2 = scmp.lt.s32.totalorder %s2657_s23, 3 }
   0x5   : > { %s3289_s24 = smov (%p37_p1, %s35_s24), 0  ;;  %p264_p3 = pnand %p2175_p0, %p263_p2 }
   0x6   : > { %vm508_vm0 = vcmask (!%p264_p3), 1043456   ;;  %v2272_v0 = vld [vmem:[%s3274_s1 + $0x14] sm:$0xf] (!%p264_p3)  ;;  %p313_p4 = scmp.lt.s32.totalorder (!%p264_p3), %s2649_s21, 1  ;;  %v2180_v2 = vld [vmem:[%s3274_s1 + $0x4] sm:$0xf] (!%p264_p3) }
   0x7   : > { %267 = sbr.rel (%p264_p3) target bundleno = 337 (0x151), region = 44  ;;  %2592 = vmatprep.subr.msk.bf16.mxu0 (!%p264_p3), %vm508_vm0, %v2272_v0  ;;  %v1273_v1 = vsel (!%p264_p3), %vm508_vm0, %v2272_v0, 0  ;;  %2587 = vmatprep.subr.msk.bf16.mxu1 (!%p264_p3), %vm508_vm0, %v2180_v2  ;;  %v510_v3 = vsel (!%p264_p3), %vm508_vm0, %v2180_v2, 0  ;;  %v357_v4 = vld [vmem:[%s3274_s1] sm:$0xf] (!%p264_p3)  ;;  %vm701_vm1 = vcmask (!%p264_p3), 1042432  }
   0x8   : > { %2466 = vmatpush3.bf16.msra.mxu0 (!%p264_p3), %v1273_v1  ;;  %vm702_vm2 = vcmask (!%p264_p3), 1046532   ;;  %2416 = vmatpush3.bf16.msra.mxu1 (!%p264_p3), %v510_v3  ;;  %v2289_v5 = vld [vmem:[%s3274_s1 + $0x18] sm:$0xf] (!%p264_p3)  ;;  %v2733_v6 = vld [vmem:[%s3274_s1 + $0x8] sm:$0xf] (!%p264_p3)  ;;  %vm495_vm3 = vcmask (!%p264_p3), 64512  }
   0x9   : > { %2588 = vmatprep.subr.msk.bf16.mxu1 (!%p264_p3), %vm508_vm0, %v357_v4  ;;  %2593 = vmatprep.subr.msk.bf16.mxu0 (!%p264_p3), %vm508_vm0, %v2289_v5  ;;  %v2741_v7 = vld [vmem:[%s3274_s1 + $0x1c] sm:$0xf] (!%p264_p3)  ;;  %v2744_v8 = vsel (!%p264_p3), %vm508_vm0, %v357_v4, 0  ;;  %v2747_v9 = vsel (!%p264_p3), %vm508_vm0, %v2289_v5, 0  ;;  %v2752_v10 = vld [vmem:[%s3274_s1 + $0xc] sm:$0xf] (!%p264_p3)  ;;  %vm2765_vm4 = vmor (!%p264_p3), %vm701_vm1, %vm702_vm2 }
   0xa   : > { %v2757_v11 = vld [vmem:[%s3274_s1 + $0x20] sm:$0xf] (!%p264_p3)  ;;  %v2771_v13 = vsel (!%p264_p3), %vm508_vm0, %v2733_v6, 0  ;;  %v2775_v14 = vsel (!%p264_p3), %vm508_vm0, %v2741_v7, 0  ;;  %v2779_v15 = vsel (!%p264_p3), %vm508_vm0, %v2752_v10, 0  ;;  %vm1934_vm8 = vcmask (!%p264_p3), 1041408  }
   0xb   : > { %v2783_v16 = vsel (!%p264_p3), %vm508_vm0, %v2757_v11, 0  ;;  %vm366_vm5 = vsmask.f32 (!%p264_p3), 3328  ;;  %vm367_vm6 = vsmask.f32 (!%p264_p3), 7440  ;;  %vm1921_vm9 = vcmask (!%p264_p3), 31744  }
   0xc   : > { %vm2850_vm7 = vmor (!%p264_p3), %vm366_vm5, %vm367_vm6 }
   0xe   : > { %s3291_s21 = smov (!%p313_p4, %s2649_s21), 1 }
   0xf   : > { %s2597_s11 = smul.u32 80, %s3291_s21  ;;  %s2364_s13 = sshll.u32 %s3291_s21, 6 }
  0x10   : > { %s2598_s27 = smul.u32 288, %s3291_s21  ;;  %s342_s16 = scalar_lea.vmem %s3279_s6, %s2364_s13 }
  0x11   : > { %s2762_s20 = scalar_lea.vmem %s3273_s0, %s2597_s11 }
  0x12   : > { %v2232_v17 = vld [vmem:[%s2762_s20 + $0xc] sm:$0x1]  ;;  %v2234_v18 = vld [vmem:[%s2762_s20 + $0x14] sm:$0x1]  ;;  %v2256_v19 = vld [vmem:[%s2762_s20 + $0x8] sm:$0xe]  ;;  %s3132_s8 = scalar_lea.vmem %s3275_s2, %s2598_s27 }
  0x13   : > { %v986_v20 = vshll.u32 %v2232_v17, 16  ;;  %v1000_v21 = vshll.u32 %v2234_v18, 16  ;;  %v2257_v22 = vld [vmem:[%s2762_s20 + $0x10] sm:$0xe]  ;;  %v2264_v23 = vrot.slane %v2256_v19, 9  ;;  %v1216_v24 = vrot.slane %v2232_v17, 5 }
  0x14   : > { %v2265_v25 = vrot.slane %v2257_v22, 9  ;;  %v1220_v26 = vrot.slane %v2234_v18, 5  ;;  %v2236_v27 = vld [vmem:[%s2762_s20 + $0x1c] sm:$0x1]  ;;  %v2238_v28 = vld [vmem:[%s2762_s20 + $0x24] sm:$0x1] }
  0x15   : > { %v2791_v29 = vrot.slane %v986_v20, 5  ;;  %v2793_v30 = vrot.slane %v1000_v21, 5  ;;  %v1217_v31 = vsel %vm2765_vm4, %v2264_v23, %v1216_v24  ;;  %v1014_v32 = vshll.u32 %v2236_v27, 16  ;;  %v2258_v33 = vld [vmem:[%s2762_s20 + $0x18] sm:$0xe] }
  0x16   : > { %v1221_v34 = vsel %vm2765_vm4, %v2265_v25, %v1220_v26  ;;  %v1028_v35 = vshll.u32 %v2238_v28, 16  ;;  %v2259_v36 = vld [vmem:[%s2762_s20 + $0x20] sm:$0xe]  ;;  %v2266_v37 = vrot.slane %v2258_v33, 9  ;;  %v1224_v38 = vrot.slane %v2236_v27, 5 }
  0x17   : > { %v2273_v39 = vcombine.low %v1217_v31, %v1221_v34  ;;  %v2801_v40 = vrot.slane %v1014_v32, 5  ;;  %v2267_v41 = vrot.slane %v2259_v36, 9  ;;  %v1228_v42 = vrot.slane %v2238_v28, 5  ;;  %v2804_v43 = vld [vmem:[%s2762_s20] sm:$0xf] }
  0x18   : > { %v2806_v44 = vrot.slane %v1028_v35, 5  ;;  %v1225_v45 = vsel %vm2765_vm4, %v2266_v37, %v1224_v38  ;;  %v2811_v46 = vld [vmem:[%s2762_s20 + $0x8] sm:$0xf]  ;;  %v2814_v47 = vld [vmem:[%s2762_s20 + $0x4] sm:$0x1]  ;;  %v370_v48 = vshrl.u32 %v2804_v43, 16 }
  0x19   : > { %2467 = vmatprep.mubr.msk.bf16.mxu0 %vm495_vm3, %v2273_v39  ;;  %v1229_v49 = vsel %vm2765_vm4, %v2267_v41, %v1228_v42  ;;  %v2821_v50 = vld [vmem:[%s2762_s20 + $0xc] sm:$0x1]  ;;  %v373_v51 = vshll.u32 %v2804_v43, 16  ;;  %v379_v52 = vshll.u32 %v2814_v47, 16  ;;  %v384_v53 = vshrl.u32 %v2811_v46, 16 }
  0x1a   : > { %v2274_v54 = vcombine.low %v1225_v45, %v1229_v49  ;;  %v372_v55 = vrot.slane %v370_v48, 4  ;;  %v387_v56 = vshll.u32 %v2811_v46, 16  ;;  %v393_v57 = vshll.u32 %v2821_v50, 16  ;;  %v2829_v58 = vld [vmem:[%s2762_s20 + $0x10] sm:$0xf] }
  0x1b   : > { %v375_v59 = vrot.slane %v373_v51, 5  ;;  %v381_v60 = vrot.slane %v379_v52, 5  ;;  %v386_v61 = vrot.slane %v384_v53, 4  ;;  %v706_v62 = vrot.slane %v2814_v47, 5  ;;  %v2833_v63 = vld [vmem:[%s2762_s20 + $0x18] sm:$0xf] }
  0x1c   : > { %2468 = vmatmul.mubr.msk.bf16.vlgmr.msra.gmra.mrb[0].mxu0 %vm495_vm3, %v2274_v54  ;;  %v389_v0 = vrot.slane %v387_v56, 5  ;;  %v395_v1 = vrot.slane %v393_v57, 5  ;;  %v710_v2 = vrot.slane %v2821_v50, 5  ;;  %v2838_v3 = vld [vmem:[%s2762_s20 + $0x14] sm:$0x1]  ;;  %v398_v4 = vshrl.u32 %v2829_v58, 16 }
  0x1d   : > { %v376_v5 = vor.u32 %v375_v59, %v372_v55  ;;  %v2842_v17 = vld [vmem:[%s2762_s20 + $0x1c] sm:$0x1]  ;;  %v401_v18 = vshll.u32 %v2829_v58, 16  ;;  %v407_v19 = vshll.u32 %v2838_v3, 16  ;;  %v412_v20 = vshrl.u32 %v2833_v63, 16  ;;  %2476 = vmatpush3.bf16.msra.mxu0 %v2747_v9 }
  0x1e   : > { %v390_v22 = vor.u32 %v389_v0, %v386_v61  ;;  %v400_v23 = vrot.slane %v398_v4, 4  ;;  %v415_v24 = vshll.u32 %v2833_v63, 16  ;;  %v421_v25 = vshll.u32 %v2842_v17, 16  ;;  %2594 = vmatprep.subr.msk.bf16.mxu0 %vm508_vm0, %v2741_v7  ;;  %v2859_v31 = vld [vmem:[%s2762_s20 + $0x2c] sm:$0x1] }
  0x1f   : > { %v377_v26 = vrot.slane %v376_v5, 4  ;;  %v403_v27 = vrot.slane %v401_v18, 5  ;;  %v409_v9 = vrot.slane %v407_v19, 5  ;;  %v414_v28 = vrot.slane %v412_v20, 4  ;;  %v2862_v34 = vld [vmem:[%s2762_s20 + $0x34] sm:$0x1] }
  0x20   : > { %v391_v32 = vrot.slane %v390_v22, 4  ;;  %v417_v33 = vrot.slane %v415_v24, 5  ;;  %v2260_v35 = vld [vmem:[%s2762_s20 + $0x28] sm:$0xe]  ;;  %v423_v38 = vrot.slane %v421_v25, 5  ;;  %v1232_v48 = vrot.slane %v2859_v31, 5 }
  0x21   : > { %v382_v36 = vsel %vm2850_vm7, %v377_v26, %v381_v60  ;;  %v404_v37 = vor.u32 %v403_v27, %v400_v23  ;;  %v2261_v7 = vld [vmem:[%s2762_s20 + $0x30] sm:$0xe]  ;;  %v2268_v39 = vrot.slane %v2260_v35, 9  ;;  %v2869_v41 = vld [vmem:[%s2762_s20 + $0x3c] sm:$0x1]  ;;  %v1236_v55 = vrot.slane %v2862_v34, 5 }
  0x22   : > { %v396_v42 = vsel %vm2850_vm7, %v391_v32, %v395_v1  ;;  %v418_v45 = vor.u32 %v417_v33, %v414_v28  ;;  %v2269_v49 = vrot.slane %v2261_v7, 9  ;;  %v2875_v51 = vld [vmem:[%s2762_s20 + $0x44] sm:$0x1]  ;;  %v2262_v52 = vld [vmem:[%s2762_s20 + $0x38] sm:$0xe]  ;;  %v1240_v61 = vrot.slane %v2869_v41, 5 }
  0x23   : > { %v2181_v53 = vcombine.low %v382_v36, %v396_v42  ;;  %v405_v54 = vrot.slane %v404_v37, 4  ;;  %v2263_v56 = vld [vmem:[%s2762_s20 + $0x40] sm:$0xe]  ;;  %v2270_v57 = vrot.slane %v2262_v52, 9  ;;  %v1233_v60 = vsel %vm2765_vm4, %v2268_v39, %v1232_v48  ;;  %v2893_v19 = vld [vmem:[%s2762_s20 + $0x28] sm:$0xf] }
  0x24   : > { %v419_v59 = vrot.slane %v418_v45, 4  ;;  %v2271_v0 = vrot.slane %v2263_v56, 9  ;;  %v2884_v1 = vld [vmem:[%s2762_s20 + $0x20] sm:$0xf]  ;;  %v1237_v5 = vsel %vm2765_vm4, %v2269_v49, %v1236_v55  ;;  %v1244_v18 = vrot.slane %v2875_v51, 5 }
  0x25   : > { %2417 = vmatprep.mubr.msk.bf16.mxu1 %vm495_vm3, %v2181_v53  ;;  %v410_v4 = vsel %vm2850_vm7, %v405_v54, %v409_v9  ;;  %v2896_v20 = vld [vmem:[%s2762_s20 + $0x24] sm:$0x1]  ;;  %v426_v22 = vshrl.u32 %v2884_v1, 16  ;;  %v2275_v24 = vcombine.low %v1233_v60, %v1237_v5  ;;  %v1241_v25 = vsel %vm2765_vm4, %v2270_v57, %v1240_v61  ;;  %v2904_v26 = vld [vmem:[%s2762_s20 + $0x2c] sm:$0x1] }
  0x26   : > { %v424_v23 = vsel %vm2850_vm7, %v419_v59, %v423_v38  ;;  %v429_v27 = vshll.u32 %v2884_v1, 16  ;;  %v2908_v9 = vld [vmem:[%s2762_s20 + $0x30] sm:$0xf]  ;;  %v1245_v32 = vsel %vm2765_vm4, %v2271_v0, %v1244_v18  ;;  %v435_v35 = vshll.u32 %v2896_v20, 16  ;;  %v2914_v36 = vld [vmem:[%s2762_s20 + $0x38] sm:$0xf] }
  0x27   : > { %v2182_v28 = vcombine.low %v410_v4, %v424_v23  ;;  %v428_v33 = vrot.slane %v426_v22, 4  ;;  %v2917_v37 = vld [vmem:[%s2762_s20 + $0x34] sm:$0x1]  ;;  %2471 = vmatprep.mubr.msk.bf16.mxu0 %vm495_vm3, %v2275_v24  ;;  %v2276_v38 = vcombine.low %v1241_v25, %v1245_v32  ;;  %v440_v39 = vshrl.u32 %v2893_v19, 16  ;;  %v2923_v45 = vld [vmem:[%s2762_s20 + $0x3c] sm:$0x1] }
  0x28   : > { %v431_v7 = vrot.slane %v429_v27, 5  ;;  %v443_v42 = vshll.u32 %v2893_v19, 16  ;;  %v437_v48 = vrot.slane %v435_v35, 5  ;;  %v449_v49 = vshll.u32 %v2904_v26, 16  ;;  %v2623_v4 = vld [vmem:[%s2762_s20 + $0x10] ss:$8 sps:$4 sm:$0xff]  }
  0x29   : > { %2418 = vmatmul.mubr.msk.bf16.vlgmr.msra.gmra.mrb[0].mxu1 %vm495_vm3, %v2182_v28  ;;  %v454_v52 = vshrl.u32 %v2908_v9, 16  ;;  %v457_v53 = vshll.u32 %v2908_v9, 16  ;;  %2472 = vmatmul.mubr.msk.bf16.gmra.mrb[4].mxu0 %vm495_vm3, %v2276_v38  ;;  %v442_v55 = vrot.slane %v440_v39, 4  ;;  %v463_v57 = vshll.u32 %v2917_v37, 16  ;;  %v2624_v27 = vld [vmem:[%s2762_s20 + $0x20] ss:$8 sps:$4 sm:$0xff]  }
  0x2a   : > { %2426 = vmatpush3.bf16.msra.mxu1 %v2744_v8  ;;  %v432_v54 = vor.u32 %v431_v7, %v428_v33  ;;  %v445_v56 = vrot.slane %v443_v42, 5  ;;  %v451_v59 = vrot.slane %v449_v49, 5  ;;  %v468_v0 = vshrl.u32 %v2914_v36, 16  ;;  %2477 = vmatprep.mubr.msk.bf16.mxu0 %vm495_vm3, %v2623_v4 }
  0x2b   : > { %v456_v60 = vrot.slane %v454_v52, 4  ;;  %v459_v61 = vrot.slane %v457_v53, 5  ;;  %2589 = vmatprep.subr.msk.bf16.mxu1 %vm508_vm0, %v2733_v6  ;;  %v465_v8 = vrot.slane %v463_v57, 5  ;;  %v471_v22 = vshll.u32 %v2914_v36, 16  ;;  %v2627_v52 = vld [vmem:[%s2762_s20 + $0x30] ss:$8 sps:$4 sm:$0xff]  }
  0x2c   : > { %v433_v5 = vrot.slane %v432_v54, 4  ;;  %v446_v18 = vor.u32 %v445_v56, %v442_v55  ;;  %v470_v24 = vrot.slane %v468_v0, 4  ;;  %v477_v25 = vshll.u32 %v2923_v45, 16  ;;  %v2298_v53 = vld [vmem:[%s2762_s20 + $0x10] sm:$0xf] }
  0x2d   : > { %v460_v23 = vor.u32 %v459_v61, %v456_v60  ;;  %v473_v6 = vrot.slane %v471_v22, 5  ;;  %v714_v33 = vrot.slane %v2838_v3, 5  ;;  %v718_v35 = vrot.slane %v2842_v17, 5 }
  0x2e   : > { %v438_v28 = vsel %vm2850_vm7, %v433_v5, %v437_v48  ;;  %v447_v32 = vrot.slane %v446_v18, 4  ;;  %v479_v7 = vrot.slane %v477_v25, 5  ;;  %v2189_v49 = vcombine.low %v2804_v43, %v2811_v46  ;;  %v2300_v43 = vld [vmem:[%s2762_s20 + $0x18] sm:$0xf]  ;;  %v2963_v46 = vld [vmem:[%s2762_s20 + $0x1c] sm:$0x1] }
  0x2f   : > { %v461_v38 = vrot.slane %v460_v23, 4  ;;  %v474_v42 = vor.u32 %v473_v6, %v470_v24  ;;  %v2190_v48 = vcombine.low %v2829_v58, %v2833_v63  ;;  %v1487_v61 = vshrl.u32 %v2298_v53, 16  ;;  %v2302_v5 = vld [vmem:[%s2762_s20 + $0x20] sm:$0xf]  ;;  %v2972_v23 = vld [vmem:[%s2762_s20 + $0x24] sm:$0x1] }
  0x30   : > { %v452_v39 = vsel %vm2850_vm7, %v447_v32, %v451_v59  ;;  %v2959_v59 = vld [vmem:[%s2762_s20 + $0x14] sm:$0x1]  ;;  %v1490_v0 = vshll.u32 %v2298_v53, 16  ;;  %v1501_v18 = vshrl.u32 %v2300_v43, 16  ;;  %v1510_v22 = vshll.u32 %v2963_v46, 16 }
  0x31   : > { %v2183_v54 = vcombine.low %v438_v28, %v452_v39  ;;  %v466_v55 = vsel %vm2850_vm7, %v461_v38, %v465_v8  ;;  %v475_v60 = vrot.slane %v474_v42, 4  ;;  %2478 = vmatmul.mubr.msk.bf16.vlgmr.msra.gmra.mrb[0].mxu0 %vm495_vm3, %v2624_v27  ;;  %v1496_v4 = vshll.u32 %v2959_v59, 16  ;;  %v2628_v27 = vld [vmem:[%s2762_s20 + $0x40] ss:$8 sps:$4 sm:$0xff]  }
  0x32   : > { %2486 = vmatpush3.bf16.msra.mxu0 %v2775_v14  ;;  %v1504_v8 = vshll.u32 %v2300_v43, 16  ;;  %v1515_v24 = vshrl.u32 %v2302_v5, 16  ;;  %2481 = vmatprep.mubr.msk.bf16.mxu0 %vm495_vm3, %v2627_v52  ;;  %v1489_v28 = vrot.slane %v1487_v61, 4  ;;  %v1492_v32 = vrot.slane %v1490_v0, 5  ;;  %v2304_v38 = vld [vmem:[%s2762_s20 + $0x28] sm:$0xf] }
  0x33   : > { %2421 = vmatprep.mubr.msk.bf16.mxu1 %vm495_vm3, %v2183_v54  ;;  %v480_v25 = vsel %vm2850_vm7, %v475_v60, %v479_v7  ;;  %v1498_v6 = vrot.slane %v1496_v4, 5  ;;  %2595 = vmatprep.subr.msk.bf16.mxu0 %vm508_vm0, %v2757_v11  ;;  %v1503_v39 = vrot.slane %v1501_v18, 4  ;;  %v1512_v53 = vrot.slane %v1510_v22, 5  ;;  %v2982_v54 = vld [vmem:[%s2762_s20 + $0x2c] sm:$0x1] }
  0x34   : > { %v2184_v14 = vcombine.low %v466_v55, %v480_v25  ;;  %v1506_v42 = vrot.slane %v1504_v8, 5  ;;  %v1493_v43 = vor.u32 %v1492_v32, %v1489_v28  ;;  %v1517_v7 = vrot.slane %v1515_v24, 4  ;;  %v677_v61 = vld [vmem:[%s2762_s20] sm:$0xe]  ;;  %v678_v18 = vld [vmem:[%s2762_s20 + $0x8] sm:$0xe] }
  0x35   : > { %v1518_v52 = vshll.u32 %v2302_v5, 16  ;;  %v1524_v60 = vshll.u32 %v2972_v23, 16  ;;  %v1529_v4 = vshrl.u32 %v2304_v38, 16  ;;  %v1532_v11 = vshll.u32 %v2304_v38, 16  ;;  %v679_v5 = vld [vmem:[%s2762_s20 + $0x10] sm:$0xe] }
  0x36   : > { %2422 = vmatmul.mubr.msk.bf16.gmra.mrb[4].mxu1 %vm495_vm3, %v2184_v14  ;;  %v1507_v0 = vor.u32 %v1506_v42, %v1503_v39  ;;  %v1538_v55 = vshll.u32 %v2982_v54, 16  ;;  %v1494_v8 = vrot.slane %v1493_v43, 4  ;;  %v2197_v24 = vrot.slane %v677_v61, 9  ;;  %v680_v14 = vld [vmem:[%s2762_s20 + $0x18] sm:$0xe] }
  0x37   : > { %2427 = vmatprep.mubr.msk.bf16.mxu1 %vm495_vm3, %v2189_v49  ;;  %v1520_v22 = vrot.slane %v1518_v52, 5  ;;  %v1526_v25 = vrot.slane %v1524_v60, 5  ;;  %v1531_v32 = vrot.slane %v1529_v4, 4  ;;  %v1534_v57 = vrot.slane %v1532_v11, 5  ;;  %v2306_v43 = vld [vmem:[%s2762_s20 + $0x30] sm:$0xf] }
  0x38   : > { %v1508_v28 = vrot.slane %v1507_v0, 4  ;;  %v1540_v56 = vrot.slane %v1538_v55, 5  ;;  %v1499_v38 = vsel %vm2850_vm7, %v1494_v8, %v1498_v6  ;;  %v2999_v39 = vsel %vm2765_vm4, %v2197_v24, %v706_v62  ;;  %v3011_v62 = vld [vmem:[%s2762_s20 + $0x34] sm:$0x1]  ;;  %v2308_v6 = vld [vmem:[%s2762_s20 + $0x38] sm:$0xf] }
  0x39   : > { %2482 = vmatmul.mubr.msk.bf16.gmra.mrb[4].mxu0 %vm495_vm3, %v2628_v27  ;;  %v1521_v49 = vor.u32 %v1520_v22, %v1517_v7  ;;  %v2198_v42 = vrot.slane %v678_v18, 9  ;;  %v1535_v60 = vor.u32 %v1534_v57, %v1531_v32  ;;  %v2199_v61 = vrot.slane %v679_v5, 9  ;;  %v2310_v55 = vld [vmem:[%s2762_s20 + $0x40] sm:$0xf]  ;;  %v3038_v22 = vld [vmem:[%s2762_s20 + $0x44] sm:$0x1] }
  0x3a   : > { %v1513_v52 = vsel %vm2850_vm7, %v1508_v28, %v1512_v53  ;;  %v2200_v27 = vrot.slane %v680_v14, 9  ;;  %v1543_v7 = vshrl.u32 %v2306_v43, 16  ;;  %v1546_v8 = vshll.u32 %v2306_v43, 16  ;;  %v2312_v5 = vld [vmem:[%s2762_s20 + $0x48] sm:$0xf] }
  0x3b   : > { %v2315_v0 = vcombine.low %v1499_v38, %v1513_v52  ;;  %v1522_v4 = vrot.slane %v1521_v49, 4  ;;  %v3008_v47 = vsel %vm2765_vm4, %v2198_v42, %v710_v2  ;;  %v1536_v11 = vrot.slane %v1535_v60, 4  ;;  %v3029_v2 = vld [vmem:[%s2762_s20 + $0x3c] sm:$0x1]  ;;  %v3051_v28 = vld [vmem:[%s3278_s5] sm:$0x3] }
  0x3c   : > { %v2206_v53 = vcombine.low %v2999_v39, %v3008_v47  ;;  %v3020_v57 = vsel %vm2765_vm4, %v2199_v61, %v714_v33  ;;  %v3026_v50 = vsel %vm2765_vm4, %v2200_v27, %v718_v35  ;;  %v1545_v33 = vrot.slane %v1543_v7, 4  ;;  %v3060_v32 = vld [vmem:[%s2762_s20 + $0x4c] sm:$0x1]  ;;  %v681_v43 = vld [vmem:[%s2762_s20 + $0x20] sm:$0xe] }
  0x3d   : > { %2487 = vmatprep.mubr.msk.bf16.mxu0 %vm495_vm3, %v2315_v0  ;;  %v1527_v18 = vsel %vm2850_vm7, %v1522_v4, %v1526_v25  ;;  %v2207_v3 = vcombine.low %v3020_v57, %v3026_v50  ;;  %v1541_v17 = vsel %vm2850_vm7, %v1536_v11, %v1540_v56  ;;  %v1552_v35 = vshll.u32 %v3011_v62, 16  ;;  %v682_v61 = vld [vmem:[%s2762_s20 + $0x28] sm:$0xe]  ;;  %v2325_v47 = vld [vmem:[%s2762_s20 + $0x20] sm:$0xe] }
  0x3e   : > { %2428 = vmatmul.mubr.msk.bf16.vlgmr.msra.gmra.mrb[0].mxu1 %vm495_vm3, %v2190_v48  ;;  %v1557_v24 = vshrl.u32 %v2308_v6, 16  ;;  %v1560_v25 = vshll.u32 %v2308_v6, 16  ;;  %v3284_v58 = vcombine.low %v2884_v1, %v2893_v19  ;;  %v2316_v63 = vcombine.low %v1527_v18, %v1541_v17  ;;  %v683_v6 = vld [vmem:[%s2762_s20 + $0x30] sm:$0xe] }
  0x3f   : > { %2436 = vmatpush3.bf16.msra.mxu1 %v2771_v13  ;;  %v1548_v48 = vrot.slane %v1546_v8, 5  ;;  %v1566_v56 = vshll.u32 %v3029_v2, 16  ;;  %v1571_v14 = vshrl.u32 %v2310_v55, 16  ;;  %v1554_v38 = vrot.slane %v1552_v35, 5  ;;  %v684_v8 = vld [vmem:[%s2762_s20 + $0x38] sm:$0xe] }
  0x40   : > { %2431 = vmatprep.mubr.msk.bf16.mxu1 %vm495_vm3, %v3284_v58  ;;  %2590 = vmatprep.subr.msk.bf16.mxu1 %vm508_vm0, %v2752_v10  ;;  %v1559_v49 = vrot.slane %v1557_v24, 4  ;;  %v1562_v13 = vrot.slane %v1560_v25, 5  ;;  %v1574_v42 = vshll.u32 %v2310_v55, 16  ;;  %v1580_v60 = vshll.u32 %v3038_v22, 16 }
  0x41   : > { %2488 = vmatmul.mubr.msk.bf16.vlgmr.msra.gmra.mrb[0].mxu0 %vm495_vm3, %v2316_v63  ;;  %v1549_v1 = vor.u32 %v1548_v48, %v1545_v33  ;;  %v1568_v19 = vrot.slane %v1566_v56, 5  ;;  %v1573_v52 = vrot.slane %v1571_v14, 4  ;;  %v1585_v10 = vshrl.u32 %v2312_v5, 16 }
  0x42   : > { %2496 = vmatpush3.bf16.msra.mxu0 %v2783_v16  ;;  %v1563_v27 = vor.u32 %v1562_v13, %v1559_v49  ;;  %v1576_v0 = vrot.slane %v1574_v42, 5  ;;  %v1588_v4 = vshll.u32 %v2312_v5, 16  ;;  %v1582_v11 = vrot.slane %v1580_v60, 5  ;;  %v2323_v49 = vld [vmem:[%s2762_s20 + $0x10] sm:$0xe] }
  0x43   : > { %v1550_v7 = vrot.slane %v1549_v1, 4  ;;  %v1594_v55 = vshll.u32 %v3060_v32, 16  ;;  %v2201_v18 = vrot.slane %v681_v43, 9  ;;  %2596 = vmatprep.subr.msk.bf16.mxu0 %vm1934_vm8, %v3051_v28  ;;  %v1587_v35 = vrot.slane %v1585_v10, 4  ;;  %v2324_v42 = vld [vmem:[%s2762_s20 + $0x18] sm:$0xe] }
  0x44   : > { %v1564_v33 = vrot.slane %v1563_v27, 4  ;;  %v1577_v17 = vor.u32 %v1576_v0, %v1573_v52  ;;  %v1590_v16 = vrot.slane %v1588_v4, 5  ;;  %v722_v5 = vrot.slane %v2896_v20, 5  ;;  %v2327_v27 = vld [vmem:[%s2762_s20 + $0x30] sm:$0xe] }
  0x45   : > { %v1555_v24 = vsel %vm2850_vm7, %v1550_v7, %v1554_v38  ;;  %v1596_v25 = vrot.slane %v1594_v55, 5  ;;  %v2202_v58 = vrot.slane %v682_v61, 9  ;;  %v3285_v63 = vcombine.low %v2908_v9, %v2914_v36  ;;  %v2328_v0 = vld [vmem:[%s2762_s20 + $0x38] sm:$0xe] }
  0x46   : > { %v1569_v48 = vsel %vm2850_vm7, %v1564_v33, %v1568_v19  ;;  %v1578_v56 = vrot.slane %v1577_v17, 4  ;;  %v1591_v14 = vor.u32 %v1590_v16, %v1587_v35  ;;  %v726_v38 = vrot.slane %v2904_v26, 5  ;;  %v2247_v19 = vld [vmem:[%s3274_s1 + $0x10] sm:$0xf] }
  0x47   : > { %2432 = vmatmul.mubr.msk.bf16.gmra.mrb[4].mxu1 %vm495_vm3, %v3285_v63  ;;  %v2317_v20 = vcombine.low %v1555_v24, %v1569_v48  ;;  %v723_v9 = vsel %vm2765_vm4, %v2201_v18, %v722_v5  ;;  %v2203_v36 = vrot.slane %v683_v6, 9  ;;  %v730_v13 = vrot.slane %v2917_v37, 5 }
  0x48   : > { %2437 = vmatprep.mubr.msk.bf16.mxu1 %vm495_vm3, %v2206_v53  ;;  %v1583_v43 = vsel %vm2850_vm7, %v1578_v56, %v1582_v11  ;;  %v1592_v26 = vrot.slane %v1591_v14, 4  ;;  %v727_v1 = vsel %vm2765_vm4, %v2202_v58, %v726_v38  ;;  %v2204_v39 = vrot.slane %v684_v8, 9  ;;  %v2326_v53 = vld [vmem:[%s2762_s20 + $0x28] sm:$0xe]  ;;  %v2329_v8 = vld [vmem:[%s2762_s20 + $0x40] sm:$0xe] }
  0x49   : > { %2491 = vmatprep.mubr.msk.bf16.mxu0 %vm495_vm3, %v2317_v20  ;;  %v2208_v52 = vcombine.low %v723_v9, %v727_v1  ;;  %v3106_v37 = vsel %vm2765_vm4, %v2203_v36, %v730_v13  ;;  %v734_v60 = vrot.slane %v2923_v45, 5  ;;  %v2331_v61 = vrot.slane %v2323_v49, 9  ;;  %v2350_v49 = vld [vmem:[%s3132_s8 + $0xe8] ss:$8 sps:$4 sm:$0xff]  }
  0x4a   : > { %v1597_v10 = vsel %vm2850_vm7, %v1592_v26, %v1596_v25  ;;  %v1726_v4 = vrot.slane %v2959_v59, 5  ;;  %v2332_v6 = vrot.slane %v2324_v42, 9  ;;  %v1730_v7 = vrot.slane %v2963_v46, 5  ;;  %v2330_v25 = vld [vmem:[%s2762_s20 + $0x48] sm:$0xe] }
  0x4b   : > { %v2318_v11 = vcombine.low %v1583_v43, %v1597_v10  ;;  %v3117_v55 = vsel %vm2765_vm4, %v2204_v39, %v734_v60  ;;  %v2333_v18 = vrot.slane %v2325_v47, 9  ;;  %v1734_v45 = vrot.slane %v2972_v23, 5  ;;  %v2231_v20 = vld [vmem:[%s2762_s20 + $0x8] sm:$0xf]  ;;  %v2233_v13 = vld [vmem:[%s2762_s20 + $0x10] sm:$0xf] }
  0x4c   : > { %v2209_v33 = vcombine.low %v3106_v37, %v3117_v55  ;;  %v1727_v17 = vsel %vm2765_vm4, %v2331_v61, %v1726_v4  ;;  %v1731_v59 = vsel %vm2765_vm4, %v2332_v6, %v1730_v7  ;;  %v2334_v46 = vrot.slane %v2326_v53, 9  ;;  %v2631_v39 = vld [vmem:[%s2762_s20 + $0x8] ss:$8 sps:$4 sm:$0xff]  }
  0x4d   : > { %2492 = vmatmul.mubr.msk.bf16.gmra.mrb[4].mxu0 %vm495_vm3, %v2318_v11  ;;  %v2340_v23 = vcombine.low %v1727_v17, %v1731_v59  ;;  %v1735_v35 = vsel %vm2765_vm4, %v2333_v18, %v1734_v45  ;;  %v1738_v16 = vrot.slane %v2982_v54, 5  ;;  %v3139_v24 = vsel %vm508_vm0, %v2247_v19, 0  ;;  %v3152_v54 = vld [vmem:[%s3276_s3] ss:$0 sm:$0xff] }
  0x4e   : > { %v1936_v5 = vsel %vm1934_vm8, %v3051_v28, 0  ;;  %v2335_v58 = vrot.slane %v2327_v27, 9  ;;  %v1742_v63 = vrot.slane %v3011_v62, 5  ;;  %v2336_v48 = vrot.slane %v2328_v0, 9  ;;  %v2348_v28 = vld [vmem:[%s3132_s8 + $0xd8] ss:$8 sps:$4 sm:$0xff]  }
  0x4f   : > { %2438 = vmatmul.mubr.msk.bf16.vlgmr.msra.gmra.mrb[0].mxu1 %vm495_vm3, %v2207_v3  ;;  %v1739_v57 = vsel %vm2765_vm4, %v2334_v46, %v1738_v16  ;;  %v1746_v50 = vrot.slane %v3029_v2, 5  ;;  %v2337_v3 = vrot.slane %v2329_v8, 9  ;;  %v1750_v62 = vrot.slane %v3038_v22, 5  ;;  %2497 = vmatprep.mubr.msk.bf16.mxu0 %vm495_vm3, %v2340_v23  ;;  %v2235_v27 = vld [vmem:[%s2762_s20 + $0x18] sm:$0xf] }
  0x50   : > { %2446 = vmatpush3.bf16.msra.mxu1 %v2779_v15  ;;  %2441 = vmatprep.mubr.msk.bf16.mxu1 %vm495_vm3, %v2208_v52  ;;  %v2341_v56 = vcombine.low %v1735_v35, %v1739_v57  ;;  %v1743_v15 = vsel %vm2765_vm4, %v2335_v58, %v1742_v63  ;;  %v2338_v14 = vrot.slane %v2330_v25, 9  ;;  %v1754_v38 = vrot.slane %v3060_v32, 5  ;;  %v3180_v32 = vld [vmem:[%s3277_s4] ss:$0 sm:$0xff]  ;;  %v2354_v57 = vld [vmem:[%s3132_s8 + $0x108] ss:$8 sps:$4 sm:$0xff]  }
  0x51   : > { %2591 = vmatprep.subr.msk.bf16.mxu1 %vm508_vm0, %v2247_v19  ;;  %v1747_v2 = vsel %vm2765_vm4, %v2336_v48, %v1746_v50  ;;  %v3172_v22 = vsel %vm2765_vm4, %v2337_v3, %v1750_v62  ;;  %v1872_v9 = vunpack.c.l.bf16 %v2348_v28  ;;  %v1873_v36 = vunpack.c.h.bf16 %v2348_v28  ;;  %v2237_v45 = vld [vmem:[%s2762_s20 + $0x20] sm:$0xf] }
  0x52   : > { %v2342_v42 = vcombine.low %v1743_v15, %v1747_v2  ;;  %v1755_v43 = vsel %vm2765_vm4, %v2338_v14, %v1754_v38  ;;  %v1874_v26 = vunpack.c.l.bf16 %v2350_v49  ;;  %v1875_v1 = vunpack.c.h.bf16 %v2350_v49  ;;  %v2352_v25 = vld [vmem:[%s3132_s8 + $0xf8] ss:$8 sps:$4 sm:$0xff]   ;;  %v2633_v15 = vld [vmem:[%s2762_s20 + $0x28] ss:$8 sps:$4 sm:$0xff]  }
  0x53   : > { %v2343_v47 = vcombine.low %v3172_v22, %v1755_v43  ;;  %v1886_v53 = vmul.f32 %v3152_v54, %v1872_v9  ;;  %v1887_v19 = vmul.f32 %v3152_v54, %v1873_v36  ;;  %v977_v52 = vshrl.u32 %v2231_v20, 16  ;;  %v2632_v50 = vld [vmem:[%s2762_s20 + $0x18] ss:$8 sps:$4 sm:$0xff]  }
  0x54   : > { %v1888_v37 = vmul.f32 %v3152_v54, %v1874_v26  ;;  %v1889_v12 = vmul.f32 %v3152_v54, %v1875_v1  ;;  %v980_v60 = vshll.u32 %v2231_v20, 16  ;;  %v991_v61 = vshrl.u32 %v2233_v13, 16 }
  0x55   : > { %2498 = vmatmul.mubr.msk.bf16.vlgmr.msra.gmra.mrb[0].mxu0 %vm495_vm3, %v2341_v56  ;;  %v1900_v0 = vadd.f32 %v3180_v32, %v1886_v53  ;;  %v1901_v10 = vadd.f32 %v3180_v32, %v1887_v19  ;;  %v979_v4 = vrot.slane %v977_v52, 4  ;;  %v994_v6 = vshll.u32 %v2233_v13, 16  ;;  %v2239_v13 = vld [vmem:[%s2762_s20 + $0x28] sm:$0xf] }
  0x56   : > { %2506 = vmatpush3.bf16.msra.mxu0 %v1936_v5  ;;  %v1902_v7 = vadd.f32 %v3180_v32, %v1888_v37  ;;  %v1903_v11 = vadd.f32 %v3180_v32, %v1889_v12  ;;  %v982_v55 = vrot.slane %v980_v60, 5  ;;  %v993_v18 = vrot.slane %v991_v61, 4  ;;  %2501 = vmatprep.mubr.msk.bf16.mxu0 %vm495_vm3, %v2342_v42 }
  0x57   : > { %2442 = vmatmul.mubr.msk.bf16.gmra.mrb[4].mxu1 %vm495_vm3, %v2209_v33  ;;  %v1908_v8 = vmax.f32 %v1900_v0, 0.0  ;;  %v1909_v17 = vmax.f32 %v1901_v10, 0.0  ;;  %v996_v59 = vrot.slane %v994_v6, 5  ;;  %v1005_v46 = vshrl.u32 %v2235_v27, 16 }
  0x58   : > { %2447 = vmatprep.mubr.msk.bf16.mxu1 %vm495_vm3, %v2631_v39  ;;  %v1910_v33 = vmax.f32 %v1902_v7, 0.0  ;;  %v1911_v23 = vmax.f32 %v1903_v11, 0.0  ;;  %v983_v35 = vor.u32 %v982_v55, %v979_v4  ;;  %v1008_v16 = vshll.u32 %v2235_v27, 16  ;;  %v2241_v27 = vld [vmem:[%s2762_s20 + $0x30] sm:$0xf] }
  0x59   : > { %v1916_v5 = vpack.c.bf16 %v1909_v17, %v1908_v8  ;;  %v997_v58 = vor.u32 %v996_v59, %v993_v18  ;;  %v1007_v63 = vrot.slane %v1005_v46, 4  ;;  %v1019_v48 = vshrl.u32 %v2237_v45, 16  ;;  %v2634_v7 = vld [vmem:[%s2762_s20 + $0x38] ss:$8 sps:$4 sm:$0xff]  }
  0x5a   : > { %v1917_v3 = vpack.c.bf16 %v1911_v23, %v1910_v33  ;;  %v984_v62 = vrot.slane %v983_v35, 4  ;;  %v1010_v28 = vrot.slane %v1008_v16, 5  ;;  %v1022_v56 = vshll.u32 %v2237_v45, 16  ;;  %v2245_v23 = vld [vmem:[%s2762_s20 + $0x40] sm:$0xf] }
  0x5b   : > { %v998_v14 = vrot.slane %v997_v58, 4  ;;  %v1021_v38 = vrot.slane %v1019_v48, 4  ;;  %v1876_v49 = vunpack.c.l.bf16 %v2352_v25  ;;  %v1877_v20 = vunpack.c.h.bf16 %v2352_v25 }
  0x5c   : > { %v989_v2 = vsel %vm2850_vm7, %v984_v62, %v2791_v29  ;;  %v1011_v22 = vor.u32 %v1010_v28, %v1007_v63  ;;  %v1024_v9 = vrot.slane %v1022_v56, 5  ;;  %v1878_v36 = vunpack.c.l.bf16 %v2354_v57 }
  0x5d   : > { %2502 = vmatmul.mubr.msk.bf16.gmra.mrb[4].mxu0 %vm495_vm3, %v2343_v47  ;;  %v1003_v42 = vsel %vm2850_vm7, %v998_v14, %v2793_v30  ;;  %v1890_v43 = vmul.f32 %v3152_v54, %v1876_v49  ;;  %v1891_v26 = vmul.f32 %v3152_v54, %v1877_v20  ;;  %v1879_v1 = vunpack.c.h.bf16 %v2354_v57 }
  0x5e   : > { %2507 = vmatprep.mubr.msk.bf16.mxu0 %vm1921_vm9, %v1916_v5  ;;  %v2248_v29 = vcombine.low %v989_v2, %v1003_v42  ;;  %v1012_v39 = vrot.slane %v1011_v22, 4  ;;  %v1025_v53 = vor.u32 %v1024_v9, %v1021_v38  ;;  %v1892_v19 = vmul.f32 %v3152_v54, %v1878_v36 }
  0x5f   : > { %2448 = vmatmul.mubr.msk.bf16.vlgmr.msra.gmra.mrb[0].mxu1 %vm495_vm3, %v2632_v50  ;;  %v1904_v30 = vadd.f32 %v3180_v32, %v1890_v43  ;;  %v1905_v47 = vadd.f32 %v3180_v32, %v1891_v26  ;;  %v1893_v52 = vmul.f32 %v3152_v54, %v1879_v1  ;;  %v1033_v37 = vshrl.u32 %v2239_v13, 16 }
  0x60   : > { %2456 = vmatpush3.bf16.msra.mxu1 %v3139_v24  ;;  %2451 = vmatprep.mubr.msk.bf16.mxu1 %vm495_vm3, %v2633_v15  ;;  %v1017_v12 = vsel %vm2850_vm7, %v1012_v39, %v2801_v40  ;;  %v1026_v60 = vrot.slane %v1025_v53, 4  ;;  %v1906_v61 = vadd.f32 %v3180_v32, %v1892_v19  ;;  %v1036_v0 = vshll.u32 %v2239_v13, 16  ;;  %v2243_v40 = vld [vmem:[%s2762_s20 + $0x38] sm:$0xf] }
  0x61   : > { %v1912_v24 = vmax.f32 %v1904_v30, 0.0  ;;  %v1913_v10 = vmax.f32 %v1905_v47, 0.0  ;;  %v1907_v4 = vadd.f32 %v3180_v32, %v1893_v52  ;;  %v1035_v6 = vrot.slane %v1033_v37, 4 }
  0x62   : > { %v1031_v54 = vsel %vm2850_vm7, %v1026_v60, %v2806_v44  ;;  %v1038_v11 = vrot.slane %v1036_v0, 5  ;;  %v1042_v55 = vshll.u32 %v2859_v31, 16  ;;  %v1047_v8 = vshrl.u32 %v2241_v27, 16 }
  0x63   : > { %v2249_v18 = vcombine.low %v1017_v12, %v1031_v54  ;;  %v1918_v45 = vpack.c.bf16 %v1913_v10, %v1912_v24  ;;  %v1914_v17 = vmax.f32 %v1906_v61, 0.0  ;;  %v1050_v46 = vshll.u32 %v2241_v27, 16 }
  0x64   : > { %v1039_v59 = vor.u32 %v1038_v11, %v1035_v6  ;;  %v1056_v33 = vshll.u32 %v2862_v34, 16  ;;  %v1915_v32 = vmax.f32 %v1907_v4, 0.0  ;;  %v1049_v35 = vrot.slane %v1047_v8, 4 }
  0x65   : > { %2508 = vmatmul.mubr.msk.bf16.vlgmr.msra.gmra.mrb[0].mxu0 %vm1921_vm9, %v1917_v3  ;;  %v1061_v16 = vshrl.u32 %v2243_v40, 16  ;;  %v1064_v25 = vshll.u32 %v2243_v40, 16  ;;  %v1044_v31 = vrot.slane %v1042_v55, 5  ;;  %v1052_v5 = vrot.slane %v1050_v46, 5 }
  0x66   : > { %2511 = vmatprep.mubr.msk.bf16.mxu0 %vm1921_vm9, %v1918_v45  ;;  %v1040_v44 = vrot.slane %v1039_v59, 4  ;;  %v1070_v58 = vshll.u32 %v2869_v41, 16  ;;  %v1075_v48 = vshrl.u32 %v2245_v23, 16  ;;  %v1078_v57 = vshll.u32 %v2245_v23, 16 }
  0x67   : > { %2452 = vmatmul.mubr.msk.bf16.gmra.mrb[4].mxu1 %vm495_vm3, %v2634_v7  ;;  %v1063_v63 = vrot.slane %v1061_v16, 4  ;;  %v1066_v34 = vrot.slane %v1064_v25, 5  ;;  %v1053_v50 = vor.u32 %v1052_v5, %v1049_v35  ;;  %v1058_v3 = vrot.slane %v1056_v33, 5 }
  0x68   : > { %2457 = vmatprep.mubr.msk.bf16.mxu1 %vm495_vm3, %v2248_v29  ;;  %v1084_v62 = vshll.u32 %v2875_v51, 16  ;;  %v1919_v28 = vpack.c.bf16 %v1915_v32, %v1914_v17  ;;  %v1077_v15 = vrot.slane %v1075_v48, 4  ;;  %v1080_v14 = vrot.slane %v1078_v57, 5 }
  0x69   : > { %v1067_v56 = vor.u32 %v1066_v34, %v1063_v63  ;;  %v1045_v38 = vsel %vm2850_vm7, %v1040_v44, %v1044_v31  ;;  %v1054_v49 = vrot.slane %v1053_v50, 4  ;;  %v1072_v41 = vrot.slane %v1070_v58, 5 }
  0x6a   : > { %v1081_v2 = vor.u32 %v1080_v14, %v1077_v15  ;;  %v1086_v22 = vrot.slane %v1084_v62, 5 }
  0x6b   : > { %v1068_v20 = vrot.slane %v1067_v56, 4  ;;  %v1059_v9 = vsel %vm2850_vm7, %v1054_v49, %v1058_v3 }
  0x6c   : > { %v2250_v36 = vcombine.low %v1045_v38, %v1059_v9  ;;  %v1082_v51 = vrot.slane %v1081_v2, 4 }
  0x6d   : > { %2512 = vmatmul.mubr.msk.bf16.gmra.mrb[4].mxu0 %vm1921_vm9, %v1919_v28  ;;  %v1073_v13 = vsel %vm2850_vm7, %v1068_v20, %v1072_v41 }
  0x6e   : > { %v1087_v42 = vsel %vm2850_vm7, %v1082_v51, %v1086_v22 }
  0x6f   : > { %2458 = vmatmul.mubr.msk.bf16.vlgmr.msra.gmra.mrb[0].mxu1 %vm495_vm3, %v2249_v18  ;;  %v2251_v43 = vcombine.low %v1073_v13, %v1087_v42 }
  0x70   : > { %2461 = vmatprep.mubr.msk.bf16.mxu1 %vm495_vm3, %v2250_v36 }
  0x77   : > { %2462 = vmatmul.mubr.msk.bf16.gmra.mrb[4].mxu1 %vm495_vm3, %v2251_v43 }
 0x138   : > { %v2509_v26 = vpop.f32.mrb[0].mxu0 }
 0x139   : > { %v1972_v1 = vpop.f32.mrb[1].mxu0 }
 0x13a   : > { %v2510_v29 = vpop.f32.mrb[2].mxu0 }
 0x13b   : > { %v1975_v39 = vpop.f32.mrb[3].mxu0 }
 0x140   : > { %v2513_v53 = vpop.f32.mrb[4].mxu0 }
 0x141   : > { %v1988_v30 = vpop.f32.mrb[5].mxu0 }
 0x142   : > { %v2459_v19 = vpop.f32.mrb[0].mxu1  ;;  %v2514_v37 = vpop.f32.mrb[6].mxu0 }
 0x143   : > { %v2515_v47 = vadd.f32 %v2509_v26, %v2459_v19  ;;  %v1151_v52 = vpop.f32.mrb[1].mxu1  ;;  %v1991_v60 = vpop.f32.mrb[7].mxu0 }
 0x144   : > { %v2516_v21 = vadd.f32 %v1972_v1, %v1151_v52  ;;  %v2460_v12 = vpop.f32.mrb[2].mxu1 }
 0x145   : > { %2013 = vst.msk [vmem:[%s342_s16 + $0x10] sm:$0xff] %vm495_vm3, %v2515_v47  ;;  %v2517_v61 = vadd.f32 %v2510_v29, %v2460_v12  ;;  %v1154_v27 = vpop.f32.mrb[3].mxu1 }
 0x146   : > { %2011 = vst.msk [vmem:[%s342_s16] sm:$0xff] %vm495_vm3, %v2516_v21  ;;  %v2518_v0 = vadd.f32 %v1975_v39, %v1154_v27 }
 0x147   : > { %2014 = vst.msk [vmem:[%s342_s16 + $0x18] sm:$0xff] %vm495_vm3, %v2517_v61 }
 0x148   : > { %2012 = vst.msk [vmem:[%s342_s16 + $0x8] sm:$0xff] %vm495_vm3, %v2518_v0 }
 0x14a   : > { %v2463_v24 = vpop.f32.mrb[4].mxu1 }
 0x14b   : > { %v2519_v10 = vadd.f32 %v2513_v53, %v2463_v24  ;;  %v1167_v4 = vpop.f32.mrb[5].mxu1 }
 0x14c   : > { %v2520_v6 = vadd.f32 %v1988_v30, %v1167_v4  ;;  %v2464_v7 = vpop.f32.mrb[6].mxu1 }
 0x14d   : > { %2017 = vst.msk [vmem:[%s342_s16 + $0x30] sm:$0xff] %vm495_vm3, %v2519_v10  ;;  %v2521_v54 = vadd.f32 %v2514_v37, %v2464_v7  ;;  %v1170_v11 = vpop.f32.mrb[7].mxu1 }
 0x14e   : > { %2015 = vst.msk [vmem:[%s342_s16 + $0x20] sm:$0xff] %vm495_vm3, %v2520_v6  ;;  %v2522_v55 = vadd.f32 %v1991_v60, %v1170_v11 }
 0x14f   : > { %2018 = vst.msk [vmem:[%s342_s16 + $0x38] sm:$0xff] %vm495_vm3, %v2521_v54 }
 0x150   : > { %2016 = vst.msk [vmem:[%s342_s16 + $0x28] sm:$0xff] %vm495_vm3, %v2522_v55 }
 0x151 PF: > { %s16_s23 = sadd.s32 1, %s2657_s23   ;;  %s3286_s21 = smov %s2653_s22 }
 0x152   : > { %p13_p5 = scmp.ge.s32.totalorder %s16_s23, 4   ;;  %s3287_s22 = smov %s3289_s24 }
 0x154   :  { %15 = sbr.rel (!%p13_p5) target bundleno = 2 (0x2), region = 95 }

// kernel: _lambda_.7
= control target key start
LH: loop header
LB: loop body
LE: loop exit
PB: predicated region body
PF: predicated region fallthrough
CT: control target
= control target key end

     0   :  { %s2426_s12 = smov 0   ;;  %s2428_s13 = smov 0   ;;  %s2983_s0 = inlined_call_operand.vmem [shape: bf16[2,10,10,8], index: 0, kind: input, shape index: {}]   ;;  %s2984_s1 = inlined_call_operand.vmem [shape: bf16[9,8,8], index: 1, kind: input, shape index: {}]   ;;  %s2985_s2 = inlined_call_operand.vmem [shape: f32[2,8,8,8], index: 2, kind: input, shape index: {}]   ;;  %s2986_s3 = inlined_call_operand.vmem [shape: f32[2,8,8,8], index: 3, kind: output, shape index: {}]  }
   0x1   :  { %s2430_s14 = smov 0  }
   0x2 LB: > { %s32_s15 = sadd.s32 1, %s2400_s13  ;;  %p1956_p0 = scmp.ge.s32.totalorder %s2404_s14, 1  ;;  %s2404_s14 = sphi %s2430_s14, %s13_s14   ;;  %s2400_s13 = sphi %s2428_s13, %s2992_s13   ;;  %s2396_s12 = sphi %s2426_s12, %s2991_s12  }
   0x3   : > { %p34_p1 = scmp.ge.s32.totalorder %s32_s15, 2  ;;  %p191_p2 = scmp.lt.s32.totalorder %s2404_s14, 3 }
   0x5   : > { %s2994_s15 = smov (%p34_p1, %s32_s15), 0  ;;  %p192_p3 = pnand %p1956_p0, %p191_p2 }
   0x6   : > { %v1962_v0 = vld [vmem:[%s2984_s1 + $0x4] sm:$0xf] (!%p192_p3)  ;;  %vm437_vm0 = vcmask (!%p192_p3), 1043456   ;;  %v2450_v1 = vld [vmem:[%s2984_s1 + $0x10] sm:$0xf] (!%p192_p3)  ;;  %p238_p4 = scmp.lt.s32.totalorder (!%p192_p3), %s2396_s12, 1 }
   0x7   : > { %195 = sbr.rel (%p192_p3) target bundleno = 335 (0x14f), region = 32  ;;  %2335 = vmatprep.subr.msk.bf16.mxu1 (!%p192_p3), %vm437_vm0, %v1962_v0  ;;  %2339 = vmatprep.subr.msk.bf16.mxu0 (!%p192_p3), %vm437_vm0, %v2450_v1  ;;  %v439_v2 = vsel (!%p192_p3), %vm437_vm0, %v1962_v0, 0  ;;  %v2458_v3 = vsel (!%p192_p3), %vm437_vm0, %v2450_v1, 0  ;;  %v286_v4 = vld [vmem:[%s2984_s1] sm:$0xf] (!%p192_p3)  ;;  %vm424_vm3 = vcmask (!%p192_p3), 64512  }
   0x8   : > { %2180 = vmatpush3.bf16.msra.mxu1 (!%p192_p3), %v439_v2  ;;  %2220 = vmatpush3.bf16.msra.mxu0 (!%p192_p3), %v2458_v3  ;;  %v2054_v5 = vld [vmem:[%s2984_s1 + $0x14] sm:$0xf] (!%p192_p3)  ;;  %vm295_vm1 = vsmask.f32 (!%p192_p3), 3328  ;;  %vm296_vm2 = vsmask.f32 (!%p192_p3), 7440 }
   0x9   : > { %2336 = vmatprep.subr.msk.bf16.mxu1 (!%p192_p3), %vm437_vm0, %v286_v4  ;;  %2341 = vmatprep.subr.msk.bf16.mxu0 (!%p192_p3), %vm437_vm0, %v2054_v5  ;;  %v2497_v17 = vsel (!%p192_p3), %vm437_vm0, %v286_v4, 0  ;;  %v2510_v31 = vld [vmem:[%s2984_s1 + $0x18] sm:$0xf] (!%p192_p3)  ;;  %vm2514_vm4 = vmor (!%p192_p3), %vm295_vm1, %vm296_vm2  ;;  %v2526_v42 = vsel (!%p192_p3), %vm437_vm0, %v2054_v5, 0  ;;  %vm630_vm5 = vcmask (!%p192_p3), 1042432   ;;  %vm631_vm6 = vcmask (!%p192_p3), 1046532  }
   0xa   : > { %v2533_v47 = vsel (!%p192_p3), %vm437_vm0, %v2510_v31, 0  ;;  %vm2625_vm7 = vmor (!%p192_p3), %vm630_vm5, %vm631_vm6 }
   0xe   : > { %s2996_s12 = smov (!%p238_p4, %s2396_s12), 1 }
   0xf   : > { %s2345_s24 = smul.u32 80, %s2996_s12  ;;  %s2132_s11 = sshll.u32 %s2996_s12, 6 }
  0x10   : > { %s2943_s18 = scalar_lea.vmem %s2985_s2, %s2132_s11  ;;  %s2950_s21 = scalar_lea.vmem %s2986_s3, %s2132_s11 }
  0x11   : > { %s2475_s27 = scalar_lea.vmem %s2983_s0, %s2345_s24 }
  0x12   : > { %v2478_v6 = vld [vmem:[%s2475_s27] sm:$0xf]  ;;  %v2481_v7 = vld [vmem:[%s2475_s27 + $0x8] sm:$0xf]  ;;  %v2484_v8 = vld [vmem:[%s2475_s27 + $0x4] sm:$0x1] }
  0x13   : > { %v2487_v9 = vld [vmem:[%s2475_s27 + $0xc] sm:$0x1]  ;;  %v299_v10 = vshrl.u32 %v2478_v6, 16  ;;  %v302_v11 = vshll.u32 %v2478_v6, 16  ;;  %v308_v12 = vshll.u32 %v2484_v8, 16  ;;  %v313_v13 = vshrl.u32 %v2481_v7, 16 }
  0x14   : > { %v316_v14 = vshll.u32 %v2481_v7, 16  ;;  %v322_v15 = vshll.u32 %v2487_v9, 16  ;;  %v2013_v16 = vld [vmem:[%s2475_s27 + $0x8] sm:$0xf]  ;;  %v2500_v22 = vld [vmem:[%s2475_s27 + $0xc] sm:$0x1] }
  0x15   : > { %v301_v18 = vrot.slane %v299_v10, 4  ;;  %v304_v19 = vrot.slane %v302_v11, 5  ;;  %v310_v20 = vrot.slane %v308_v12, 5  ;;  %v315_v21 = vrot.slane %v313_v13, 4  ;;  %v2015_v25 = vld [vmem:[%s2475_s27 + $0x10] sm:$0xf] }
  0x16   : > { %v318_v23 = vrot.slane %v316_v14, 5  ;;  %v324_v24 = vrot.slane %v322_v15, 5  ;;  %v2504_v26 = vld [vmem:[%s2475_s27 + $0x14] sm:$0x1]  ;;  %v906_v28 = vshrl.u32 %v2013_v16, 16  ;;  %v909_v29 = vshll.u32 %v2013_v16, 16 }
  0x17   : > { %v305_v27 = vor.u32 %v304_v19, %v301_v18  ;;  %v915_v30 = vshll.u32 %v2500_v22, 16  ;;  %v920_v34 = vshrl.u32 %v2015_v25, 16  ;;  %v923_v35 = vshll.u32 %v2015_v25, 16  ;;  %v2520_v37 = vld [vmem:[%s2475_s27 + $0x10] sm:$0xf] }
  0x18   : > { %v319_v33 = vor.u32 %v318_v23, %v315_v21  ;;  %v929_v36 = vshll.u32 %v2504_v26, 16  ;;  %v908_v39 = vrot.slane %v906_v28, 4  ;;  %v911_v40 = vrot.slane %v909_v29, 5  ;;  %v2523_v41 = vld [vmem:[%s2475_s27 + $0x18] sm:$0xf] }
  0x19   : > { %v306_v38 = vrot.slane %v305_v27, 4  ;;  %v922_v44 = vrot.slane %v920_v34, 4  ;;  %v925_v45 = vrot.slane %v923_v35, 5  ;;  %v2529_v46 = vld [vmem:[%s2475_s27 + $0x14] sm:$0x1]  ;;  %v917_v50 = vrot.slane %v915_v30, 5 }
  0x1a   : > { %v320_v43 = vrot.slane %v319_v33, 4  ;;  %v912_v49 = vor.u32 %v911_v40, %v908_v39  ;;  %v931_v51 = vrot.slane %v929_v36, 5  ;;  %v2540_v54 = vld [vmem:[%s2475_s27 + $0x1c] sm:$0x1]  ;;  %v327_v55 = vshrl.u32 %v2520_v37, 16 }
  0x1b   : > { %v311_v48 = vsel %vm2514_vm4, %v306_v38, %v310_v20  ;;  %v926_v53 = vor.u32 %v925_v45, %v922_v44  ;;  %v330_v56 = vshll.u32 %v2520_v37, 16  ;;  %v336_v59 = vshll.u32 %v2529_v46, 16  ;;  %v2017_v2 = vld [vmem:[%s2475_s27 + $0x18] sm:$0xf]  ;;  %v2554_v12 = vld [vmem:[%s2475_s27 + $0x1c] sm:$0x1] }
  0x1c   : > { %v325_v52 = vsel %vm2514_vm4, %v320_v43, %v324_v24  ;;  %v913_v58 = vrot.slane %v912_v49, 4  ;;  %v341_v60 = vshrl.u32 %v2523_v41, 16  ;;  %v329_v62 = vrot.slane %v327_v55, 4  ;;  %v2019_v18 = vld [vmem:[%s2475_s27 + $0x20] sm:$0xf] }
  0x1d   : > { %v1963_v57 = vcombine.low %v311_v48, %v325_v52  ;;  %v927_v61 = vrot.slane %v926_v53, 4  ;;  %v332_v63 = vrot.slane %v330_v56, 5  ;;  %v344_v0 = vshll.u32 %v2523_v41, 16  ;;  %v2560_v19 = vld [vmem:[%s2475_s27 + $0x24] sm:$0x1] }
  0x1e   : > { %v918_v4 = vsel %vm2514_vm4, %v913_v58, %v917_v50  ;;  %v1145_v5 = vrot.slane %v2500_v22, 5  ;;  %v343_v10 = vrot.slane %v341_v60, 4  ;;  %v350_v11 = vshll.u32 %v2540_v54, 16  ;;  %v2567_v36 = vld [vmem:[%s2475_s27 + $0x20] sm:$0xf] }
  0x1f   : > { %2181 = vmatprep.mubr.msk.bf16.mxu1 %vm424_vm3, %v1963_v57  ;;  %v932_v13 = vsel %vm2514_vm4, %v927_v61, %v931_v51  ;;  %v333_v14 = vor.u32 %v332_v63, %v329_v62  ;;  %v338_v15 = vrot.slane %v336_v59, 5  ;;  %v346_v16 = vrot.slane %v344_v0, 5  ;;  %v2572_v44 = vld [vmem:[%s2475_s27 + $0x24] sm:$0x1]  ;;  %v2576_v51 = vld [vmem:[%s2475_s27 + $0x28] sm:$0xf] }
  0x20   : > { %v2030_v20 = vcombine.low %v918_v4, %v932_v13  ;;  %v1149_v21 = vrot.slane %v2504_v26, 5  ;;  %v352_v23 = vrot.slane %v350_v11, 5  ;;  %v934_v24 = vshrl.u32 %v2017_v2, 16  ;;  %v2582_v56 = vld [vmem:[%s2475_s27 + $0x2c] sm:$0x1] }
  0x21   : > { %v334_v25 = vrot.slane %v333_v14, 4  ;;  %v347_v27 = vor.u32 %v346_v16, %v343_v10  ;;  %v937_v28 = vshll.u32 %v2017_v2, 16  ;;  %v943_v29 = vshll.u32 %v2554_v12, 16  ;;  %v2588_v62 = vld [vmem:[%s2475_s27 + $0x30] sm:$0xf] }
  0x22   : > { %2221 = vmatprep.mubr.msk.bf16.mxu0 %vm424_vm3, %v2030_v20  ;;  %v936_v30 = vrot.slane %v934_v24, 4  ;;  %v948_v33 = vshrl.u32 %v2019_v18, 16  ;;  %v951_v34 = vshll.u32 %v2019_v18, 16  ;;  %v957_v35 = vshll.u32 %v2560_v19, 16  ;;  %v2593_v63 = vld [vmem:[%s2984_s1 + $0x8] sm:$0xf] }
  0x23   : > { %v339_v38 = vsel %vm2514_vm4, %v334_v25, %v338_v15  ;;  %v348_v39 = vrot.slane %v347_v27, 4  ;;  %v939_v40 = vrot.slane %v937_v28, 5  ;;  %v945_v43 = vrot.slane %v943_v29, 5  ;;  %v2598_v11 = vld [vmem:[%s2475_s27 + $0x38] sm:$0xf] }
  0x24   : > { %v950_v45 = vrot.slane %v948_v33, 4  ;;  %v953_v48 = vrot.slane %v951_v34, 5  ;;  %v959_v49 = vrot.slane %v957_v35, 5  ;;  %v1153_v50 = vrot.slane %v2554_v12, 5  ;;  %v2603_v18 = vld [vmem:[%s2475_s27 + $0x34] sm:$0x1] }
  0x25   : > { %v353_v52 = vsel %vm2514_vm4, %v348_v39, %v352_v23  ;;  %v940_v53 = vor.u32 %v939_v40, %v936_v30  ;;  %v1157_v55 = vrot.slane %v2560_v19, 5  ;;  %v355_v57 = vshrl.u32 %v2567_v36, 16  ;;  %v2609_v25 = vld [vmem:[%s2475_s27 + $0x3c] sm:$0x1]  ;;  %v2038_v34 = vld [vmem:[%s2475_s27 + $0x8] sm:$0xe] }
  0x26   : > { %v1964_v58 = vcombine.low %v339_v38, %v353_v52  ;;  %v954_v59 = vor.u32 %v953_v48, %v950_v45  ;;  %v358_v60 = vshll.u32 %v2567_v36, 16  ;;  %v364_v61 = vshll.u32 %v2572_v44, 16  ;;  %v2678_v19 = vld [vmem:[%s2475_s27 + $0x44] sm:$0x1] }
  0x27   : > { %v941_v0 = vrot.slane %v940_v53, 4  ;;  %v357_v2 = vrot.slane %v355_v57, 4  ;;  %v369_v4 = vshrl.u32 %v2576_v51, 16  ;;  %v372_v10 = vshll.u32 %v2576_v51, 16  ;;  %v2041_v57 = vld [vmem:[%s2475_s27 + $0x20] sm:$0xe] }
  0x28   : > { %2182 = vmatmul.mubr.msk.bf16.vlgmr.msra.gmra.mrb[0].mxu1 %vm424_vm3, %v1964_v58  ;;  %v955_v13 = vrot.slane %v954_v59, 4  ;;  %v360_v14 = vrot.slane %v358_v60, 5  ;;  %v366_v15 = vrot.slane %v364_v61, 5  ;;  %v378_v16 = vshll.u32 %v2582_v56, 16  ;;  %v1789_v53 = vld [vmem:[%s2943_s18 + $0x10] sm:$0xff] }
  0x29   : > { %2190 = vmatpush3.bf16.msra.mxu1 %v2497_v17  ;;  %v946_v20 = vsel %vm2514_vm4, %v941_v0, %v945_v43  ;;  %v371_v23 = vrot.slane %v369_v4, 4  ;;  %v374_v24 = vrot.slane %v372_v10, 5  ;;  %v383_v27 = vshrl.u32 %v2588_v62, 16  ;;  %v2039_v17 = vld [vmem:[%s2475_s27 + $0x10] sm:$0xe] }
  0x2a   : > { %v960_v28 = vsel %vm2514_vm4, %v955_v13, %v959_v49  ;;  %v361_v29 = vor.u32 %v360_v14, %v357_v2  ;;  %v380_v30 = vrot.slane %v378_v16, 5  ;;  %v386_v33 = vshll.u32 %v2588_v62, 16  ;;  %2337 = vmatprep.subr.msk.bf16.mxu1 %vm437_vm0, %v2593_v63  ;;  %v2040_v43 = vld [vmem:[%s2475_s27 + $0x18] sm:$0xe]  ;;  %v2042_v0 = vld [vmem:[%s2475_s27 + $0x28] sm:$0xe] }
  0x2b   : > { %v2031_v35 = vcombine.low %v946_v20, %v960_v28  ;;  %v375_v38 = vor.u32 %v374_v24, %v371_v23  ;;  %v385_v39 = vrot.slane %v383_v27, 4  ;;  %v392_v40 = vshll.u32 %v2603_v18, 16 }
  0x2c   : > { %v362_v45 = vrot.slane %v361_v29, 4  ;;  %v388_v48 = vrot.slane %v386_v33, 5  ;;  %v397_v49 = vshrl.u32 %v2598_v11, 16  ;;  %v400_v52 = vshll.u32 %v2598_v11, 16  ;;  %v2648_v29 = vld [vmem:[%s2475_s27 + $0x34] sm:$0x1] }
  0x2d   : > { %2222 = vmatmul.mubr.msk.bf16.vlgmr.msra.gmra.mrb[0].mxu0 %vm424_vm3, %v2031_v35  ;;  %v376_v58 = vrot.slane %v375_v38, 4  ;;  %v394_v59 = vrot.slane %v392_v40, 5  ;;  %v406_v60 = vshll.u32 %v2609_v25, 16  ;;  %v2046_v61 = vrot.slane %v2038_v34, 9  ;;  %v2044_v38 = vld [vmem:[%s2475_s27 + $0x38] sm:$0xe] }
  0x2e   : > { %2230 = vmatpush3.bf16.msra.mxu0 %v2526_v42  ;;  %v367_v2 = vsel %vm2514_vm4, %v362_v45, %v366_v15  ;;  %v389_v4 = vor.u32 %v388_v48, %v385_v39  ;;  %v399_v10 = vrot.slane %v397_v49, 4  ;;  %v402_v13 = vrot.slane %v400_v52, 5  ;;  %v2645_v42 = vld [vmem:[%s2475_s27 + $0x2c] sm:$0x1]  ;;  %v2045_v45 = vld [vmem:[%s2475_s27 + $0x40] sm:$0xe] }
  0x2f   : > { %v381_v14 = vsel %vm2514_vm4, %v376_v58, %v380_v30  ;;  %v408_v16 = vrot.slane %v406_v60, 5  ;;  %v1146_v20 = vsel %vm2625_vm7, %v2046_v61, %v1145_v5  ;;  %v2047_v23 = vrot.slane %v2039_v17, 9  ;;  %2342 = vmatprep.subr.msk.bf16.mxu0 %vm437_vm0, %v2510_v31  ;;  %v2043_v30 = vld [vmem:[%s2475_s27 + $0x30] sm:$0xe]  ;;  %v2656_v31 = vld [vmem:[%s2475_s27 + $0x3c] sm:$0x1] }
  0x30   : > { %v1965_v15 = vcombine.low %v367_v2, %v381_v14  ;;  %v390_v24 = vrot.slane %v389_v4, 4  ;;  %v403_v27 = vor.u32 %v402_v13, %v399_v10  ;;  %v2048_v28 = vrot.slane %v2040_v43, 9  ;;  %v2687_v48 = vld [vmem:[%s2984_s1 + $0xc] sm:$0xf]  ;;  %v607_v58 = vld [vmem:[%s2475_s27 + $0x8] sm:$0xe] }
  0x31   : > { %v1150_v22 = vsel %vm2625_vm7, %v2047_v23, %v1149_v21  ;;  %v2049_v5 = vrot.slane %v2041_v57, 9  ;;  %v2050_v33 = vrot.slane %v2042_v0, 9  ;;  %v1161_v39 = vrot.slane %v2645_v42, 5  ;;  %v609_v4 = vld [vmem:[%s2475_s27 + $0x18] sm:$0xe] }
  0x32   : > { %2185 = vmatprep.mubr.msk.bf16.mxu1 %vm424_vm3, %v1965_v15  ;;  %v395_v34 = vsel %vm2514_vm4, %v390_v24, %v394_v59  ;;  %v404_v17 = vrot.slane %v403_v27, 4  ;;  %v2055_v35 = vcombine.low %v1146_v20, %v1150_v22  ;;  %v1154_v26 = vsel %vm2625_vm7, %v2048_v28, %v1153_v50  ;;  %v608_v59 = vld [vmem:[%s2475_s27 + $0x10] sm:$0xe]  ;;  %v610_v20 = vld [vmem:[%s2475_s27 + $0x20] sm:$0xe] }
  0x33   : > { %v1158_v21 = vsel %vm2625_vm7, %v2049_v5, %v1157_v55  ;;  %v2051_v40 = vrot.slane %v2043_v30, 9  ;;  %v1165_v43 = vrot.slane %v2648_v29, 5  ;;  %v1971_v50 = vcombine.low %v2478_v6, %v2481_v7  ;;  %v2096_v55 = vld [vmem:[%s2984_s1 + $0x1c] sm:$0xf]  ;;  %v606_v7 = vld [vmem:[%s2475_s27] sm:$0xe] }
  0x34   : > { %v409_v12 = vsel %vm2514_vm4, %v404_v17, %v408_v16  ;;  %2231 = vmatprep.mubr.msk.bf16.mxu0 %vm424_vm3, %v2055_v35  ;;  %v2056_v52 = vcombine.low %v1154_v26, %v1158_v21  ;;  %v1162_v57 = vsel %vm2625_vm7, %v2050_v33, %v1161_v39  ;;  %v635_v60 = vrot.slane %v2484_v8, 5  ;;  %v2080_v5 = vld [vmem:[%s2475_s27 + $0x10] sm:$0xf]  ;;  %v611_v17 = vld [vmem:[%s2475_s27 + $0x28] sm:$0xe] }
  0x35   : > { %v1966_v49 = vcombine.low %v395_v34, %v409_v12  ;;  %v1166_v6 = vsel %vm2625_vm7, %v2051_v40, %v1165_v43  ;;  %v2052_v0 = vrot.slane %v2044_v38, 9  ;;  %v1169_v2 = vrot.slane %v2656_v31, 5  ;;  %v612_v35 = vld [vmem:[%s2475_s27 + $0x30] sm:$0xe]  ;;  %v2082_v26 = vld [vmem:[%s2475_s27 + $0x18] sm:$0xf] }
  0x36   : > { %v2057_v61 = vcombine.low %v1162_v57, %v1166_v6  ;;  %v639_v10 = vrot.slane %v2487_v9, 5  ;;  %v643_v13 = vrot.slane %v2529_v46, 5  ;;  %v2053_v14 = vrot.slane %v2045_v45, 9  ;;  %v2374_v38 = vld [vmem:[%s2475_s27 + $0x10] ss:$8 sps:$4 sm:$0xff]  }
  0x37   : > { %2186 = vmatmul.mubr.msk.bf16.gmra.mrb[4].mxu1 %vm424_vm3, %v1966_v49  ;;  %v1173_v16 = vrot.slane %v2678_v19, 5  ;;  %v647_v23 = vrot.slane %v2540_v54, 5  ;;  %v1979_v8 = vrot.slane %v606_v7, 9  ;;  %v1980_v15 = vrot.slane %v607_v58, 9  ;;  %v2750_v21 = vld [vmem:[%s2475_s27 + $0x38] sm:$0xe] }
  0x38   : > { %2191 = vmatprep.mubr.msk.bf16.mxu1 %vm424_vm3, %v1971_v50  ;;  %v1981_v24 = vrot.slane %v608_v59, 9  ;;  %v692_v9 = vsel %vm437_vm0, %v2593_v63, 0  ;;  %v2710_v46 = vsel %vm437_vm0, %v2096_v55, 0  ;;  %v1982_v27 = vrot.slane %v609_v4, 9  ;;  %v2753_v39 = vld [vmem:[%s2475_s27 + $0x14] sm:$0x1] }
  0x39   : > { %2232 = vmatmul.mubr.msk.bf16.vlgmr.msra.gmra.mrb[0].mxu0 %vm424_vm3, %v2056_v52  ;;  %v2714_v54 = vsel %vm437_vm0, %v2687_v48, 0  ;;  %v1170_v28 = vsel %vm2625_vm7, %v2052_v0, %v1169_v2  ;;  %v1174_v63 = vsel %vm2625_vm7, %v2053_v14, %v1173_v16  ;;  %v1983_v30 = vrot.slane %v610_v20, 9  ;;  %v2086_v52 = vld [vmem:[%s2475_s27 + $0x28] sm:$0xf]  ;;  %v2772_v59 = vld [vmem:[%s2475_s27 + $0x1c] sm:$0x1] }
  0x3a   : > { %2240 = vmatpush3.bf16.msra.mxu0 %v2533_v47  ;;  %2235 = vmatprep.mubr.msk.bf16.mxu0 %vm424_vm3, %v2057_v61  ;;  %v651_v22 = vrot.slane %v2572_v44, 5  ;;  %v1972_v33 = vcombine.low %v2520_v37, %v2523_v41  ;;  %v2729_v47 = vsel %vm2625_vm7, %v1979_v8, %v635_v60  ;;  %v2733_v34 = vsel %vm2625_vm7, %v1980_v15, %v639_v10  ;;  %v2780_v2 = vld [vmem:[%s2475_s27 + $0x24] sm:$0x1]  ;;  %v2088_v20 = vld [vmem:[%s2475_s27 + $0x30] sm:$0xf] }
  0x3b   : > { %2343 = vmatprep.subr.msk.bf16.mxu0 %vm437_vm0, %v2096_v55  ;;  %v1973_v44 = vcombine.low %v2567_v36, %v2576_v51  ;;  %v2743_v37 = vsel %vm2625_vm7, %v1981_v24, %v643_v13  ;;  %v2747_v41 = vsel %vm2625_vm7, %v1982_v27, %v647_v23  ;;  %v2058_v40 = vcombine.low %v1170_v28, %v1174_v63  ;;  %v2084_v36 = vld [vmem:[%s2475_s27 + $0x20] sm:$0xf]  ;;  %v2791_v15 = vld [vmem:[%s2475_s27 + $0x2c] sm:$0x1]  ;;  %v2376_v27 = vld [vmem:[%s2475_s27 + $0x30] ss:$8 sps:$4 sm:$0xff]  }
  0x3c   : > { %v1974_v43 = vcombine.low %v2588_v62, %v2598_v11  ;;  %v1416_v12 = vshrl.u32 %v2080_v5, 16  ;;  %v1419_v50 = vshll.u32 %v2080_v5, 16  ;;  %v1988_v51 = vcombine.low %v2729_v47, %v2733_v34  ;;  %v2375_v23 = vld [vmem:[%s2475_s27 + $0x20] ss:$8 sps:$4 sm:$0xff]   ;;  %v2090_v5 = vld [vmem:[%s2475_s27 + $0x38] sm:$0xf] }
  0x3d   : > { %v2762_v45 = vsel %vm2625_vm7, %v1983_v30, %v651_v22  ;;  %v1984_v55 = vrot.slane %v611_v17, 9  ;;  %v1430_v49 = vshrl.u32 %v2082_v26, 16  ;;  %v1989_v62 = vcombine.low %v2743_v37, %v2747_v41  ;;  %v2802_v17 = vld [vmem:[%s2475_s27 + $0x34] sm:$0x1] }
  0x3e   : > { %v655_v11 = vrot.slane %v2582_v56, 5  ;;  %v1418_v57 = vrot.slane %v1416_v12, 4  ;;  %v1421_v6 = vrot.slane %v1419_v50, 5  ;;  %v1985_v7 = vrot.slane %v612_v35, 9  ;;  %v2092_v12 = vld [vmem:[%s2475_s27 + $0x40] sm:$0xf] }
  0x3f   : > { %2192 = vmatmul.mubr.msk.bf16.vlgmr.msra.gmra.mrb[0].mxu1 %vm424_vm3, %v1972_v33  ;;  %v659_v58 = vrot.slane %v2603_v18, 5  ;;  %v1432_v60 = vrot.slane %v1430_v49, 4  ;;  %v1433_v61 = vshll.u32 %v2082_v26, 16  ;;  %v1986_v56 = vrot.slane %v2750_v21, 9  ;;  %v2812_v21 = vld [vmem:[%s2475_s27 + $0x3c] sm:$0x1] }
  0x40   : > { %2200 = vmatpush3.bf16.msra.mxu1 %v692_v9  ;;  %2195 = vmatprep.mubr.msk.bf16.mxu1 %vm424_vm3, %v1973_v44  ;;  %v1425_v0 = vshll.u32 %v2753_v39, 16  ;;  %v1444_v18 = vshrl.u32 %v2084_v36, 16  ;;  %v1447_v4 = vshll.u32 %v2084_v36, 16  ;;  %v1422_v10 = vor.u32 %v1421_v6, %v1418_v57  ;;  %v2094_v6 = vld [vmem:[%s2475_s27 + $0x48] sm:$0xf] }
  0x41   : > { %2236 = vmatmul.mubr.msk.bf16.gmra.mrb[4].mxu0 %vm424_vm3, %v2058_v40  ;;  %2338 = vmatprep.subr.msk.bf16.mxu1 %vm437_vm0, %v2687_v48  ;;  %v1435_v13 = vrot.slane %v1433_v61, 5  ;;  %v1458_v14 = vshrl.u32 %v2086_v52, 16  ;;  %v1461_v16 = vshll.u32 %v2086_v52, 16  ;;  %v2787_v48 = vsel %vm2625_vm7, %v1984_v55, %v655_v11 }
  0x42   : > { %2241 = vmatprep.mubr.msk.bf16.mxu0 %vm424_vm3, %v2374_v38  ;;  %v1439_v8 = vshll.u32 %v2772_v59, 16  ;;  %v1446_v24 = vrot.slane %v1444_v18, 4  ;;  %v1449_v9 = vrot.slane %v1447_v4, 5  ;;  %v663_v28 = vrot.slane %v2609_v25, 5  ;;  %v2809_v25 = vld [vmem:[%s2984_s1 + $0x20] sm:$0xf] }
  0x43   : > { %v1436_v63 = vor.u32 %v1435_v13, %v1432_v60  ;;  %v1460_v30 = vrot.slane %v1458_v14, 4  ;;  %v1463_v22 = vrot.slane %v1461_v16, 5  ;;  %v2798_v33 = vsel %vm2625_vm7, %v1985_v7, %v659_v58  ;;  %v2837_v13 = vld [vmem:[%s2475_s27 + $0x44] sm:$0x1] }
  0x44   : > { %v1427_v47 = vrot.slane %v1425_v0, 5  ;;  %v1453_v34 = vshll.u32 %v2780_v2, 16  ;;  %v1472_v35 = vshrl.u32 %v2088_v20, 16  ;;  %v1990_v26 = vcombine.low %v2762_v45, %v2787_v48 }
  0x45   : > { %v1423_v44 = vrot.slane %v1422_v10, 4  ;;  %v1450_v38 = vor.u32 %v1449_v9, %v1446_v24  ;;  %v1475_v40 = vshll.u32 %v2088_v20, 16  ;;  %v1437_v50 = vrot.slane %v1436_v63, 4  ;;  %v2840_v20 = vld [vmem:[%s2475_s27 + $0x4c] sm:$0x1] }
  0x46   : > { %v1441_v36 = vrot.slane %v1439_v8, 5  ;;  %v1474_v55 = vrot.slane %v1472_v35, 4  ;;  %v1486_v49 = vshrl.u32 %v2090_v5, 16  ;;  %v2819_v45 = vsel %vm2625_vm7, %v1986_v56, %v663_v28  ;;  %v2377_v8 = vld [vmem:[%s2475_s27 + $0x40] ss:$8 sps:$4 sm:$0xff]  }
  0x47   : > { %2196 = vmatmul.mubr.msk.bf16.gmra.mrb[4].mxu1 %vm424_vm3, %v1974_v43  ;;  %v1464_v52 = vor.u32 %v1463_v22, %v1460_v30  ;;  %v1467_v11 = vshll.u32 %v2791_v15, 16  ;;  %v1477_v57 = vrot.slane %v1475_v40, 5  ;;  %v2824_v7 = vrot.slane %v1453_v34, 5 }
  0x48   : > { %2201 = vmatprep.mubr.msk.bf16.mxu1 %vm424_vm3, %v1988_v51  ;;  %v1481_v43 = vshll.u32 %v2802_v17, 16  ;;  %v1488_v58 = vrot.slane %v1486_v49, 4  ;;  %v1489_v60 = vshll.u32 %v2090_v5, 16  ;;  %v1428_v51 = vsel %vm2514_vm4, %v1423_v44, %v1427_v47  ;;  %v2023_v49 = vld [vmem:[%s2475_s27 + $0x30] sm:$0xf] }
  0x49   : > { %2242 = vmatmul.mubr.msk.bf16.vlgmr.msra.gmra.mrb[0].mxu0 %vm424_vm3, %v2375_v23  ;;  %v1451_v61 = vrot.slane %v1450_v38, 4  ;;  %v1478_v56 = vor.u32 %v1477_v57, %v1474_v55  ;;  %v1500_v0 = vshrl.u32 %v2092_v12, 16  ;;  %v1442_v18 = vsel %vm2514_vm4, %v1437_v50, %v1441_v36  ;;  %v2105_v38 = vld [vmem:[%s2475_s27 + $0x10] sm:$0xe]  ;;  %v2106_v50 = vld [vmem:[%s2475_s27 + $0x18] sm:$0xe] }
  0x4a   : > { %2250 = vmatpush3.bf16.msra.mxu0 %v2710_v46  ;;  %2245 = vmatprep.mubr.msk.bf16.mxu0 %vm424_vm3, %v2376_v27  ;;  %v1491_v4 = vrot.slane %v1489_v60, 5  ;;  %v1495_v10 = vshll.u32 %v2812_v21, 16  ;;  %v1503_v46 = vshll.u32 %v2092_v12, 16  ;;  %v1465_v14 = vrot.slane %v1464_v52, 4  ;;  %v2378_v57 = vld [vmem:[%s2475_s27 + $0x8] ss:$8 sps:$4 sm:$0xff]  }
  0x4b   : > { %2344 = vmatprep.subr.msk.bf16.mxu0 %vm437_vm0, %v2809_v25  ;;  %v1469_v16 = vrot.slane %v1467_v11, 5  ;;  %v1502_v23 = vrot.slane %v1500_v0, 4  ;;  %v1514_v48 = vshrl.u32 %v2094_v6, 16  ;;  %v1483_v24 = vrot.slane %v1481_v43, 5 }
  0x4c   : > { %v1492_v9 = vor.u32 %v1491_v4, %v1488_v58  ;;  %v1505_v27 = vrot.slane %v1503_v46, 5  ;;  %v1517_v28 = vshll.u32 %v2094_v6, 16  ;;  %v2097_v63 = vcombine.low %v1428_v51, %v1442_v18 }
  0x4d   : > { %v1479_v30 = vrot.slane %v1478_v56, 4  ;;  %v1509_v22 = vshll.u32 %v2837_v13, 16  ;;  %v1516_v5 = vrot.slane %v1514_v48, 4  ;;  %v1497_v34 = vrot.slane %v1495_v10, 5 }
  0x4e   : > { %v1493_v47 = vrot.slane %v1492_v9, 4  ;;  %v1519_v35 = vrot.slane %v1517_v28, 5  ;;  %v1523_v44 = vshll.u32 %v2840_v20, 16  ;;  %v1991_v40 = vcombine.low %v2798_v33, %v2819_v45  ;;  %v2027_v28 = vld [vmem:[%s2475_s27 + $0x40] sm:$0xf] }
  0x4f   : > { %2202 = vmatmul.mubr.msk.bf16.vlgmr.msra.gmra.mrb[0].mxu1 %vm424_vm3, %v1989_v62  ;;  %v1506_v12 = vor.u32 %v1505_v27, %v1502_v23  ;;  %v1456_v37 = vsel %vm2514_vm4, %v1451_v61, %v2824_v7  ;;  %v1470_v41 = vsel %vm2514_vm4, %v1465_v14, %v1469_v16  ;;  %v2021_v62 = vld [vmem:[%s2475_s27 + $0x28] sm:$0xf]  ;;  %v1484_v33 = vsel %vm2514_vm4, %v1479_v30, %v1483_v24  ;;  %v2025_v27 = vld [vmem:[%s2475_s27 + $0x38] sm:$0xf] }
  0x50   : > { %2210 = vmatpush3.bf16.msra.mxu1 %v2714_v54  ;;  %2205 = vmatprep.mubr.msk.bf16.mxu1 %vm424_vm3, %v1990_v26  ;;  %v1520_v54 = vor.u32 %v1519_v35, %v1516_v5  ;;  %v1511_v26 = vrot.slane %v1509_v22, 5  ;;  %v2113_v36 = vrot.slane %v2105_v38, 9  ;;  %v1655_v55 = vrot.slane %v2753_v39, 5  ;;  %v2380_v38 = vld [vmem:[%s2475_s27 + $0x28] ss:$8 sps:$4 sm:$0xff]  }
  0x51   : > { %2246 = vmatmul.mubr.msk.bf16.gmra.mrb[4].mxu0 %vm424_vm3, %v2377_v8  ;;  %2340 = vmatprep.subr.msk.bf16.mxu1 %vm437_vm0, %v2450_v1  ;;  %v1498_v45 = vsel %vm2514_vm4, %v1493_v47, %v1497_v34  ;;  %v1525_v52 = vrot.slane %v1523_v44, 5  ;;  %v2114_v11 = vrot.slane %v2106_v50, 9  ;;  %v1659_v1 = vrot.slane %v2772_v59, 5  ;;  %v2107_v59 = vld [vmem:[%s2475_s27 + $0x20] sm:$0xe] }
  0x52   : > { %2251 = vmatprep.mubr.msk.bf16.mxu0 %vm424_vm3, %v2097_v63  ;;  %v1507_v6 = vrot.slane %v1506_v12, 4  ;;  %v1521_v7 = vrot.slane %v1520_v54, 4  ;;  %v962_v43 = vshrl.u32 %v2021_v62, 16  ;;  %v965_v58 = vshll.u32 %v2021_v62, 16  ;;  %v2379_v63 = vld [vmem:[%s2475_s27 + $0x18] ss:$8 sps:$4 sm:$0xff]  }
  0x53   : > { %v2098_v60 = vcombine.low %v1456_v37, %v1470_v41  ;;  %v976_v51 = vshrl.u32 %v2023_v49, 16  ;;  %v979_v61 = vshll.u32 %v2023_v49, 16  ;;  %v2099_v56 = vcombine.low %v1484_v33, %v1498_v45  ;;  %v2109_v44 = vld [vmem:[%s2475_s27 + $0x30] sm:$0xe] }
  0x54   : > { %v964_v39 = vrot.slane %v962_v43, 4  ;;  %v967_v0 = vrot.slane %v965_v58, 5  ;;  %v1712_v18 = vsel %vm437_vm0, %v2809_v25, 0  ;;  %v1512_v46 = vsel %vm2514_vm4, %v1507_v6, %v1511_v26  ;;  %v2108_v25 = vld [vmem:[%s2475_s27 + $0x28] sm:$0xe] }
  0x55   : > { %v978_v4 = vrot.slane %v976_v51, 4  ;;  %v981_v10 = vrot.slane %v979_v61, 5  ;;  %v1526_v14 = vsel %vm2514_vm4, %v1521_v7, %v1525_v52  ;;  %v1656_v16 = vsel %vm2625_vm7, %v2113_v36, %v1655_v55  ;;  %v2111_v6 = vld [vmem:[%s2475_s27 + $0x40] sm:$0xe]  ;;  %v2112_v7 = vld [vmem:[%s2475_s27 + $0x48] sm:$0xe] }
  0x56   : > { %v1660_v23 = vsel %vm2625_vm7, %v2114_v11, %v1659_v1  ;;  %v968_v48 = vor.u32 %v967_v0, %v964_v39  ;;  %v971_v8 = vshll.u32 %v2645_v42, 16  ;;  %v985_v9 = vshll.u32 %v2648_v29, 16  ;;  %v2110_v42 = vld [vmem:[%s2475_s27 + $0x38] sm:$0xe] }
  0x57   : > { %2206 = vmatmul.mubr.msk.bf16.gmra.mrb[4].mxu1 %vm424_vm3, %v1991_v40  ;;  %v982_v24 = vor.u32 %v981_v10, %v978_v4  ;;  %v2115_v30 = vrot.slane %v2107_v59, 9  ;;  %v1663_v22 = vrot.slane %v2780_v2, 5  ;;  %v2100_v5 = vcombine.low %v1512_v46, %v1526_v14 }
  0x58   : > { %2211 = vmatprep.mubr.msk.bf16.mxu1 %vm424_vm3, %v2378_v57  ;;  %v2122_v47 = vcombine.low %v1656_v16, %v1660_v23  ;;  %v2116_v34 = vrot.slane %v2108_v25, 9  ;;  %v1667_v35 = vrot.slane %v2791_v15, 5  ;;  %v990_v40 = vshrl.u32 %v2025_v27, 16  ;;  %v2381_v57 = vld [vmem:[%s2475_s27 + $0x38] ss:$8 sps:$4 sm:$0xff]  }
  0x59   : > { %2252 = vmatmul.mubr.msk.bf16.vlgmr.msra.gmra.mrb[0].mxu0 %vm424_vm3, %v2098_v60  ;;  %v993_v12 = vshll.u32 %v2025_v27, 16  ;;  %v1004_v29 = vshrl.u32 %v2027_v28, 16  ;;  %v1007_v50 = vshll.u32 %v2027_v28, 16  ;;  %v969_v37 = vrot.slane %v968_v48, 4 }
  0x5a   : > { %2260 = vmatpush3.bf16.msra.mxu0 %v1712_v18  ;;  %2255 = vmatprep.mubr.msk.bf16.mxu0 %vm424_vm3, %v2099_v56  ;;  %v973_v41 = vrot.slane %v971_v8, 5  ;;  %v983_v54 = vrot.slane %v982_v24, 4  ;;  %v987_v62 = vrot.slane %v985_v9, 5  ;;  %v2117_v33 = vrot.slane %v2109_v44, 9  ;;  %v1788_v44 = vld [vmem:[%s2943_s18 + $0x8] sm:$0xff] }
  0x5b   : > { %v1671_v26 = vrot.slane %v2802_v17, 5  ;;  %v2118_v2 = vrot.slane %v2110_v42, 9  ;;  %v1675_v36 = vrot.slane %v2812_v21, 5  ;;  %v992_v15 = vrot.slane %v990_v40, 4 }
  0x5c   : > { %v995_v55 = vrot.slane %v993_v12, 5  ;;  %v1006_v49 = vrot.slane %v1004_v29, 4  ;;  %v1009_v45 = vrot.slane %v1007_v50, 5  ;;  %v999_v52 = vshll.u32 %v2656_v31, 16 }
  0x5d   : > { %v974_v17 = vsel %vm2514_vm4, %v969_v37, %v973_v41  ;;  %v988_v21 = vsel %vm2514_vm4, %v983_v54, %v987_v62  ;;  %v1668_v11 = vsel %vm2625_vm7, %v2116_v34, %v1667_v35  ;;  %v1672_v1 = vsel %vm2625_vm7, %v2117_v33, %v1671_v26  ;;  %v1793_v41 = vld [vmem:[%s2943_s18 + $0x30] sm:$0xff]  ;;  %v1791_v26 = vld [vmem:[%s2943_s18 + $0x20] sm:$0xff] }
  0x5e   : > { %v1676_v31 = vsel %vm2625_vm7, %v2118_v2, %v1675_v36  ;;  %v1013_v43 = vshll.u32 %v2678_v19, 16  ;;  %v2032_v58 = vcombine.low %v974_v17, %v988_v21  ;;  %v996_v60 = vor.u32 %v995_v55, %v992_v15  ;;  %v1794_v55 = vld [vmem:[%s2943_s18 + $0x38] sm:$0xff]  ;;  %v1792_v17 = vld [vmem:[%s2943_s18 + $0x28] sm:$0xff] }
  0x5f   : > { %2212 = vmatmul.mubr.msk.bf16.vlgmr.msra.gmra.mrb[0].mxu1 %vm424_vm3, %v2379_v63  ;;  %v1010_v51 = vor.u32 %v1009_v45, %v1006_v49  ;;  %v2124_v56 = vcombine.low %v1672_v1, %v1676_v31  ;;  %v2119_v39 = vrot.slane %v2111_v6, 9  ;;  %v1679_v0 = vrot.slane %v2837_v13, 5  ;;  %v1787_v63 = vld [vmem:[%s2943_s18] sm:$0xff] }
  0x60   : > { %2270 = vmatpush3.bf16.msra.mxu1 %v2458_v3  ;;  %2215 = vmatprep.mubr.msk.bf16.mxu1 %vm424_vm3, %v2380_v38  ;;  %v1664_v3 = vsel %vm2625_vm7, %v2115_v30, %v1663_v22  ;;  %v2120_v18 = vrot.slane %v2112_v7, 9  ;;  %v1683_v59 = vrot.slane %v2840_v20, 5  ;;  %v1001_v4 = vrot.slane %v999_v52, 5 }
  0x61   : > { %2256 = vmatmul.mubr.msk.bf16.gmra.mrb[4].mxu0 %vm424_vm3, %v2100_v5  ;;  %v2123_v61 = vcombine.low %v1664_v3, %v1668_v11  ;;  %v1015_v10 = vrot.slane %v1013_v43, 5  ;;  %v997_v46 = vrot.slane %v996_v60, 4  ;;  %v1011_v19 = vrot.slane %v1010_v51, 4  ;;  %v1790_v5 = vld [vmem:[%s2943_s18 + $0x18] sm:$0xff] }
  0x62   : > { %2261 = vmatprep.mubr.msk.bf16.mxu0 %vm424_vm3, %v2122_v47  ;;  %v1680_v14 = vsel %vm2625_vm7, %v2119_v39, %v1679_v0  ;;  %v1684_v13 = vsel %vm2625_vm7, %v2120_v18, %v1683_v59 }
  0x63   : > { %v1002_v20 = vsel %vm2514_vm4, %v997_v46, %v1001_v4  ;;  %v1016_v16 = vsel %vm2514_vm4, %v1011_v19, %v1015_v10  ;;  %v2125_v23 = vcombine.low %v1680_v14, %v1684_v13 }
  0x64   : > { %v2033_v25 = vcombine.low %v1002_v20, %v1016_v16 }
  0x67   : > { %2216 = vmatmul.mubr.msk.bf16.gmra.mrb[4].mxu1 %vm424_vm3, %v2381_v57 }
  0x68   : > { %2225 = vmatprep.mubr.msk.bf16.mxu1 %vm424_vm3, %v2032_v58 }
  0x69   : > { %2262 = vmatmul.mubr.msk.bf16.vlgmr.msra.gmra.mrb[0].mxu0 %vm424_vm3, %v2123_v61 }
  0x6a   : > { %2265 = vmatprep.mubr.msk.bf16.mxu0 %vm424_vm3, %v2124_v56 }
  0x71   : > { %2266 = vmatmul.mubr.msk.bf16.gmra.mrb[4].mxu0 %vm424_vm3, %v2125_v23 }
  0x73   : > { %2226 = vmatmul.mubr.msk.bf16.vlgmr.msra.gmra.mrb[4].mxu1 %vm424_vm3, %v2033_v25 }
 0x132   : > { %v2213_v48 = vpop.f32.mrb[0].mxu1 }
 0x133   : > { %v850_v8 = vpop.f32.mrb[1].mxu1 }
 0x134   : > { %v2214_v24 = vpop.f32.mrb[2].mxu1 }
 0x135   : > { %v853_v9 = vpop.f32.mrb[3].mxu1 }
 0x13c   : > { %v2263_v32 = vpop.f32.mrb[0].mxu0 }
 0x13d   : > { %v2271_v27 = vadd.f32 %v2263_v32, %v2213_v48  ;;  %v1748_v28 = vpop.f32.mrb[1].mxu0 }
 0x13e   : > { %v2272_v30 = vadd.f32 %v1748_v28, %v850_v8  ;;  %v2264_v22 = vpop.f32.mrb[2].mxu0 }
 0x13f   : > { %v1797_v47 = vadd.f32 %v2271_v27, %v1789_v53  ;;  %v2273_v34 = vadd.f32 %v2264_v22, %v2214_v24  ;;  %v1751_v35 = vpop.f32.mrb[3].mxu0 }
 0x140   : > { %v1795_v42 = vadd.f32 %v2272_v30, %v1787_v63  ;;  %v2274_v38 = vadd.f32 %v1751_v35, %v853_v9 }
 0x141   : > { %1805 = vst.msk [vmem:[%s2950_s21 + $0x10] sm:$0xff] %vm424_vm3, %v1797_v47  ;;  %v1798_v40 = vadd.f32 %v2273_v34, %v1790_v5 }
 0x142   : > { %1803 = vst.msk [vmem:[%s2950_s21] sm:$0xff] %vm424_vm3, %v1795_v42  ;;  %v1796_v12 = vadd.f32 %v2274_v38, %v1788_v44 }
 0x143   : > { %1806 = vst.msk [vmem:[%s2950_s21 + $0x18] sm:$0xff] %vm424_vm3, %v1798_v40 }
 0x144   : > { %1804 = vst.msk [vmem:[%s2950_s21 + $0x8] sm:$0xff] %vm424_vm3, %v1796_v12  ;;  %v2267_v29 = vpop.f32.mrb[4].mxu0 }
 0x145   : > { %v1764_v50 = vpop.f32.mrb[5].mxu0 }
 0x146   : > { %v2227_v37 = vpop.f32.mrb[4].mxu1  ;;  %v2268_v54 = vpop.f32.mrb[6].mxu0 }
 0x147   : > { %v2275_v62 = vadd.f32 %v2267_v29, %v2227_v37  ;;  %v1096_v33 = vpop.f32.mrb[5].mxu1  ;;  %v1767_v2 = vpop.f32.mrb[7].mxu0 }
 0x148   : > { %v2276_v36 = vadd.f32 %v1764_v50, %v1096_v33  ;;  %v2228_v15 = vpop.f32.mrb[6].mxu1 }
 0x149   : > { %v1801_v49 = vadd.f32 %v2275_v62, %v1793_v41  ;;  %v2277_v45 = vadd.f32 %v2268_v54, %v2228_v15  ;;  %v1099_v52 = vpop.f32.mrb[7].mxu1 }
 0x14a   : > { %v1799_v21 = vadd.f32 %v2276_v36, %v1791_v26  ;;  %v2278_v3 = vadd.f32 %v1767_v2, %v1099_v52 }
 0x14b   : > { %1809 = vst.msk [vmem:[%s2950_s21 + $0x30] sm:$0xff] %vm424_vm3, %v1801_v49  ;;  %v1802_v11 = vadd.f32 %v2277_v45, %v1794_v55 }
 0x14c   : > { %1807 = vst.msk [vmem:[%s2950_s21 + $0x20] sm:$0xff] %vm424_vm3, %v1799_v21  ;;  %v1800_v1 = vadd.f32 %v2278_v3, %v1792_v17 }
 0x14d   : > { %1810 = vst.msk [vmem:[%s2950_s21 + $0x38] sm:$0xff] %vm424_vm3, %v1802_v11 }
 0x14e   : > { %1808 = vst.msk [vmem:[%s2950_s21 + $0x28] sm:$0xff] %vm424_vm3, %v1800_v1 }
 0x14f PF: > { %s13_s14 = sadd.s32 1, %s2404_s14   ;;  %s2991_s12 = smov %s2400_s13 }
 0x150   : > { %p10_p5 = scmp.ge.s32.totalorder %s13_s14, 4   ;;  %s2992_s13 = smov %s2994_s15 }
 0x152   :  { %12 = sbr.rel (!%p10_p5) target bundleno = 2 (0x2), region = 79 }

// kernel: _lambda_.6
= control target key start
LH: loop header
LB: loop body
LE: loop exit
PB: predicated region body
PF: predicated region fallthrough
CT: control target
= control target key end

     0   :  { %s2748_s21 = smov 0   ;;  %s2750_s22 = smov 0   ;;  %s3442_s0 = inlined_call_operand.vmem [shape: bf16[2,10,10,8], index: 0, kind: input, shape index: {}]   ;;  %s3443_s1 = inlined_call_operand.vmem [shape: bf16[9,8,8], index: 1, kind: input, shape index: {}]   ;;  %s3444_s2 = inlined_call_operand.vmem [shape: f32[1,8], index: 2, kind: input, shape index: {}]   ;;  %s3445_s3 = inlined_call_operand.vmem [shape: f32[1,8], index: 3, kind: input, shape index: {}]   ;;  %s3446_s4 = inlined_call_operand.vmem [shape: f32[1,8], index: 4, kind: input, shape index: {}]   ;;  %s3447_s5 = inlined_call_operand.vmem [shape: f32[1,8], index: 5, kind: input, shape index: {}]   ;;  %s3448_s6 = inlined_call_operand.vmem [shape: bf16[2,8,8,8], index: 6, kind: output, shape index: {}]  }
   0x1   :  { %s2752_s23 = smov 0  }
   0x2 LB: > { %s35_s24 = sadd.s32 1, %s2707_s22  ;;  %p2308_p0 = scmp.ge.s32.totalorder %s2711_s23, 1  ;;  %s2711_s23 = sphi %s2752_s23, %s16_s23   ;;  %s2707_s22 = sphi %s2750_s22, %s3454_s22   ;;  %s2703_s21 = sphi %s2748_s21, %s3453_s21  }
   0x3   : > { %p37_p1 = scmp.ge.s32.totalorder %s35_s24, 2  ;;  %p260_p2 = scmp.lt.s32.totalorder %s2711_s23, 3 }
   0x5   : > { %s3456_s24 = smov (%p37_p1, %s35_s24), 0  ;;  %p261_p3 = pnand %p2308_p0, %p260_p2 }
   0x6   : > { %v2314_v0 = vld [vmem:[%s3443_s1 + $0x4] sm:$0xf] (!%p261_p3)  ;;  %vm581_vm0 = vcmask (!%p261_p3), 1043456   ;;  %v2772_v1 = vld [vmem:[%s3443_s1 + $0x10] sm:$0xf] (!%p261_p3)  ;;  %p307_p4 = scmp.lt.s32.totalorder (!%p261_p3), %s2703_s21, 1 }
   0x7   : > { %264 = sbr.rel (%p261_p3) target bundleno = 406 (0x196), region = 44  ;;  %2652 = vmatprep.subr.msk.bf16.mxu1 (!%p261_p3), %vm581_vm0, %v2314_v0  ;;  %2656 = vmatprep.subr.msk.bf16.mxu0 (!%p261_p3), %vm581_vm0, %v2772_v1  ;;  %v583_v2 = vsel (!%p261_p3), %vm581_vm0, %v2314_v0, 0  ;;  %v2780_v3 = vsel (!%p261_p3), %vm581_vm0, %v2772_v1, 0  ;;  %vm407_vm1 = vsmask.f32 (!%p261_p3), 3328  ;;  %vm568_vm4 = vcmask (!%p261_p3), 64512  }
   0x8   : > { %2497 = vmatpush3.bf16.msra.mxu1 (!%p261_p3), %v583_v2  ;;  %2537 = vmatpush3.bf16.msra.mxu0 (!%p261_p3), %v2780_v3  ;;  %v398_v4 = vld [vmem:[%s3443_s1] sm:$0xf] (!%p261_p3)  ;;  %v2386_v5 = vld [vmem:[%s3443_s1 + $0x14] sm:$0xf] (!%p261_p3)  ;;  %vm408_vm2 = vsmask.f32 (!%p261_p3), 7440 }
   0x9   : > { %2653 = vmatprep.subr.msk.bf16.mxu1 (!%p261_p3), %vm581_vm0, %v398_v4  ;;  %2658 = vmatprep.subr.msk.bf16.mxu0 (!%p261_p3), %vm581_vm0, %v2386_v5  ;;  %v2797_v6 = vld [vmem:[%s3443_s1 + $0x18] sm:$0xf] (!%p261_p3)  ;;  %v2800_v7 = vsel (!%p261_p3), %vm581_vm0, %v398_v4, 0  ;;  %v2805_v8 = vld [vmem:[%s3443_s1 + $0x8] sm:$0xf] (!%p261_p3)  ;;  %v2818_v10 = vsel (!%p261_p3), %vm581_vm0, %v2386_v5, 0  ;;  %vm2865_vm3 = vmor (!%p261_p3), %vm407_vm1, %vm408_vm2 }
   0xa   : > { %v2810_v9 = vld [vmem:[%s3443_s1 + $0x1c] sm:$0xf] (!%p261_p3)  ;;  %v2822_v11 = vsel (!%p261_p3), %vm581_vm0, %v2797_v6, 0  ;;  %v2826_v12 = vsel (!%p261_p3), %vm581_vm0, %v2805_v8, 0  ;;  %v2879_v57 = vld [vmem:[%s3444_s2] ss:$0 sm:$0xff] (!%p261_p3) }
   0xb   : > { %v2830_v13 = vsel (!%p261_p3), %vm581_vm0, %v2810_v9, 0  ;;  %v2894_v5 = vld [vmem:[%s3445_s3] ss:$0 sm:$0xff] (!%p261_p3)  ;;  %vm754_vm5 = vcmask (!%p261_p3), 1042432   ;;  %vm755_vm6 = vcmask (!%p261_p3), 1046532   ;;  %vm2149_vm8 = vcmask (!%p261_p3), 60416  }
   0xc   : > { %vm2995_vm7 = vmor (!%p261_p3), %vm754_vm5, %vm755_vm6 }
   0xe   : > { %s3458_s21 = smov (!%p307_p4, %s2703_s21), 1 }
   0xf   : > { %s2662_s9 = smul.u32 80, %s3458_s21  ;;  %s2450_s15 = sshll.u32 %s3458_s21, 5 }
  0x11   : > { %s2815_s18 = scalar_lea.vmem %s3442_s0, %s2662_s9 }
  0x12   : > { %v2833_v14 = vld [vmem:[%s2815_s18] sm:$0xf]  ;;  %v2836_v15 = vld [vmem:[%s2815_s18 + $0x8] sm:$0xf]  ;;  %v2839_v16 = vld [vmem:[%s2815_s18 + $0x4] sm:$0x1] }
  0x13   : > { %v2842_v17 = vld [vmem:[%s2815_s18 + $0xc] sm:$0x1]  ;;  %v411_v18 = vshrl.u32 %v2833_v14, 16  ;;  %v414_v19 = vshll.u32 %v2833_v14, 16  ;;  %v420_v20 = vshll.u32 %v2839_v16, 16  ;;  %v425_v21 = vshrl.u32 %v2836_v15, 16 }
  0x14   : > { %v428_v22 = vshll.u32 %v2836_v15, 16  ;;  %v434_v23 = vshll.u32 %v2842_v17, 16  ;;  %v759_v24 = vrot.slane %v2839_v16, 5  ;;  %v763_v25 = vrot.slane %v2842_v17, 5  ;;  %v2349_v26 = vld [vmem:[%s2815_s18 + $0x8] sm:$0xf] }
  0x15   : > { %v413_v27 = vrot.slane %v411_v18, 4  ;;  %v416_v28 = vrot.slane %v414_v19, 5  ;;  %v422_v29 = vrot.slane %v420_v20, 5  ;;  %v427_v30 = vrot.slane %v425_v21, 4  ;;  %v2854_v31 = vld [vmem:[%s2815_s18 + $0xc] sm:$0x1] }
  0x16   : > { %v430_v32 = vrot.slane %v428_v22, 5  ;;  %v436_v33 = vrot.slane %v434_v23, 5  ;;  %v2351_v34 = vld [vmem:[%s2815_s18 + $0x10] sm:$0xf]  ;;  %v2858_v35 = vld [vmem:[%s2815_s18 + $0x14] sm:$0x1]  ;;  %v350_v36 = vunpack.c.l.bf16 %v2833_v14  ;;  %v351_v37 = vunpack.c.l.bf16 %v2836_v15 }
  0x17   : > { %v417_v38 = vor.u32 %v416_v28, %v413_v27  ;;  %v1078_v39 = vshrl.u32 %v2349_v26, 16  ;;  %v1081_v40 = vshll.u32 %v2349_v26, 16  ;;  %v1087_v41 = vshll.u32 %v2854_v31, 16  ;;  %v2871_v51 = vld [vmem:[%s2815_s18 + $0x10] sm:$0xf] }
  0x18   : > { %v431_v43 = vor.u32 %v430_v32, %v427_v30  ;;  %v1092_v44 = vshrl.u32 %v2351_v34, 16  ;;  %v1095_v45 = vshll.u32 %v2351_v34, 16  ;;  %v1101_v46 = vshll.u32 %v2858_v35, 16  ;;  %v2874_v56 = vld [vmem:[%s2815_s18 + $0x14] sm:$0x1] }
  0x19   : > { %v418_v47 = vrot.slane %v417_v38, 4  ;;  %v1080_v48 = vrot.slane %v1078_v39, 4  ;;  %v1083_v49 = vrot.slane %v1081_v40, 5  ;;  %v1089_v50 = vrot.slane %v1087_v41, 5  ;;  %v2886_v62 = vld [vmem:[%s2815_s18 + $0x18] sm:$0xf] }
  0x1a   : > { %v432_v52 = vrot.slane %v431_v43, 4  ;;  %v1094_v53 = vrot.slane %v1092_v44, 4  ;;  %v1097_v54 = vrot.slane %v1095_v45, 5  ;;  %v1103_v55 = vrot.slane %v1101_v46, 5  ;;  %v2904_v30 = vld [vmem:[%s2815_s18 + $0x1c] sm:$0x1] }
  0x1b   : > { %v423_v58 = vsel %vm2865_vm3, %v418_v47, %v422_v29  ;;  %v1084_v59 = vor.u32 %v1083_v49, %v1080_v48  ;;  %v1349_v60 = vrot.slane %v2854_v31, 5  ;;  %v1353_v61 = vrot.slane %v2858_v35, 5  ;;  %v2353_v46 = vld [vmem:[%s2815_s18 + $0x18] sm:$0xf] }
  0x1c   : > { %v437_v63 = vsel %vm2865_vm3, %v432_v52, %v436_v33  ;;  %v530_v0 = vunpack.c.l.bf16 %v423_v58  ;;  %v1098_v2 = vor.u32 %v1097_v54, %v1094_v53  ;;  %v439_v4 = vshrl.u32 %v2871_v51, 16  ;;  %v2917_v58 = vld [vmem:[%s2815_s18 + $0x1c] sm:$0x1] }
  0x1d   : > { %v531_v18 = vunpack.c.l.bf16 %v437_v63  ;;  %v1085_v19 = vrot.slane %v1084_v59, 4  ;;  %v442_v20 = vshll.u32 %v2871_v51, 16  ;;  %v448_v21 = vshll.u32 %v2874_v56, 16 }
  0x1e   : > { %v538_v22 = vmul.f32 %v2879_v57, %v530_v0  ;;  %v1099_v23 = vrot.slane %v1098_v2, 4  ;;  %v441_v26 = vrot.slane %v439_v4, 4  ;;  %v453_v27 = vshrl.u32 %v2886_v62, 16  ;;  %v2355_v2 = vld [vmem:[%s2815_s18 + $0x20] sm:$0xf] }
  0x1f   : > { %v539_v28 = vmul.f32 %v2879_v57, %v531_v18  ;;  %v1090_v29 = vsel %vm2865_vm3, %v1085_v19, %v1089_v50  ;;  %v444_v32 = vrot.slane %v442_v20, 5  ;;  %v450_v33 = vrot.slane %v448_v21, 5 }
  0x20   : > { %v546_v34 = vadd.f32 %v2894_v5, %v538_v22  ;;  %v1104_v38 = vsel %vm2865_vm3, %v1099_v23, %v1103_v55  ;;  %v1197_v39 = vunpack.c.l.bf16 %v1090_v29  ;;  %v455_v40 = vrot.slane %v453_v27, 4  ;;  %v2926_v22 = vld [vmem:[%s2815_s18 + $0x24] sm:$0x1] }
  0x21   : > { %v547_v41 = vadd.f32 %v2894_v5, %v539_v28  ;;  %v1198_v43 = vunpack.c.l.bf16 %v1104_v38  ;;  %v445_v44 = vor.u32 %v444_v32, %v441_v26  ;;  %v456_v45 = vshll.u32 %v2886_v62, 16 }
  0x22   : > { %v554_v47 = vmax.f32 %v546_v34, 0.0  ;;  %v1205_v48 = vmul.f32 %v2879_v57, %v1197_v39  ;;  %v462_v49 = vshll.u32 %v2904_v30, 16  ;;  %v767_v50 = vrot.slane %v2874_v56, 5 }
  0x23   : > { %v555_v52 = vmax.f32 %v547_v41, 0.0  ;;  %v1206_v53 = vmul.f32 %v2879_v57, %v1198_v43  ;;  %v446_v54 = vrot.slane %v445_v44, 4  ;;  %v458_v55 = vrot.slane %v456_v45, 5  ;;  %v2933_v43 = vld [vmem:[%s2815_s18 + $0x20] sm:$0xf] }
  0x24   : > { %v1213_v59 = vadd.f32 %v2894_v5, %v1205_v48  ;;  %v464_v63 = vrot.slane %v462_v49, 5  ;;  %v771_v0 = vrot.slane %v2904_v30, 5  ;;  %v1106_v4 = vshrl.u32 %v2353_v46, 16 }
  0x25   : > { %v562_v18 = vpack.c.bf16 %v555_v52, %v554_v47  ;;  %v1214_v19 = vadd.f32 %v2894_v5, %v1206_v53  ;;  %v451_v20 = vsel %vm2865_vm3, %v446_v54, %v450_v33  ;;  %v459_v21 = vor.u32 %v458_v55, %v455_v40  ;;  %v2939_v54 = vld [vmem:[%s2815_s18 + $0x28] sm:$0xf]  ;;  %v2942_v55 = vld [vmem:[%s2815_s18 + $0x24] sm:$0x1] }
  0x26   : > { %v1221_v23 = vmax.f32 %v1213_v59, 0.0  ;;  %v532_v26 = vunpack.c.l.bf16 %v451_v20  ;;  %v1108_v27 = vrot.slane %v1106_v4, 4  ;;  %v1109_v28 = vshll.u32 %v2353_v46, 16 }
  0x27   : > { %2498 = vmatprep.mubr.msk.bf16.mxu1 %vm568_vm4, %v562_v18  ;;  %v1222_v29 = vmax.f32 %v1214_v19, 0.0  ;;  %v460_v32 = vrot.slane %v459_v21, 4  ;;  %v1115_v34 = vshll.u32 %v2917_v58, 16  ;;  %v1120_v38 = vshrl.u32 %v2355_v2, 16 }
  0x28   : > { %v540_v39 = vmul.f32 %v2879_v57, %v532_v26  ;;  %v1111_v33 = vrot.slane %v1109_v28, 5  ;;  %v1123_v41 = vshll.u32 %v2355_v2, 16  ;;  %v1129_v40 = vshll.u32 %v2926_v22, 16 }
  0x29   : > { %v1229_v44 = vpack.c.bf16 %v1222_v29, %v1221_v23  ;;  %v465_v45 = vsel %vm2865_vm3, %v460_v32, %v464_v63  ;;  %v1117_v46 = vrot.slane %v1115_v34, 5  ;;  %v1122_v47 = vrot.slane %v1120_v38, 4  ;;  %v2950_v23 = vld [vmem:[%s2815_s18 + $0x2c] sm:$0x1] }
  0x2a   : > { %v533_v48 = vunpack.c.l.bf16 %v465_v45  ;;  %v548_v49 = vadd.f32 %v2894_v5, %v540_v39  ;;  %v1112_v52 = vor.u32 %v1111_v33, %v1108_v27  ;;  %v1125_v53 = vrot.slane %v1123_v41, 5  ;;  %v2960_v33 = vld [vmem:[%s2815_s18 + $0x30] sm:$0xf] }
  0x2b   : > { %2538 = vmatprep.mubr.msk.bf16.mxu0 %vm568_vm4, %v1229_v44  ;;  %v1131_v59 = vrot.slane %v1129_v40, 5  ;;  %v1357_v2 = vrot.slane %v2917_v58, 5  ;;  %v1361_v4 = vrot.slane %v2926_v22, 5  ;;  %v467_v63 = vshrl.u32 %v2933_v43, 16 }
  0x2c   : > { %v541_v18 = vmul.f32 %v2879_v57, %v533_v48  ;;  %v556_v19 = vmax.f32 %v548_v49, 0.0  ;;  %v1113_v20 = vrot.slane %v1112_v52, 4  ;;  %v1126_v21 = vor.u32 %v1125_v53, %v1122_v47 }
  0x2d   : > { %v469_v26 = vrot.slane %v467_v63, 4  ;;  %v470_v27 = vshll.u32 %v2933_v43, 16  ;;  %v476_v28 = vshll.u32 %v2942_v55, 16  ;;  %v481_v29 = vshrl.u32 %v2939_v54, 16 }
  0x2e   : > { %v549_v32 = vadd.f32 %v2894_v5, %v541_v18  ;;  %v1118_v34 = vsel %vm2865_vm3, %v1113_v20, %v1117_v46  ;;  %v1127_v38 = vrot.slane %v1126_v21, 4  ;;  %v484_v39 = vshll.u32 %v2939_v54, 16  ;;  %v2967_v18 = vld [vmem:[%s2815_s18 + $0x38] sm:$0xf]  ;;  %v2970_v20 = vld [vmem:[%s2815_s18 + $0x34] sm:$0x1] }
  0x2f   : > { %v1199_v41 = vunpack.c.l.bf16 %v1118_v34  ;;  %v472_v40 = vrot.slane %v470_v27, 5  ;;  %v478_v44 = vrot.slane %v476_v28, 5  ;;  %v483_v45 = vrot.slane %v481_v29, 4 }
  0x30   : > { %v557_v47 = vmax.f32 %v549_v32, 0.0  ;;  %v1132_v48 = vsel %vm2865_vm3, %v1127_v38, %v1131_v59  ;;  %v486_v49 = vrot.slane %v484_v39, 5  ;;  %v490_v52 = vshll.u32 %v2950_v23, 16 }
  0x31   : > { %v1200_v53 = vunpack.c.l.bf16 %v1132_v48  ;;  %v1207_v46 = vmul.f32 %v2879_v57, %v1199_v41  ;;  %v473_v63 = vor.u32 %v472_v40, %v469_v26  ;;  %v495_v21 = vshrl.u32 %v2960_v33, 16 }
  0x32   : > { %v563_v27 = vpack.c.bf16 %v557_v47, %v556_v19  ;;  %v487_v28 = vor.u32 %v486_v49, %v483_v45  ;;  %v492_v29 = vrot.slane %v490_v52, 5  ;;  %v498_v32 = vshll.u32 %v2960_v33, 16  ;;  %v2984_v49 = vld [vmem:[%s2815_s18 + $0x3c] sm:$0x1] }
  0x33   : > { %v1208_v59 = vmul.f32 %v2879_v57, %v1200_v53  ;;  %v1215_v34 = vadd.f32 %v2894_v5, %v1207_v46  ;;  %v474_v38 = vrot.slane %v473_v63, 4  ;;  %v497_v39 = vrot.slane %v495_v21, 4  ;;  %v2370_v53 = vld [vmem:[%s2815_s18 + $0x8] sm:$0xe] }
  0x34   : > { %2499 = vmatmul.mubr.msk.bf16.vlgmr.msra.gmra.mrb[0].mxu1 %vm568_vm4, %v563_v27  ;;  %v488_v26 = vrot.slane %v487_v28, 4  ;;  %v500_v41 = vrot.slane %v498_v32, 5  ;;  %v504_v40 = vshll.u32 %v2970_v20, 16  ;;  %v509_v19 = vshrl.u32 %v2967_v18, 16  ;;  %v2371_v28 = vld [vmem:[%s2815_s18 + $0x10] sm:$0xe] }
  0x35   : > { %2507 = vmatpush3.bf16.msra.mxu1 %v2800_v7  ;;  %v1216_v45 = vadd.f32 %v2894_v5, %v1208_v59  ;;  %v1223_v47 = vmax.f32 %v1215_v34, 0.0  ;;  %v479_v48 = vsel %vm2865_vm3, %v474_v38, %v478_v44  ;;  %v512_v52 = vshll.u32 %v2967_v18, 16 }
  0x36   : > { %v493_v46 = vsel %vm2865_vm3, %v488_v26, %v492_v29  ;;  %v534_v63 = vunpack.c.l.bf16 %v479_v48  ;;  %v501_v21 = vor.u32 %v500_v41, %v497_v39  ;;  %v506_v27 = vrot.slane %v504_v40, 5  ;;  %2654 = vmatprep.subr.msk.bf16.mxu1 %vm581_vm0, %v2805_v8 }
  0x37   : > { %v1224_v7 = vmax.f32 %v1216_v45, 0.0  ;;  %v535_v32 = vunpack.c.l.bf16 %v493_v46  ;;  %v511_v59 = vrot.slane %v509_v19, 4  ;;  %v514_v44 = vrot.slane %v512_v52, 5  ;;  %v2372_v19 = vld [vmem:[%s2815_s18 + $0x18] sm:$0xe] }
  0x38   : > { %v542_v29 = vmul.f32 %v2879_v57, %v534_v63  ;;  %v502_v38 = vrot.slane %v501_v21, 4  ;;  %v518_v39 = vshll.u32 %v2984_v49, 16  ;;  %v2378_v26 = vrot.slane %v2370_v53, 9  ;;  %v2373_v21 = vld [vmem:[%s2815_s18 + $0x20] sm:$0xe] }
  0x39   : > { %v1230_v41 = vpack.c.bf16 %v1224_v7, %v1223_v47  ;;  %v543_v8 = vmul.f32 %v2879_v57, %v535_v32  ;;  %v515_v40 = vor.u32 %v514_v44, %v511_v59  ;;  %v2379_v45 = vrot.slane %v2371_v28, 9 }
  0x3a   : > { %v550_v48 = vadd.f32 %v2894_v5, %v542_v29  ;;  %v507_v52 = vsel %vm2865_vm3, %v502_v38, %v506_v27  ;;  %v520_v46 = vrot.slane %v518_v39, 5  ;;  %v1350_v63 = vsel %vm2995_vm7, %v2378_v26, %v1349_v60 }
  0x3b   : > { %2539 = vmatmul.mubr.msk.bf16.vlgmr.msra.gmra.mrb[0].mxu0 %vm568_vm4, %v1230_v41  ;;  %v551_v47 = vadd.f32 %v2894_v5, %v543_v8  ;;  %v516_v53 = vrot.slane %v515_v40, 4  ;;  %v536_v7 = vunpack.c.l.bf16 %v507_v52  ;;  %v1354_v28 = vsel %vm2995_vm7, %v2379_v45, %v1353_v61 }
  0x3c   : > { %2547 = vmatpush3.bf16.msra.mxu0 %v2818_v10  ;;  %v558_v27 = vmax.f32 %v550_v48, 0.0  ;;  %v1387_v32 = vunpack.c.l.bf16 %v1350_v63  ;;  %v1388_v31 = vunpack.c.l.bf16 %v1354_v28  ;;  %v2380_v59 = vrot.slane %v2372_v19, 9 }
  0x3d   : > { %v559_v44 = vmax.f32 %v551_v47, 0.0  ;;  %v521_v60 = vsel %vm2865_vm3, %v516_v53, %v520_v46  ;;  %v544_v29 = vmul.f32 %v2879_v57, %v536_v7  ;;  %2659 = vmatprep.subr.msk.bf16.mxu0 %vm581_vm0, %v2797_v6  ;;  %v2381_v38 = vrot.slane %v2373_v21, 9  ;;  %v2374_v7 = vld [vmem:[%s2815_s18 + $0x28] sm:$0xe] }
  0x3e   : > { %v537_v35 = vunpack.c.l.bf16 %v521_v60  ;;  %v1395_v39 = vmul.f32 %v2879_v57, %v1387_v32  ;;  %v1396_v61 = vmul.f32 %v2879_v57, %v1388_v31  ;;  %v1358_v10 = vsel %vm2995_vm7, %v2380_v59, %v1357_v2  ;;  %v3055_v32 = vld [vmem:[%s2815_s18 + $0x2c] sm:$0x1]  ;;  %v2375_v31 = vld [vmem:[%s2815_s18 + $0x30] sm:$0xe] }
  0x3f   : > { %v564_v26 = vpack.c.bf16 %v559_v44, %v558_v27  ;;  %v552_v41 = vadd.f32 %v2894_v5, %v544_v29  ;;  %v1362_v8 = vsel %vm2995_vm7, %v2381_v38, %v1361_v4  ;;  %v1389_v6 = vunpack.c.l.bf16 %v1358_v10  ;;  %v3060_v38 = vld [vmem:[%s2815_s18 + $0x34] sm:$0x1] }
  0x40   : > { %v545_v40 = vmul.f32 %v2879_v57, %v537_v35  ;;  %v1403_v45 = vadd.f32 %v2894_v5, %v1395_v39  ;;  %v1404_v19 = vadd.f32 %v2894_v5, %v1396_v61  ;;  %v1390_v58 = vunpack.c.l.bf16 %v1362_v8  ;;  %v2376_v61 = vld [vmem:[%s2815_s18 + $0x38] sm:$0xe] }
  0x41   : > { %2502 = vmatprep.mubr.msk.bf16.mxu1 %vm568_vm4, %v564_v26  ;;  %v560_v2 = vmax.f32 %v552_v41, 0.0  ;;  %v1397_v48 = vmul.f32 %v2879_v57, %v1389_v6  ;;  %v364_v22 = vmul.f32 %v2879_v57, %v350_v36  ;;  %v365_v4 = vmul.f32 %v2879_v57, %v351_v37  ;;  %v2362_v6 = vld [vmem:[%s2815_s18 + $0x3c] sm:$0x1] }
  0x42   : > { %v553_v52 = vadd.f32 %v2894_v5, %v545_v40  ;;  %v1411_v46 = vmax.f32 %v1403_v45, 0.0  ;;  %v1412_v63 = vmax.f32 %v1404_v19, 0.0  ;;  %v1398_v21 = vmul.f32 %v2879_v57, %v1390_v58  ;;  %v2364_v58 = vld [vmem:[%s2815_s18 + $0x44] sm:$0x1] }
  0x43   : > { %v1405_v47 = vadd.f32 %v2894_v5, %v1397_v48  ;;  %v378_v53 = vadd.f32 %v2894_v5, %v364_v22  ;;  %v379_v14 = vadd.f32 %v2894_v5, %v365_v4  ;;  %v352_v36 = vunpack.c.l.bf16 %v2871_v51  ;;  %v2377_v48 = vld [vmem:[%s2815_s18 + $0x40] sm:$0xe] }
  0x44   : > { %v561_v15 = vmax.f32 %v553_v52, 0.0  ;;  %v1419_v28 = vpack.c.bf16 %v1412_v63, %v1411_v46  ;;  %v1406_v37 = vadd.f32 %v2894_v5, %v1398_v21  ;;  %v353_v27 = vunpack.c.l.bf16 %v2886_v62 }
  0x45   : > { %v1413_v59 = vmax.f32 %v1405_v47, 0.0  ;;  %v386_v44 = vmax.f32 %v378_v53, 0.0  ;;  %v387_v60 = vmax.f32 %v379_v14, 0.0  ;;  %v366_v29 = vmul.f32 %v2879_v57, %v352_v36 }
  0x46   : > { %v565_v51 = vpack.c.bf16 %v561_v15, %v560_v2  ;;  %2548 = vmatprep.mubr.msk.bf16.mxu0 %vm568_vm4, %v1419_v28  ;;  %v1414_v35 = vmax.f32 %v1406_v37, 0.0  ;;  %v367_v39 = vmul.f32 %v2879_v57, %v353_v27  ;;  %v2382_v62 = vrot.slane %v2374_v7, 9 }
  0x47   : > { %v394_v10 = vpack.c.bf16 %v387_v60, %v386_v44  ;;  %v380_v26 = vadd.f32 %v2894_v5, %v366_v29  ;;  %v1365_v41 = vrot.slane %v3055_v32, 5  ;;  %v2383_v8 = vrot.slane %v2375_v31, 9 }
  0x48   : > { %2503 = vmatmul.mubr.msk.bf16.gmra.mrb[4].mxu1 %vm568_vm4, %v565_v51  ;;  %v1420_v40 = vpack.c.bf16 %v1414_v35, %v1413_v59  ;;  %v381_v45 = vadd.f32 %v2894_v5, %v367_v39  ;;  %v1369_v19 = vrot.slane %v3060_v38, 5  ;;  %v1171_v2 = vshll.u32 %v2362_v6, 16 }
  0x49   : > { %2508 = vmatprep.mubr.msk.bf16.mxu1 %vm568_vm4, %v394_v10  ;;  %v388_v22 = vmax.f32 %v380_v26, 0.0  ;;  %v1366_v4 = vsel %vm2995_vm7, %v2382_v62, %v1365_v41  ;;  %v1185_v52 = vshll.u32 %v2364_v58, 16  ;;  %v2384_v46 = vrot.slane %v2376_v61, 9  ;;  %v2391_v10 = vld [vmem:[%s2815_s18 + $0x10] ss:$8 sps:$4 sm:$0xff]  }
  0x4a   : > { %2549 = vmatmul.mubr.msk.bf16.vlgmr.msra.gmra.mrb[0].mxu0 %vm568_vm4, %v1420_v40  ;;  %v389_v63 = vmax.f32 %v381_v45, 0.0  ;;  %v1370_v21 = vsel %vm2995_vm7, %v2383_v8, %v1369_v19  ;;  %v1391_v47 = vunpack.c.l.bf16 %v1366_v4  ;;  %v3079_v53 = vrot.slane %v1171_v2, 5 }
  0x4b   : > { %2557 = vmatpush3.bf16.msra.mxu0 %v2822_v11  ;;  %v1392_v14 = vunpack.c.l.bf16 %v1370_v21  ;;  %v3082_v36 = vrot.slane %v1185_v52, 5  ;;  %v1373_v7 = vrot.slane %v2362_v6, 5  ;;  %v2385_v15 = vrot.slane %v2377_v48, 9 }
  0x4c   : > { %v395_v28 = vpack.c.bf16 %v389_v63, %v388_v22  ;;  %v1399_v37 = vmul.f32 %v2879_v57, %v1391_v47  ;;  %v1377_v27 = vrot.slane %v2364_v58, 5  ;;  %v354_v31 = vunpack.c.l.bf16 %v2933_v43  ;;  %2660 = vmatprep.subr.msk.bf16.mxu0 %vm581_vm0, %v2810_v9  ;;  %v2393_v22 = vld [vmem:[%s2815_s18 + $0x20] ss:$8 sps:$4 sm:$0xff]  }
  0x4d   : > { %v1400_v59 = vmul.f32 %v2879_v57, %v1392_v14  ;;  %v1374_v11 = vsel %vm2995_vm7, %v2384_v46, %v1373_v7  ;;  %v355_v44 = vunpack.c.l.bf16 %v2939_v54  ;;  %v356_v60 = vunpack.c.l.bf16 %v2960_v33  ;;  %v2344_v54 = vld [vmem:[%s3443_s1 + $0xc] sm:$0xf]  ;;  %v730_v63 = vld [vmem:[%s2815_s18] sm:$0xe] }
  0x4e   : > { %v1407_v29 = vadd.f32 %v2894_v5, %v1399_v37  ;;  %v1378_v51 = vsel %vm2995_vm7, %v2385_v15, %v1377_v27  ;;  %v1393_v35 = vunpack.c.l.bf16 %v1374_v11  ;;  %v368_v43 = vmul.f32 %v2879_v57, %v354_v31  ;;  %v731_v15 = vld [vmem:[%s2815_s18 + $0x8] sm:$0xe] }
  0x4f   : > { %v1408_v39 = vadd.f32 %v2894_v5, %v1400_v59  ;;  %v1394_v9 = vunpack.c.l.bf16 %v1378_v51  ;;  %v369_v62 = vmul.f32 %v2879_v57, %v355_v44  ;;  %v357_v61 = vunpack.c.l.bf16 %v2967_v18 }
  0x50   : > { %2509 = vmatmul.mubr.msk.bf16.vlgmr.msra.gmra.mrb[0].mxu1 %vm568_vm4, %v395_v28  ;;  %v1415_v33 = vmax.f32 %v1407_v29, 0.0  ;;  %v1401_v26 = vmul.f32 %v2879_v57, %v1393_v35  ;;  %v382_v41 = vadd.f32 %v2894_v5, %v368_v43  ;;  %v370_v8 = vmul.f32 %v2879_v57, %v356_v60  ;;  %v732_v29 = vld [vmem:[%s2815_s18 + $0x10] sm:$0xe] }
  0x51   : > { %2517 = vmatpush3.bf16.msra.mxu1 %v2826_v12  ;;  %v1416_v6 = vmax.f32 %v1408_v39, 0.0  ;;  %v1402_v18 = vmul.f32 %v2879_v57, %v1394_v9  ;;  %v383_v40 = vadd.f32 %v2894_v5, %v369_v62  ;;  %v371_v45 = vmul.f32 %v2879_v57, %v357_v61  ;;  %v733_v9 = vld [vmem:[%s2815_s18 + $0x18] sm:$0xe] }
  0x52   : > { %v1409_v19 = vadd.f32 %v2894_v5, %v1401_v26  ;;  %v390_v58 = vmax.f32 %v382_v41, 0.0  ;;  %v384_v2 = vadd.f32 %v2894_v5, %v370_v8  ;;  %v1525_v48 = vunpack.c.l.bf16 %v2391_v10  ;;  %2655 = vmatprep.subr.msk.bf16.mxu1 %vm581_vm0, %v2344_v54 }
  0x53   : > { %v1421_v4 = vpack.c.bf16 %v1416_v6, %v1415_v33  ;;  %v1410_v12 = vadd.f32 %v2894_v5, %v1402_v18  ;;  %v391_v52 = vmax.f32 %v383_v40, 0.0  ;;  %v385_v46 = vadd.f32 %v2894_v5, %v371_v45 }
  0x54   : > { %v1417_v21 = vmax.f32 %v1409_v19, 0.0  ;;  %v392_v47 = vmax.f32 %v384_v2, 0.0  ;;  %v1526_v14 = vunpack.c.h.bf16 %v2391_v10  ;;  %v1533_v7 = vmul.f32 %v2879_v57, %v1525_v48 }
  0x55   : > { %2552 = vmatprep.mubr.msk.bf16.mxu0 %vm568_vm4, %v1421_v4  ;;  %v1418_v28 = vmax.f32 %v1410_v12, 0.0  ;;  %v396_v37 = vpack.c.bf16 %v391_v52, %v390_v58  ;;  %v393_v27 = vmax.f32 %v385_v46, 0.0  ;;  %v1527_v31 = vunpack.c.l.bf16 %v2393_v22 }
  0x56   : > { %v1534_v59 = vmul.f32 %v2879_v57, %v1526_v14  ;;  %v1541_v11 = vadd.f32 %v2894_v5, %v1533_v7  ;;  %v1528_v44 = vunpack.c.h.bf16 %v2393_v22  ;;  %v2323_v60 = vrot.slane %v730_v63, 9  ;;  %v734_v14 = vld [vmem:[%s2815_s18 + $0x20] sm:$0xe] }
  0x57   : > { %v1422_v51 = vpack.c.bf16 %v1418_v28, %v1417_v21  ;;  %2512 = vmatprep.mubr.msk.bf16.mxu1 %vm568_vm4, %v396_v37  ;;  %v397_v35 = vpack.c.bf16 %v393_v27, %v392_v47  ;;  %v1535_v43 = vmul.f32 %v2879_v57, %v1527_v31  ;;  %v2324_v39 = vrot.slane %v731_v15, 9 }
  0x58   : > { %v1542_v62 = vadd.f32 %v2894_v5, %v1534_v59  ;;  %v1549_v61 = vmax.f32 %v1541_v11, 0.0  ;;  %v1536_v10 = vmul.f32 %v2879_v57, %v1528_v44  ;;  %v760_v33 = vsel %vm2995_vm7, %v2323_v60, %v759_v24  ;;  %v2395_v24 = vld [vmem:[%s2815_s18 + $0x30] ss:$8 sps:$4 sm:$0xff]   ;;  %v3167_v59 = vld [vmem:[%s3443_s1 + $0x20] sm:$0xf] }
  0x59   : > { %2553 = vmatmul.mubr.msk.bf16.gmra.mrb[4].mxu0 %vm568_vm4, %v1422_v51  ;;  %2513 = vmatmul.mubr.msk.bf16.gmra.mrb[4].mxu1 %vm568_vm4, %v397_v35  ;;  %v1543_v26 = vadd.f32 %v2894_v5, %v1535_v43  ;;  %v764_v41 = vsel %vm2995_vm7, %v2324_v39, %v763_v25  ;;  %v797_v8 = vunpack.c.l.bf16 %v760_v33  ;;  %v2325_v6 = vrot.slane %v732_v29, 9  ;;  %v2397_v25 = vld [vmem:[%s2815_s18 + $0x40] ss:$8 sps:$4 sm:$0xff]  }
  0x5a   : > { %v1550_v18 = vmax.f32 %v1542_v62, 0.0  ;;  %v1544_v16 = vadd.f32 %v2894_v5, %v1536_v10  ;;  %v798_v40 = vunpack.c.l.bf16 %v764_v41  ;;  %v2326_v45 = vrot.slane %v733_v9, 9  ;;  %v735_v29 = vld [vmem:[%s2815_s18 + $0x28] sm:$0xe]  ;;  %v736_v62 = vld [vmem:[%s2815_s18 + $0x30] sm:$0xe] }
  0x5b   : > { %v1551_v19 = vmax.f32 %v1543_v26, 0.0  ;;  %v805_v58 = vmul.f32 %v2879_v57, %v797_v8  ;;  %v768_v2 = vsel %vm2995_vm7, %v2325_v6, %v767_v50  ;;  %v986_v17 = vsel %vm581_vm0, %v2344_v54, 0  ;;  %v737_v41 = vld [vmem:[%s2815_s18 + $0x38] sm:$0xe] }
  0x5c   : > { %v1557_v48 = vpack.c.bf16 %v1550_v18, %v1549_v61  ;;  %v1552_v22 = vmax.f32 %v1544_v16, 0.0  ;;  %v806_v4 = vmul.f32 %v2879_v57, %v798_v40  ;;  %v772_v12 = vsel %vm2995_vm7, %v2326_v45, %v771_v0  ;;  %v2404_v16 = vld [vmem:[%s2815_s18 + $0x10] sm:$0xf] }
  0x5d   : > { %v813_v52 = vadd.f32 %v2894_v5, %v805_v58  ;;  %v799_v46 = vunpack.c.l.bf16 %v768_v2  ;;  %v800_v56 = vunpack.c.l.bf16 %v772_v12  ;;  %v1529_v63 = vunpack.c.l.bf16 %v2395_v24  ;;  %v3195_v12 = vld [vmem:[%s2815_s18 + $0x14] sm:$0x1] }
  0x5e   : > { %2558 = vmatprep.mubr.msk.bf16.mxu0 %vm568_vm4, %v1557_v48  ;;  %v1558_v50 = vpack.c.bf16 %v1552_v22, %v1551_v19  ;;  %v814_v54 = vadd.f32 %v2894_v5, %v806_v4  ;;  %v1530_v21 = vunpack.c.h.bf16 %v2395_v24  ;;  %v1531_v47 = vunpack.c.l.bf16 %v2397_v25 }
  0x5f   : > { %v821_v7 = vmax.f32 %v813_v52, 0.0  ;;  %v807_v30 = vmul.f32 %v2879_v57, %v799_v46  ;;  %v808_v15 = vmul.f32 %v2879_v57, %v800_v56  ;;  %v1537_v0 = vmul.f32 %v2879_v57, %v1529_v63  ;;  %v2406_v63 = vld [vmem:[%s2815_s18 + $0x18] sm:$0xf] }
  0x60   : > { %v822_v28 = vmax.f32 %v814_v54, 0.0  ;;  %v1538_v37 = vmul.f32 %v2879_v57, %v1530_v21  ;;  %v1532_v27 = vunpack.c.h.bf16 %v2397_v25  ;;  %v1539_v31 = vmul.f32 %v2879_v57, %v1531_v47 }
  0x61   : > { %2559 = vmatmul.mubr.msk.bf16.vlgmr.msra.gmra.mrb[0].mxu0 %vm568_vm4, %v1558_v50  ;;  %v815_v11 = vadd.f32 %v2894_v5, %v807_v30  ;;  %v816_v44 = vadd.f32 %v2894_v5, %v808_v15  ;;  %v1545_v60 = vadd.f32 %v2894_v5, %v1537_v0  ;;  %v2327_v51 = vrot.slane %v734_v14, 9 }
  0x62   : > { %2567 = vmatpush3.bf16.msra.mxu0 %v2830_v13  ;;  %v829_v35 = vpack.c.bf16 %v822_v28, %v821_v7  ;;  %v1546_v43 = vadd.f32 %v2894_v5, %v1538_v37  ;;  %v1540_v39 = vmul.f32 %v2879_v57, %v1532_v27  ;;  %v1547_v9 = vadd.f32 %v2894_v5, %v1539_v31  ;;  %v3210_v7 = vld [vmem:[%s2815_s18 + $0x1c] sm:$0x1]  ;;  %v2408_v27 = vld [vmem:[%s2815_s18 + $0x20] sm:$0xf] }
  0x63   : > { %v823_v61 = vmax.f32 %v815_v11, 0.0  ;;  %v824_v10 = vmax.f32 %v816_v44, 0.0  ;;  %v1553_v33 = vmax.f32 %v1545_v60, 0.0  ;;  %v775_v26 = vrot.slane %v2942_v55, 5  ;;  %2661 = vmatprep.subr.msk.bf16.mxu0 %vm581_vm0, %v3167_v59 }
  0x64   : > { %2518 = vmatprep.mubr.msk.bf16.mxu1 %vm568_vm4, %v829_v35  ;;  %v1554_v13 = vmax.f32 %v1546_v43, 0.0  ;;  %v1548_v8 = vadd.f32 %v2894_v5, %v1540_v39  ;;  %v1555_v6 = vmax.f32 %v1547_v9, 0.0  ;;  %v2328_v18 = vrot.slane %v735_v29, 9 }
  0x65   : > { %v830_v40 = vpack.c.bf16 %v824_v10, %v823_v61  ;;  %v776_v45 = vsel %vm2995_vm7, %v2327_v51, %v775_v26  ;;  %v779_v24 = vrot.slane %v2950_v23, 5  ;;  %v2329_v55 = vrot.slane %v736_v62, 9  ;;  %v3221_v62 = vld [vmem:[%s2815_s18 + $0x24] sm:$0x1] }
  0x66   : > { %v1559_v19 = vpack.c.bf16 %v1554_v13, %v1553_v33  ;;  %v1556_v58 = vmax.f32 %v1548_v8, 0.0  ;;  %v801_v2 = vunpack.c.l.bf16 %v776_v45  ;;  %v783_v25 = vrot.slane %v2970_v20, 5 }
  0x67   : > { %2519 = vmatmul.mubr.msk.bf16.vlgmr.msra.gmra.mrb[0].mxu1 %vm568_vm4, %v830_v40  ;;  %v780_v48 = vsel %vm2995_vm7, %v2328_v18, %v779_v24  ;;  %v2330_v22 = vrot.slane %v737_v41, 9  ;;  %v787_v4 = vrot.slane %v2984_v49, 5  ;;  %v1668_v52 = vshrl.u32 %v2404_v16, 16  ;;  %v2410_v41 = vld [vmem:[%s2815_s18 + $0x28] sm:$0xf] }
  0x68   : > { %2527 = vmatpush3.bf16.msra.mxu1 %v986_v17  ;;  %2562 = vmatprep.mubr.msk.bf16.mxu0 %vm568_vm4, %v1559_v19  ;;  %v1560_v23 = vpack.c.bf16 %v1556_v58, %v1555_v6  ;;  %v802_v46 = vunpack.c.l.bf16 %v780_v48  ;;  %v809_v56 = vmul.f32 %v2879_v57, %v801_v2  ;;  %v784_v20 = vsel %vm2995_vm7, %v2329_v55, %v783_v25 }
  0x69   : > { %v788_v50 = vsel %vm2995_vm7, %v2330_v22, %v787_v4  ;;  %v803_v49 = vunpack.c.l.bf16 %v784_v20  ;;  %v1670_v54 = vrot.slane %v1668_v52, 4  ;;  %v1671_v21 = vshll.u32 %v2404_v16, 16  ;;  %2657 = vmatprep.subr.msk.bf16.mxu1 %vm581_vm0, %v2772_v1  ;;  %v3225_v16 = vld [vmem:[%s2815_s18 + $0x2c] sm:$0x1]  ;;  %v2336_v22 = vld [vmem:[%s2815_s18 + $0x8] ss:$8 sps:$4 sm:$0xff]  }
  0x6a   : > { %2563 = vmatmul.mubr.msk.bf16.gmra.mrb[4].mxu0 %vm568_vm4, %v1560_v23  ;;  %v810_v17 = vmul.f32 %v2879_v57, %v802_v46  ;;  %v817_v47 = vadd.f32 %v2894_v5, %v809_v56  ;;  %v804_v14 = vunpack.c.l.bf16 %v788_v50  ;;  %v1677_v30 = vshll.u32 %v3195_v12, 16 }
  0x6b   : > { %v811_v15 = vmul.f32 %v2879_v57, %v803_v49  ;;  %v1673_v0 = vrot.slane %v1671_v21, 5  ;;  %v1682_v28 = vshrl.u32 %v2406_v63, 16  ;;  %v1685_v37 = vshll.u32 %v2406_v63, 16  ;;  %v2338_v49 = vld [vmem:[%s2815_s18 + $0x18] ss:$8 sps:$4 sm:$0xff]  }
  0x6c   : > { %v818_v1 = vadd.f32 %v2894_v5, %v810_v17  ;;  %v825_v31 = vmax.f32 %v817_v47, 0.0  ;;  %v812_v11 = vmul.f32 %v2879_v57, %v804_v14  ;;  %v1679_v44 = vrot.slane %v1677_v30, 5 }
  0x6d   : > { %v819_v60 = vadd.f32 %v2894_v5, %v811_v15  ;;  %v1674_v29 = vor.u32 %v1673_v0, %v1670_v54  ;;  %v1684_v51 = vrot.slane %v1682_v28, 4  ;;  %v1687_v35 = vrot.slane %v1685_v37, 5 }
  0x6e   : > { %v826_v43 = vmax.f32 %v818_v1, 0.0  ;;  %v820_v39 = vadd.f32 %v2894_v5, %v812_v11  ;;  %v1691_v9 = vshll.u32 %v3210_v7, 16  ;;  %v1696_v61 = vshrl.u32 %v2408_v27, 16 }
  0x6f   : > { %v827_v10 = vmax.f32 %v819_v60, 0.0  ;;  %v1675_v33 = vrot.slane %v1674_v29, 4  ;;  %v1688_v26 = vor.u32 %v1687_v35, %v1684_v51  ;;  %v1699_v13 = vshll.u32 %v2408_v27, 16 }
  0x70   : > { %v831_v8 = vpack.c.bf16 %v826_v43, %v825_v31  ;;  %v828_v6 = vmax.f32 %v820_v39, 0.0  ;;  %v1693_v18 = vrot.slane %v1691_v9, 5  ;;  %v1698_v40 = vrot.slane %v1696_v61, 4  ;;  %v2412_v31 = vld [vmem:[%s2815_s18 + $0x30] sm:$0xf] }
  0x71   : > { %v1680_v45 = vsel %vm2865_vm3, %v1675_v33, %v1679_v44  ;;  %v1689_v24 = vrot.slane %v1688_v26, 4  ;;  %v1701_v55 = vrot.slane %v1699_v13, 5  ;;  %v1705_v19 = vshll.u32 %v3221_v62, 16 }
  0x72   : > { %2522 = vmatprep.mubr.msk.bf16.mxu1 %vm568_vm4, %v831_v8  ;;  %v832_v58 = vpack.c.bf16 %v828_v6, %v827_v10  ;;  %v1787_v2 = vunpack.c.l.bf16 %v1680_v45  ;;  %v1710_v25 = vshrl.u32 %v2410_v41, 16  ;;  %v1713_v48 = vshll.u32 %v2410_v41, 16  ;;  %v3259_v8 = vld [vmem:[%s2815_s18 + $0x34] sm:$0x1]  ;;  %v2414_v6 = vld [vmem:[%s2815_s18 + $0x38] sm:$0xf] }
  0x73   : > { %v1694_v4 = vsel %vm2865_vm3, %v1689_v24, %v1693_v18  ;;  %v1702_v52 = vor.u32 %v1701_v55, %v1698_v40  ;;  %v1707_v23 = vrot.slane %v1705_v19, 5  ;;  %v1719_v46 = vshll.u32 %v3225_v16, 16 }
  0x74   : > { %2523 = vmatmul.mubr.msk.bf16.gmra.mrb[4].mxu1 %vm568_vm4, %v832_v58  ;;  %v1788_v56 = vunpack.c.l.bf16 %v1694_v4  ;;  %v1795_v20 = vmul.f32 %v2879_v57, %v1787_v2  ;;  %v1712_v63 = vrot.slane %v1710_v25, 4  ;;  %v1715_v50 = vrot.slane %v1713_v48, 5  ;;  %v3266_v2 = vld [vmem:[%s2815_s18 + $0x3c] sm:$0x1] }
  0x75   : > { %v1703_v54 = vrot.slane %v1702_v52, 4  ;;  %v1721_v21 = vrot.slane %v1719_v46, 5  ;;  %v3240_v17 = vsel %vm581_vm0, %v3167_v59, 0  ;;  %v935_v47 = vunpack.c.l.bf16 %v2336_v22 }
  0x76   : > { %v1796_v14 = vmul.f32 %v2879_v57, %v1788_v56  ;;  %v1803_v30 = vadd.f32 %v2894_v5, %v1795_v20  ;;  %v1716_v15 = vor.u32 %v1715_v50, %v1712_v63  ;;  %v936_v0 = vunpack.c.h.bf16 %v2336_v22  ;;  %v3273_v63 = vld [vmem:[%s2815_s18 + $0x44] sm:$0x1]  ;;  %v2418_v50 = vld [vmem:[%s2815_s18 + $0x48] sm:$0xf] }
  0x77   : > { %v1708_v28 = vsel %vm2865_vm3, %v1703_v54, %v1707_v23  ;;  %v943_v37 = vmul.f32 %v2879_v57, %v935_v47  ;;  %v937_v27 = vunpack.c.l.bf16 %v2338_v49  ;;  %v938_v1 = vunpack.c.h.bf16 %v2338_v49  ;;  %v2416_v23 = vld [vmem:[%s2815_s18 + $0x40] sm:$0xf] }
  0x78   : > { %v1804_v11 = vadd.f32 %v2894_v5, %v1796_v14  ;;  %v1811_v59 = vmax.f32 %v1803_v30, 0.0  ;;  %v1717_v44 = vrot.slane %v1716_v15, 4  ;;  %v1789_v60 = vunpack.c.l.bf16 %v1708_v28 }
  0x79   : > { %v944_v29 = vmul.f32 %v2879_v57, %v936_v0  ;;  %v951_v51 = vadd.f32 %v2894_v5, %v943_v37  ;;  %v945_v35 = vmul.f32 %v2879_v57, %v937_v27  ;;  %v946_v43 = vmul.f32 %v2879_v57, %v938_v1  ;;  %v3279_v0 = vld [vmem:[%s2815_s18 + $0x4c] sm:$0x1] }
  0x7a   : > { %v1812_v39 = vmax.f32 %v1804_v11, 0.0  ;;  %v1722_v9 = vsel %vm2865_vm3, %v1717_v44, %v1721_v21  ;;  %v1797_v61 = vmul.f32 %v2879_v57, %v1789_v60  ;;  %v1724_v10 = vshrl.u32 %v2412_v31, 16 }
  0x7b   : > { %v1790_v33 = vunpack.c.l.bf16 %v1722_v9  ;;  %v952_v26 = vadd.f32 %v2894_v5, %v944_v29  ;;  %v959_v41 = vmax.f32 %v951_v51, 0.0  ;;  %v953_v13 = vadd.f32 %v2894_v5, %v945_v35 }
  0x7c   : > { %v1819_v18 = vpack.c.bf16 %v1812_v39, %v1811_v59  ;;  %v1805_v40 = vadd.f32 %v2894_v5, %v1797_v61  ;;  %v954_v45 = vadd.f32 %v2894_v5, %v946_v43  ;;  %v1726_v24 = vrot.slane %v1724_v10, 4  ;;  %v2342_v39 = vld [vmem:[%s2815_s18 + $0x38] ss:$8 sps:$4 sm:$0xff]  }
  0x7d   : > { %v1798_v55 = vmul.f32 %v2879_v57, %v1790_v33  ;;  %v960_v19 = vmax.f32 %v952_v26, 0.0  ;;  %v961_v58 = vmax.f32 %v953_v13, 0.0  ;;  %v1727_v25 = vshll.u32 %v2412_v31, 16  ;;  %v2340_v31 = vld [vmem:[%s2815_s18 + $0x28] ss:$8 sps:$4 sm:$0xff]  }
  0x7e   : > { %2568 = vmatprep.mubr.msk.bf16.mxu0 %vm568_vm4, %v1819_v18  ;;  %v1813_v48 = vmax.f32 %v1805_v40, 0.0  ;;  %v962_v22 = vmax.f32 %v954_v45, 0.0  ;;  %v1733_v4 = vshll.u32 %v3259_v8, 16  ;;  %v1738_v52 = vshrl.u32 %v2414_v6, 16  ;;  %v3296_v40 = vld [vmem:[%s3444_s2] ss:$0 sm:$0xff] }
  0x7f   : > { %v1806_v46 = vadd.f32 %v2894_v5, %v1798_v55  ;;  %v967_v56 = vpack.c.bf16 %v960_v19, %v959_v41  ;;  %v1729_v20 = vrot.slane %v1727_v25, 5  ;;  %v1741_v57 = vshll.u32 %v2414_v6, 16 }
  0x80   : > { %v968_v49 = vpack.c.bf16 %v962_v22, %v961_v58  ;;  %v1735_v54 = vrot.slane %v1733_v4, 5  ;;  %v1740_v21 = vrot.slane %v1738_v52, 4  ;;  %v1747_v47 = vshll.u32 %v3266_v2, 16 }
  0x81   : > { %v1814_v14 = vmax.f32 %v1806_v46, 0.0  ;;  %2528 = vmatprep.mubr.msk.bf16.mxu1 %vm568_vm4, %v967_v56  ;;  %v1730_v30 = vor.u32 %v1729_v20, %v1726_v24  ;;  %v1743_v15 = vrot.slane %v1741_v57, 5  ;;  %v1752_v5 = vshrl.u32 %v2416_v23, 16 }
  0x82   : > { %2529 = vmatmul.mubr.msk.bf16.vlgmr.msra.gmra.mrb[0].mxu1 %vm568_vm4, %v968_v49  ;;  %v1749_v28 = vrot.slane %v1747_v47, 5  ;;  %v1755_v37 = vshll.u32 %v2416_v23, 16  ;;  %v1761_v27 = vshll.u32 %v3273_v63, 16  ;;  %v1766_v1 = vshrl.u32 %v2418_v50, 16 }
  0x83   : > { %v1820_v11 = vpack.c.bf16 %v1814_v14, %v1813_v48  ;;  %2587 = vmatpush3.bf16.msra.mxu1 %v2780_v3  ;;  %v1731_v59 = vrot.slane %v1730_v30, 4  ;;  %v1744_v44 = vor.u32 %v1743_v15, %v1740_v21  ;;  %v1754_v60 = vrot.slane %v1752_v5, 4  ;;  %v3304_v48 = vld [vmem:[%s3445_s3] ss:$0 sm:$0xff]  ;;  %v2425_v21 = vld [vmem:[%s2815_s18 + $0x10] sm:$0xe] }
  0x84   : > { %v1757_v29 = vrot.slane %v1755_v37, 5  ;;  %v1763_v51 = vrot.slane %v1761_v27, 5  ;;  %v1768_v35 = vrot.slane %v1766_v1, 4  ;;  %v1769_v43 = vshll.u32 %v2418_v50, 16  ;;  %v2426_v1 = vld [vmem:[%s2815_s18 + $0x18] sm:$0xe] }
  0x85   : > { %2569 = vmatmul.mubr.msk.bf16.vlgmr.msra.gmra.mrb[0].mxu0 %vm568_vm4, %v1820_v11  ;;  %v1736_v9 = vsel %vm2865_vm3, %v1731_v59, %v1735_v54  ;;  %v1745_v61 = vrot.slane %v1744_v44, 4  ;;  %v1775_v10 = vshll.u32 %v3279_v0, 16  ;;  %v939_v33 = vunpack.c.l.bf16 %v2340_v31 }
  0x86   : > { %2577 = vmatpush3.bf16.msra.mxu0 %v3240_v17  ;;  %v1791_v3 = vunpack.c.l.bf16 %v1736_v9  ;;  %v1758_v26 = vor.u32 %v1757_v29, %v1754_v60  ;;  %v1771_v41 = vrot.slane %v1769_v43, 5  ;;  %v940_v13 = vunpack.c.h.bf16 %v2340_v31  ;;  %v2427_v43 = vld [vmem:[%s2815_s18 + $0x20] sm:$0xe] }
  0x87   : > { %v1750_v6 = vsel %vm2865_vm3, %v1745_v61, %v1749_v28  ;;  %v1777_v18 = vrot.slane %v1775_v10, 5  ;;  %v947_v45 = vmul.f32 %v3296_v40, %v939_v33  ;;  %v941_v24 = vunpack.c.l.bf16 %v2342_v39 }
  0x88   : > { %v1792_v55 = vunpack.c.l.bf16 %v1750_v6  ;;  %v1799_v19 = vmul.f32 %v3296_v40, %v1791_v3  ;;  %v1759_v17 = vrot.slane %v1758_v26, 4  ;;  %v1772_v58 = vor.u32 %v1771_v41, %v1768_v35 }
  0x89   : > { %v948_v25 = vmul.f32 %v3296_v40, %v940_v13  ;;  %v955_v22 = vadd.f32 %v3304_v48, %v947_v45  ;;  %v942_v4 = vunpack.c.h.bf16 %v2342_v39  ;;  %v949_v52 = vmul.f32 %v3296_v40, %v941_v24  ;;  %v2428_v39 = vld [vmem:[%s2815_s18 + $0x28] sm:$0xe] }
  0x8a   : > { %v1800_v23 = vmul.f32 %v3296_v40, %v1792_v55  ;;  %v1807_v46 = vadd.f32 %v3304_v48, %v1799_v19  ;;  %v1764_v56 = vsel %vm2865_vm3, %v1759_v17, %v1763_v51  ;;  %v1773_v20 = vrot.slane %v1772_v58, 4  ;;  %v2357_v13 = vld [vmem:[%s2815_s18 + $0x28] sm:$0xf] }
  0x8b   : > { %v1793_v57 = vunpack.c.l.bf16 %v1764_v56  ;;  %v956_v50 = vadd.f32 %v3304_v48, %v948_v25  ;;  %v963_v49 = vmax.f32 %v955_v22, 0.0  ;;  %v950_v54 = vmul.f32 %v3296_v40, %v942_v4  ;;  %v2359_v25 = vld [vmem:[%s2815_s18 + $0x30] sm:$0xf] }
  0x8c   : > { %v1808_v47 = vadd.f32 %v3304_v48, %v1800_v23  ;;  %v1815_v14 = vmax.f32 %v1807_v46, 0.0  ;;  %v1778_v30 = vsel %vm2865_vm3, %v1773_v20, %v1777_v18  ;;  %v957_v15 = vadd.f32 %v3304_v48, %v949_v52 }
  0x8d   : > { %v1794_v5 = vunpack.c.l.bf16 %v1778_v30  ;;  %v1801_v28 = vmul.f32 %v3296_v40, %v1793_v57  ;;  %v964_v37 = vmax.f32 %v956_v50, 0.0  ;;  %v958_v27 = vadd.f32 %v3304_v48, %v950_v54 }
  0x8e   : > { %v1816_v31 = vmax.f32 %v1808_v47, 0.0  ;;  %v965_v11 = vmax.f32 %v957_v15, 0.0  ;;  %v2433_v59 = vrot.slane %v2425_v21, 9  ;;  %v1939_v44 = vrot.slane %v3195_v12, 5 }
  0x8f   : > { %v1802_v60 = vmul.f32 %v3296_v40, %v1794_v5  ;;  %v1809_v29 = vadd.f32 %v3304_v48, %v1801_v28  ;;  %v969_v51 = vpack.c.bf16 %v964_v37, %v963_v49  ;;  %v966_v35 = vmax.f32 %v958_v27, 0.0  ;;  %v2429_v49 = vld [vmem:[%s2815_s18 + $0x30] sm:$0xe]  ;;  %v2430_v28 = vld [vmem:[%s2815_s18 + $0x38] sm:$0xe] }
  0x90   : > { %v1821_v9 = vpack.c.bf16 %v1816_v31, %v1815_v14  ;;  %v1940_v61 = vsel %vm2995_vm7, %v2433_v59, %v1939_v44  ;;  %v2434_v10 = vrot.slane %v2426_v1, 9  ;;  %v1943_v33 = vrot.slane %v3210_v7, 5 }
  0x91   : > { %v1810_v3 = vadd.f32 %v3304_v48, %v1802_v60  ;;  %v1817_v26 = vmax.f32 %v1809_v29, 0.0  ;;  %2532 = vmatprep.mubr.msk.bf16.mxu1 %vm568_vm4, %v969_v51  ;;  %v970_v12 = vpack.c.bf16 %v966_v35, %v965_v11  ;;  %v1977_v41 = vunpack.c.l.bf16 %v1940_v61  ;;  %v2361_v29 = vld [vmem:[%s2815_s18 + $0x38] sm:$0xf] }
  0x92   : > { %2572 = vmatprep.mubr.msk.bf16.mxu0 %vm568_vm4, %v1821_v9  ;;  %v1944_v6 = vsel %vm2995_vm7, %v2434_v10, %v1943_v33  ;;  %v2435_v18 = vrot.slane %v2427_v43, 9  ;;  %v1947_v45 = vrot.slane %v3221_v62, 5  ;;  %v2436_v24 = vrot.slane %v2428_v39, 9  ;;  %v2363_v33 = vld [vmem:[%s2815_s18 + $0x40] sm:$0xf] }
  0x93   : > { %v1818_v55 = vmax.f32 %v1810_v3, 0.0  ;;  %2533 = vmatmul.mubr.msk.bf16.gmra.mrb[4].mxu1 %vm568_vm4, %v970_v12  ;;  %v1978_v7 = vunpack.c.l.bf16 %v1944_v6  ;;  %v1985_v19 = vmul.f32 %v3296_v40, %v1977_v41  ;;  %v1951_v17 = vrot.slane %v3225_v16, 5 }
  0x94   : > { %v1948_v58 = vsel %vm2995_vm7, %v2435_v18, %v1947_v45  ;;  %v1134_v22 = vshrl.u32 %v2357_v13, 16  ;;  %v1137_v4 = vshll.u32 %v2357_v13, 16  ;;  %v1143_v52 = vshll.u32 %v3055_v32, 16 }
  0x95   : > { %v1822_v23 = vpack.c.bf16 %v1818_v55, %v1817_v26  ;;  %v1986_v62 = vmul.f32 %v3296_v40, %v1978_v7  ;;  %v1993_v46 = vadd.f32 %v3304_v48, %v1985_v19  ;;  %v1952_v56 = vsel %vm2995_vm7, %v2436_v24, %v1951_v17  ;;  %v2431_v19 = vld [vmem:[%s2815_s18 + $0x40] sm:$0xe] }
  0x96   : > { %v1979_v20 = vunpack.c.l.bf16 %v1948_v58  ;;  %v1980_v57 = vunpack.c.l.bf16 %v1952_v56  ;;  %v1136_v16 = vrot.slane %v1134_v22, 4  ;;  %v1139_v50 = vrot.slane %v1137_v4, 5 }
  0x97   : > { %2573 = vmatmul.mubr.msk.bf16.gmra.mrb[4].mxu0 %vm568_vm4, %v1822_v23  ;;  %v1994_v54 = vadd.f32 %v3304_v48, %v1986_v62  ;;  %v2001_v21 = vmax.f32 %v1993_v46, 0.0  ;;  %v1145_v32 = vrot.slane %v1143_v52, 5  ;;  %v1148_v47 = vshrl.u32 %v2359_v25, 16  ;;  %v2432_v62 = vld [vmem:[%s2815_s18 + $0x48] sm:$0xe]  ;;  %s3415_s18 = scalar_lea.vmem %s3448_s6, %s2450_s15 }
  0x98   : > { %v1987_v14 = vmul.f32 %v3296_v40, %v1979_v20  ;;  %v1988_v30 = vmul.f32 %v3296_v40, %v1980_v57  ;;  %v1140_v15 = vor.u32 %v1139_v50, %v1136_v16  ;;  %v1151_v5 = vshll.u32 %v2359_v25, 16 }
  0x99   : > { %v2002_v37 = vmax.f32 %v1994_v54, 0.0  ;;  %v1150_v27 = vrot.slane %v1148_v47, 4  ;;  %v1157_v1 = vshll.u32 %v3060_v38, 16  ;;  %v2437_v31 = vrot.slane %v2429_v49, 9 }
  0x9a   : > { %v1995_v11 = vadd.f32 %v3304_v48, %v1987_v14  ;;  %v1996_v59 = vadd.f32 %v3304_v48, %v1988_v30  ;;  %v1141_v44 = vrot.slane %v1140_v15, 4  ;;  %v1153_v60 = vrot.slane %v1151_v5, 5 }
  0x9b   : > { %v2009_v51 = vpack.c.bf16 %v2002_v37, %v2001_v21  ;;  %v1159_v35 = vrot.slane %v1157_v1, 5  ;;  %v1955_v43 = vrot.slane %v3259_v8, 5  ;;  %v2438_v39 = vrot.slane %v2430_v28, 9 }
  0x9c   : > { %v2003_v9 = vmax.f32 %v1995_v11, 0.0  ;;  %v2004_v61 = vmax.f32 %v1996_v59, 0.0  ;;  %v1146_v10 = vsel %vm2865_vm3, %v1141_v44, %v1145_v32  ;;  %v1154_v38 = vor.u32 %v1153_v60, %v1150_v27 }
  0x9d   : > { %2578 = vmatprep.mubr.msk.bf16.mxu0 %vm568_vm4, %v2009_v51  ;;  %v1201_v3 = vunpack.c.l.bf16 %v1146_v10  ;;  %v1956_v26 = vsel %vm2995_vm7, %v2437_v31, %v1955_v43  ;;  %v1959_v12 = vrot.slane %v3266_v2, 5  ;;  %v1162_v41 = vshrl.u32 %v2361_v29, 16 }
  0x9e   : > { %v2010_v13 = vpack.c.bf16 %v2004_v61, %v2003_v9  ;;  %v1155_v8 = vrot.slane %v1154_v38, 4  ;;  %v1981_v6 = vunpack.c.l.bf16 %v1956_v26  ;;  %v1165_v18 = vshll.u32 %v2361_v29, 16 }
  0x9f   : > { %v1209_v45 = vmul.f32 %v3296_v40, %v1201_v3  ;;  %v1960_v24 = vsel %vm2995_vm7, %v2438_v39, %v1959_v12  ;;  %v1164_v55 = vrot.slane %v1162_v41, 4  ;;  %v1176_v7 = vshrl.u32 %v2363_v33, 16 }
  0xa0   : > { %2579 = vmatmul.mubr.msk.bf16.vlgmr.msra.gmra.mrb[0].mxu0 %vm568_vm4, %v2010_v13  ;;  %v1160_v17 = vsel %vm2865_vm3, %v1155_v8, %v1159_v35  ;;  %v1982_v2 = vunpack.c.l.bf16 %v1960_v24  ;;  %v1989_v58 = vmul.f32 %v3296_v40, %v1981_v6  ;;  %v1167_v25 = vrot.slane %v1165_v18, 5  ;;  %v2446_v6 = vld [vmem:[%s3446_s4] ss:$0 sm:$0xff] }
  0xa1   : > { %v1202_v22 = vunpack.c.l.bf16 %v1160_v17  ;;  %v1217_v4 = vadd.f32 %v3304_v48, %v1209_v45  ;;  %v1178_v52 = vrot.slane %v1176_v7, 4  ;;  %v1179_v23 = vshll.u32 %v2363_v33, 16  ;;  %v2447_v45 = vld [vmem:[%s3447_s5] ss:$0 sm:$0xff] }
  0xa2   : > { %v1990_v46 = vmul.f32 %v3296_v40, %v1982_v2  ;;  %v1997_v56 = vadd.f32 %v3304_v48, %v1989_v58  ;;  %v1168_v20 = vor.u32 %v1167_v25, %v1164_v55  ;;  %v2439_v57 = vrot.slane %v2431_v19, 9 }
  0xa3   : > { %v1210_v16 = vmul.f32 %v3296_v40, %v1202_v22  ;;  %v1225_v50 = vmax.f32 %v1217_v4, 0.0  ;;  %v1181_v49 = vrot.slane %v1179_v23, 5  ;;  %v1963_v54 = vrot.slane %v3273_v63, 5 }
  0xa4   : > { %v1998_v21 = vadd.f32 %v3304_v48, %v1990_v46  ;;  %v2005_v32 = vmax.f32 %v1997_v56, 0.0  ;;  %v1169_v47 = vrot.slane %v1168_v20, 4  ;;  %v2440_v14 = vrot.slane %v2432_v62, 9 }
  0xa5   : > { %v1218_v30 = vadd.f32 %v3304_v48, %v1210_v16  ;;  %v1182_v15 = vor.u32 %v1181_v49, %v1178_v52  ;;  %v1964_v5 = vsel %vm2995_vm7, %v2439_v57, %v1963_v54  ;;  %v1967_v28 = vrot.slane %v3279_v0, 5 }
  0xa6   : > { %v2006_v37 = vmax.f32 %v1998_v21, 0.0  ;;  %v1174_v27 = vsel %vm2865_vm3, %v1169_v47, %v3079_v53  ;;  %v1983_v1 = vunpack.c.l.bf16 %v1964_v5 }
  0xa7   : > { %v1226_v63 = vmax.f32 %v1218_v30, 0.0  ;;  %v1183_v31 = vrot.slane %v1182_v15, 4  ;;  %v1203_v11 = vunpack.c.l.bf16 %v1174_v27  ;;  %v1968_v59 = vsel %vm2995_vm7, %v2440_v14, %v1967_v28 }
  0xa8   : > { %v2011_v44 = vpack.c.bf16 %v2006_v37, %v2005_v32  ;;  %v1984_v60 = vunpack.c.l.bf16 %v1968_v59  ;;  %v1991_v29 = vmul.f32 %v3296_v40, %v1983_v1 }
  0xa9   : > { %v1231_v51 = vpack.c.bf16 %v1226_v63, %v1225_v50  ;;  %v1188_v0 = vsel %vm2865_vm3, %v1183_v31, %v3082_v36  ;;  %v1211_v35 = vmul.f32 %v3296_v40, %v1203_v11 }
  0xaa   : > { %2582 = vmatprep.mubr.msk.bf16.mxu0 %vm568_vm4, %v2011_v44  ;;  %v1204_v53 = vunpack.c.l.bf16 %v1188_v0  ;;  %v1992_v43 = vmul.f32 %v3296_v40, %v1984_v60  ;;  %v1999_v39 = vadd.f32 %v3304_v48, %v1991_v29 }
  0xab   : > { %2542 = vmatprep.mubr.msk.bf16.mxu1 %vm568_vm4, %v1231_v51  ;;  %v1219_v34 = vadd.f32 %v3304_v48, %v1211_v35 }
  0xac   : > { %v1212_v9 = vmul.f32 %v3296_v40, %v1204_v53  ;;  %v2000_v61 = vadd.f32 %v3304_v48, %v1992_v43  ;;  %v2007_v10 = vmax.f32 %v1999_v39, 0.0 }
  0xad   : > { %v1227_v36 = vmax.f32 %v1219_v34, 0.0 }
  0xae   : > { %v1220_v42 = vadd.f32 %v3304_v48, %v1212_v9  ;;  %v2008_v38 = vmax.f32 %v2000_v61, 0.0 }
  0xb0   : > { %v1228_v33 = vmax.f32 %v1220_v42, 0.0  ;;  %v2012_v3 = vpack.c.bf16 %v2008_v38, %v2007_v10 }
  0xb2   : > { %v1232_v26 = vpack.c.bf16 %v1228_v33, %v1227_v36  ;;  %2583 = vmatmul.mubr.msk.bf16.gmra.mrb[4].mxu0 %vm568_vm4, %v2012_v3 }
  0xb4   : > { %2543 = vmatmul.mubr.msk.bf16.vlgmr.msra.gmra.mrb[4].mxu1 %vm568_vm4, %v1232_v26 }
 0x155   : > { %v2530_v12 = vpop.f32.mrb[0].mxu1 }
 0x156   : > { %v1022_v41 = vpop.f32.mrb[1].mxu1 }
 0x157   : > { %v2531_v13 = vpop.f32.mrb[2].mxu1 }
 0x158   : > { %v1025_v8 = vpop.f32.mrb[3].mxu1 }
 0x173   : > { %v2580_v40 = vpop.f32.mrb[0].mxu0 }
 0x174   : > { %v2588_v48 = vadd.f32 %v2580_v40, %v2530_v12  ;;  %v2064_v18 = vpop.f32.mrb[1].mxu0 }
 0x175   : > { %v2589_v24 = vadd.f32 %v2064_v18, %v1022_v41  ;;  %v2581_v55 = vpop.f32.mrb[2].mxu0 }
 0x176   : > { %v2112_v7 = vmul.f32 %v2588_v48, %v2446_v6  ;;  %v2590_v19 = vadd.f32 %v2581_v55, %v2531_v13  ;;  %v2067_v17 = vpop.f32.mrb[3].mxu0 }
 0x177   : > { %v2110_v2 = vmul.f32 %v2589_v24, %v2446_v6  ;;  %v2591_v58 = vadd.f32 %v2067_v17, %v1025_v8 }
 0x178   : > { %v2127_v25 = vadd.f32 %v2447_v45, %v2112_v7  ;;  %v2113_v22 = vmul.f32 %v2590_v19, %v2446_v6 }
 0x179   : > { %v2125_v4 = vadd.f32 %v2447_v45, %v2110_v2  ;;  %v2111_v52 = vmul.f32 %v2591_v58, %v2446_v6 }
 0x17a   : > { %v2135_v23 = vmax.f32 %v2127_v25, 0.0  ;;  %v2128_v62 = vadd.f32 %v2447_v45, %v2113_v22 }
 0x17b   : > { %v2133_v46 = vmax.f32 %v2125_v4, 0.0  ;;  %v2126_v56 = vadd.f32 %v2447_v45, %v2111_v52 }
 0x17c   : > { %v2143_v20 = vpack.c.bf16 %v2135_v23, %v2135_v23  ;;  %v2136_v57 = vmax.f32 %v2128_v62, 0.0 }
 0x17d   : > { %v2141_v16 = vpack.c.bf16 %v2133_v46, %v2133_v46  ;;  %v2134_v50 = vmax.f32 %v2126_v56, 0.0 }
 0x17e   : > { %2152 = vst.msk [vmem:[%s3415_s18 + $0x8] sm:$0xf] %vm2149_vm8, %v2143_v20  ;;  %v2144_v49 = vpack.c.bf16 %v2136_v57, %v2136_v57 }
 0x17f   : > { %2150 = vst.msk [vmem:[%s3415_s18] sm:$0xf] %vm2149_vm8, %v2141_v16  ;;  %v2142_v54 = vpack.c.bf16 %v2134_v50, %v2134_v50 }
 0x180   : > { %2153 = vst.msk [vmem:[%s3415_s18 + $0xc] sm:$0xf] %vm2149_vm8, %v2144_v49 }
 0x181   : > { %2151 = vst.msk [vmem:[%s3415_s18 + $0x4] sm:$0xf] %vm2149_vm8, %v2142_v54 }
 0x185   : > { %v2584_v21 = vpop.f32.mrb[4].mxu0 }
 0x186   : > { %v2080_v32 = vpop.f32.mrb[5].mxu0 }
 0x187   : > { %v2544_v47 = vpop.f32.mrb[4].mxu1  ;;  %v2585_v14 = vpop.f32.mrb[6].mxu0 }
 0x188   : > { %v2592_v30 = vadd.f32 %v2584_v21, %v2544_v47  ;;  %v1300_v15 = vpop.f32.mrb[5].mxu1  ;;  %v2083_v5 = vpop.f32.mrb[7].mxu0 }
 0x189   : > { %v2593_v28 = vadd.f32 %v2080_v32, %v1300_v15  ;;  %v2545_v37 = vpop.f32.mrb[6].mxu1 }
 0x18a   : > { %v2116_v27 = vmul.f32 %v2592_v30, %v2446_v6  ;;  %v2594_v1 = vadd.f32 %v2585_v14, %v2545_v37  ;;  %v1303_v63 = vpop.f32.mrb[7].mxu1 }
 0x18b   : > { %v2114_v31 = vmul.f32 %v2593_v28, %v2446_v6  ;;  %v2595_v11 = vadd.f32 %v2083_v5, %v1303_v63 }
 0x18c   : > { %v2131_v59 = vadd.f32 %v2447_v45, %v2116_v27  ;;  %v2117_v44 = vmul.f32 %v2594_v1, %v2446_v6 }
 0x18d   : > { %v2129_v60 = vadd.f32 %v2447_v45, %v2114_v31  ;;  %v2115_v29 = vmul.f32 %v2595_v11, %v2446_v6 }
 0x18e   : > { %v2139_v51 = vmax.f32 %v2131_v59, 0.0  ;;  %v2132_v0 = vadd.f32 %v2447_v45, %v2117_v44 }
 0x18f   : > { %v2137_v35 = vmax.f32 %v2129_v60, 0.0  ;;  %v2130_v53 = vadd.f32 %v2447_v45, %v2115_v29 }
 0x190   : > { %v2147_v43 = vpack.c.bf16 %v2139_v51, %v2139_v51  ;;  %v2140_v39 = vmax.f32 %v2132_v0, 0.0 }
 0x191   : > { %v2145_v34 = vpack.c.bf16 %v2137_v35, %v2137_v35  ;;  %v2138_v9 = vmax.f32 %v2130_v53, 0.0 }
 0x192   : > { %2156 = vst.msk [vmem:[%s3415_s18 + $0x18] sm:$0xf] %vm2149_vm8, %v2147_v43  ;;  %v2148_v61 = vpack.c.bf16 %v2140_v39, %v2140_v39 }
 0x193   : > { %2154 = vst.msk [vmem:[%s3415_s18 + $0x10] sm:$0xf] %vm2149_vm8, %v2145_v34  ;;  %v2146_v10 = vpack.c.bf16 %v2138_v9, %v2138_v9 }
 0x194   : > { %2157 = vst.msk [vmem:[%s3415_s18 + $0x1c] sm:$0xf] %vm2149_vm8, %v2148_v61 }
 0x195   : > { %2155 = vst.msk [vmem:[%s3415_s18 + $0x14] sm:$0xf] %vm2149_vm8, %v2146_v10 }
 0x196 PF: > { %s16_s23 = sadd.s32 1, %s2711_s23   ;;  %s3453_s21 = smov %s2707_s22 }
 0x197   : > { %p13_p5 = scmp.ge.s32.totalorder %s16_s23, 4   ;;  %s3454_s22 = smov %s3456_s24 }
 0x199   :  { %15 = sbr.rel (!%p13_p5) target bundleno = 2 (0x2), region = 94 }

</bundles_post_ra>
